<compile_context>
chip_gen: v6e
topology: v6e:2x2x1
jax: 0.10.0
libtpu: 0.0.40
codegen_flags: <defaults>
</compile_context>

<pallas_src>
import math

import jax
import jax.numpy as jnp
from jax.experimental import pallas as pl
from jax.experimental.pallas import tpu as pltpu
from jax.scipy.linalg import block_diag

LN_EPS = 1e-5


def _round_up(x, m):
    return ((x + m - 1) // m) * m


def _layernorm(h, gamma, beta):
    mu = jnp.mean(h, axis=-1, keepdims=True)
    var = jnp.mean((h - mu) ** 2, axis=-1, keepdims=True)
    return (h - mu) * jax.lax.rsqrt(var + LN_EPS) * gamma + beta


def _default_fuse_ln_stats():
    """Fuse the two LN-reduction matmuls only on 256x256-MXU chips (v6e/v7x)."""
    try:
        kind = jax.devices()[0].device_kind.lower()
    except Exception:
        return True
    return not any(t in kind for t in ("v2", "v3", "v4", "v5"))


# ----------------------------------------------------------------------------
# Kernel
# ----------------------------------------------------------------------------
def _make_kernel(fuse_ln_stats, dh, mm_precision):
    """fuse_ln_stats / dh / mm_precision are static (closed over at trace time)."""

    def kernel(
        x_ref,      # (TM, D)        continuous inputs tile (f32)
        bcs_ref,    # (D, 2*D*F)     [B | B], B = block-diag 2*pi*freqs
        phase_ref,  # (1, 2*D*F)     [0 ... 0 | -pi/2 ... -pi/2]
        wcs_ref,    # (2*D*F, D*H)   vstack(block-diag Wcos, block-diag Wsin)
        wx_ref,     # (D, D*H)       x-passthrough rows of Linear #1
        b1_ref,     # (1, D*H)
        g1_ref,     # (1, D*H)       per-feature LayerNorm gamma (flattened)
        be1_ref,    # (1, D*H)       per-feature LayerNorm beta
        mavg_ref,   # (D*H, D*H) or (2*D*H, 2*D*H) averaging matrix
        w2_ref,     # (D*H, H)       row-stacked Linear #2 (sums over D too)
        b2_ref,     # (1, H)         sum_i b2[i]
        gout_ref,   # (1, H)         to_out LayerNorm gamma
        bout_ref,   # (1, H)
        w3_ref,     # (H, H)         to_out Linear weight (in, out)
        b3_ref,     # (1, H)
        o_ref,      # (TM, H)
    ):
        f32 = jnp.float32
        mm_dtype = wcs_ref.dtype  # bf16 (perf path) or f32 (validation path)

        def mm(a, b):  # single-pass MXU dot with f32 accumulation
            return jnp.dot(a.astype(mm_dtype), b,
                           preferred_element_type=f32, precision=mm_precision)

        x = x_ref[...].astype(f32)                                     # (TM, D)

        # [cos | sin] of every (feature, band) angle from ONE dot + ONE cos:
        #   cos(x @ [B|B] + [0 | -pi/2]) == [cos(x@B) | sin(x@B)].
        ang = mm(x, bcs_ref[...]) + phase_ref[...]                     # (TM, 2DF)
        cossin = jnp.cos(ang)

        # Per-feature Linear #1 for all features at once (block-diag weights);
        # lane-dense K/N, no concatenation of [cos, sin, x].
        h1 = mm(cossin, wcs_ref[...]) + mm(x, wx_ref[...]) + b1_ref[...]

        # Grouped (per-feature) LayerNorm: reductions stay on the MXU via the
        # averaging matrix.  var = E[h^2] - mean^2 (f32 subtract, clamped) so
        # mean and E[h^2] have no serial dependency and can share a fused dot.
        if fuse_ln_stats:
            stats = mm(jnp.concatenate([h1, h1 * h1], axis=-1), mavg_ref[...])
            mean, eh2 = stats[:, :dh], stats[:, dh:]
        else:
            mean = mm(h1, mavg_ref[...])
            eh2 = mm(h1 * h1, mavg_ref[...])
        var = jnp.maximum(eh2 - mean * mean, 0.0)
        hn = (h1 - mean) * jax.lax.rsqrt(var + LN_EPS) * g1_ref[...] + be1_ref[...]
        hr = jnp.maximum(hn, 0.0)

        # Per-feature Linear #2 + the sum over features in one matmul.
        acc = mm(hr, w2_ref[...]) + b2_ref[...]                        # (TM, H)

        # to_out: LayerNorm -> ReLU -> Linear.
        y = _layernorm(acc, gout_ref[...], bout_ref[...])
        y = jnp.maximum(y, 0.0)
        y = mm(y, w3_ref[...]) + b3_ref[...]

        o_ref[...] = y.astype(o_ref.dtype)

    return kernel


# ----------------------------------------------------------------------------
# Wrapper: weight repacking (done once) + pallas_call
# ----------------------------------------------------------------------------
_PARAM_ORDER = (
    "bcs", "phase", "wcs", "wx", "b1", "g1", "be1", "mavg",
    "w2", "b2", "gout", "bout", "w3", "b3",
)


def pack_params(p, mxu_dtype=jnp.bfloat16, fuse_ln_stats=None):
    """Repack PyTorch-shaped parameters into stacked / block-diagonal form.

    `mxu_dtype` is the dtype of all matmul operands.  bf16 is the recommended
    default on every generation (v5e included: its MXU is bf16-native, f32
    operands only cost extra passes / load traffic); pass f32 only for the
    exact validation path (the kernel then pins precision=HIGHEST).
    """
    freqs = p["freqs"]                       # (D, F)
    d, f = freqs.shape
    h = p["w3"].shape[1]
    dh = d * h
    w1 = p["w1"]                             # (D, 2F+1, H), in order [cos|sin|x]
    two_pi = 2.0 * math.pi
    if fuse_ln_stats is None:
        fuse_ln_stats = _default_fuse_ln_stats()

    bfreq = block_diag(*[(two_pi * freqs[i])[None, :] for i in range(d)])   # (D, D*F)
    bcs = jnp.concatenate([bfreq, bfreq], axis=1)                           # (D, 2*D*F)
    phase = jnp.concatenate(
        [jnp.zeros((1, d * f), jnp.float32),
         jnp.full((1, d * f), -0.5 * math.pi, jnp.float32)], axis=1)        # (1, 2*D*F)

    wc = block_diag(*[w1[i, :f, :] for i in range(d)])                      # (D*F, D*H)
    ws = block_diag(*[w1[i, f:2 * f, :] for i in range(d)])                 # (D*F, D*H)
    wcs = jnp.concatenate([wc, ws], axis=0)                                 # (2*D*F, D*H)
    wx = block_diag(*[w1[i, 2 * f:2 * f + 1, :] for i in range(d)])         # (D,  D*H)

    mavg = jnp.kron(jnp.eye(d, dtype=jnp.float32),
                    jnp.ones((h, h), jnp.float32) / h)                      # (D*H, D*H)
    if fuse_ln_stats:
        mavg = block_diag(mavg, mavg)                                       # (2DH, 2DH)

    return {
        "bcs": bcs.astype(mxu_dtype),
        "phase": phase,
        "wcs": wcs.astype(mxu_dtype),
        "wx": wx.astype(mxu_dtype),
        "b1": p["b1"].reshape(1, dh).astype(jnp.float32),
        "g1": p["g1"].reshape(1, dh).astype(jnp.float32),
        "be1": p["be1"].reshape(1, dh).astype(jnp.float32),
        "mavg": mavg.astype(mxu_dtype),        # entries 1/H: exact in bf16 for H=32
        "w2": p["w2"].reshape(dh, h).astype(mxu_dtype),
        "b2": jnp.sum(p["b2"], axis=0, keepdims=True).astype(jnp.float32),  # (1, H)
        "gout": p["gout"].astype(jnp.float32),
        "bout": p["bout"].astype(jnp.float32),
        "w3": p["w3"].astype(mxu_dtype),
        "b3": p["b3"].astype(jnp.float32),
    }


def fourier_embedding(x_flat, packed, *, tile_m=1024):
    """x_flat: [N, input_dim] float32. Returns [N, hidden_dim] float32."""
    n, d = x_flat.shape
    hidden = packed["w3"].shape[1]
    dh = packed["wcs"].shape[1]
    fuse_ln_stats = packed["mavg"].shape[0] == 2 * dh
    mm_precision = (jax.lax.Precision.HIGHEST
                    if packed["wcs"].dtype == jnp.float32 else None)

    # Choose the number of grid steps first (>= 2 so the "parallel" axis can
    # shard across both v7x TensorCores), then derive the tile size, so padding
    # waste is at most 7 rows (this kernel is compute-bound; padded rows are
    # pure wasted MXU time).
    min_steps = 2 if n >= 16 else 1
    grid = max(pl.cdiv(n, tile_m), min_steps)
    tm = _round_up(pl.cdiv(n, grid), 8)
    n_pad = grid * tm
    if n_pad != n:
        x_flat = jnp.pad(x_flat, ((0, n_pad - n), (0, 0)))

    kernel = _make_kernel(fuse_ln_stats, dh, mm_precision)
    weight_spec = lambda a: pl.BlockSpec(a.shape, lambda m: (0, 0))

    out = pl.pallas_call(
        kernel,
        out_shape=jax.ShapeDtypeStruct((n_pad, hidden), jnp.float32),
        grid_spec=pltpu.PrefetchScalarGridSpec(
            num_scalar_prefetch=0,
            grid=(grid,),
            in_specs=[pl.BlockSpec((tm, d), lambda m: (m, 0))]
                     + [weight_spec(packed[k]) for k in _PARAM_ORDER],
            out_specs=pl.BlockSpec((tm, hidden), lambda m: (m, 0)),
        ),
        compiler_params=pltpu.CompilerParams(
            dimension_semantics=("parallel",),       # shards across 2 TCs on v7x
            vmem_limit_bytes=32 * 1024 * 1024,       # explicit; safe v5e/v6e/v7x
        ),
    )(x_flat, *[packed[k] for k in _PARAM_ORDER])
    return out[:n]


# ----------------------------------------------------------------------------
# Synthetic params + pure-JAX reference (mirrors the PyTorch forward)
# ----------------------------------------------------------------------------
def make_params(key, input_dim, num_freq_bands, hidden_dim):
    ks = jax.random.split(key, 8)
    feat_in = num_freq_bands * 2 + 1
    s = 0.1
    return {
        "freqs": jax.random.normal(ks[0], (input_dim, num_freq_bands), jnp.float32),
        "w1": s * jax.random.normal(ks[1], (input_dim, feat_in, hidden_dim), jnp.float32),
        "b1": s * jax.random.normal(ks[2], (input_dim, hidden_dim), jnp.float32),
        "g1": jnp.ones((input_dim, hidden_dim), jnp.float32),
        "be1": jnp.zeros((input_dim, hidden_dim), jnp.float32),
        "w2": s * jax.random.normal(ks[3], (input_dim, hidden_dim, hidden_dim), jnp.float32),
        "b2": s * jax.random.normal(ks[4], (input_dim, hidden_dim), jnp.float32),
        "gout": jnp.ones((1, hidden_dim), jnp.float32),
        "bout": jnp.zeros((1, hidden_dim), jnp.float32),
        "w3": s * jax.random.normal(ks[5], (hidden_dim, hidden_dim), jnp.float32),
        "b3": s * jax.random.normal(ks[6], (1, hidden_dim), jnp.float32),
    }


def reference(x_flat, p):
    """Pure-JAX mirror of the PyTorch forward, with HIGHEST-precision matmuls."""
    hi = jax.lax.Precision.HIGHEST
    dot = lambda a, b: jnp.dot(a, b, precision=hi)
    two_pi = 2.0 * math.pi
    ang = x_flat[..., None] * p["freqs"] * two_pi                    # (N, D, F)
    feat = jnp.concatenate(
        [jnp.cos(ang), jnp.sin(ang), x_flat[..., None]], axis=-1
    )                                                                # (N, D, 2F+1)
    acc = 0.0
    for i in range(x_flat.shape[1]):
        h = dot(feat[:, i, :], p["w1"][i]) + p["b1"][i]
        h = _layernorm(h, p["g1"][i], p["be1"][i])
        h = jnp.maximum(h, 0.0)
        h = dot(h, p["w2"][i]) + p["b2"][i]
        acc = acc + h
    y = _layernorm(acc, p["gout"][0], p["bout"][0])
    y = jnp.maximum(y, 0.0)
    return dot(y, p["w3"]) + p["b3"][0]


if __name__ == "__main__":
    # Small shapes consistent with the module: batch=2, seq=32, input_dim=4,
    # num_freq_bands=8, hidden_dim=32  ->  D*H = 128 (lane-dense stacked dims).
    batch, seq = 2, 32
    input_dim, num_freq_bands, hidden_dim = 4, 8, 32

    key = jax.random.PRNGKey(0)
    k_x, k_p = jax.random.split(key)
    continuous_inputs = jax.random.normal(k_x, (batch, seq, input_dim), jnp.float32)
    params = make_params(k_p, input_dim, num_freq_bands, hidden_dim)

    x_flat = continuous_inputs.reshape(-1, input_dim)                # [N, input_dim]
    ref = reference(x_flat, params)

    # --- f32 operands + precision=HIGHEST (validation path), both LN-stat
    #     variants so every kernel code path is exercised on any chip ---------
    for fuse in (False, True):
        packed_f32 = pack_params(params, jnp.float32, fuse_ln_stats=fuse)
        out = jax.block_until_ready(fourier_embedding(x_flat, packed_f32))
        assert out.shape == (batch * seq, hidden_dim)
        assert jnp.allclose(out, ref, rtol=1e-4, atol=1e-4), \
            f"f32 mismatch vs reference (fuse_ln_stats={fuse})"

    # Ragged N (exercises the padding / tile-selection path).
    n_ragged = 50
    out_r = jax.block_until_ready(fourier_embedding(x_flat[:n_ragged], packed_f32))
    assert jnp.allclose(out_r, ref[:n_ragged], rtol=1e-4, atol=1e-4), "ragged mismatch"

    # --- bf16 MXU operands (recommended on v5e/v6e/v7x), f32 accumulation ----
    # bf16 quantization of the large angles (|ang| up to ~40) dominates the
    # error here, so validate at a bf16-appropriate tolerance.
    packed_bf16 = pack_params(params, jnp.bfloat16)
    out_bf16 = jax.block_until_ready(fourier_embedding(x_flat, packed_bf16))
    assert jnp.allclose(out_bf16, ref, rtol=2e-1, atol=2e-1), "bf16 mismatch vs reference"
    assert float(jnp.mean(jnp.abs(out_bf16 - ref))) < 5e-2, "bf16 mean-abs error too large"

    print("KERNEL_OK")
</pallas_src>

<mosaic_0001>
module attributes {stable_mosaic.version = 11 : i64} {
  func.func @kernel(%arg0: i32, %arg1: memref<32x4xf32, #tpu.memory_space<vmem>>, %arg2: memref<4x64xf32, #tpu.memory_space<vmem>>, %arg3: memref<1x64xf32, #tpu.memory_space<vmem>>, %arg4: memref<64x128xf32, #tpu.memory_space<vmem>>, %arg5: memref<4x128xf32, #tpu.memory_space<vmem>>, %arg6: memref<1x128xf32, #tpu.memory_space<vmem>>, %arg7: memref<1x128xf32, #tpu.memory_space<vmem>>, %arg8: memref<1x128xf32, #tpu.memory_space<vmem>>, %arg9: memref<128x128xf32, #tpu.memory_space<vmem>>, %arg10: memref<128x32xf32, #tpu.memory_space<vmem>>, %arg11: memref<1x32xf32, #tpu.memory_space<vmem>>, %arg12: memref<1x32xf32, #tpu.memory_space<vmem>>, %arg13: memref<1x32xf32, #tpu.memory_space<vmem>>, %arg14: memref<32x32xf32, #tpu.memory_space<vmem>>, %arg15: memref<1x32xf32, #tpu.memory_space<vmem>>, %arg16: memref<32x32xf32, #tpu.memory_space<vmem>>) attributes {dimension_semantics = [#tpu.dimension_semantics<parallel>], iteration_bounds = array<i64: 2>, scalar_prefetch = 0 : i64, scratch_operands = 0 : i64, tpu.core_type = #tpu.core_type<tc>, window_params = [{transform_indices = @transform_0, window_bounds = array<i64: 32, 4>}, {pipeline_mode = #tpu.pipeline_mode<synchronous>, transform_indices = @transform_1, window_bounds = array<i64: 4, 64>}, {pipeline_mode = #tpu.pipeline_mode<synchronous>, transform_indices = @transform_2, window_bounds = array<i64: 1, 64>}, {pipeline_mode = #tpu.pipeline_mode<synchronous>, transform_indices = @transform_3, window_bounds = array<i64: 64, 128>}, {pipeline_mode = #tpu.pipeline_mode<synchronous>, transform_indices = @transform_4, window_bounds = array<i64: 4, 128>}, {pipeline_mode = #tpu.pipeline_mode<synchronous>, transform_indices = @transform_5, window_bounds = array<i64: 1, 128>}, {pipeline_mode = #tpu.pipeline_mode<synchronous>, transform_indices = @transform_6, window_bounds = array<i64: 1, 128>}, {pipeline_mode = #tpu.pipeline_mode<synchronous>, transform_indices = @transform_7, window_bounds = array<i64: 1, 128>}, {pipeline_mode = #tpu.pipeline_mode<synchronous>, transform_indices = @transform_8, window_bounds = array<i64: 128, 128>}, {pipeline_mode = #tpu.pipeline_mode<synchronous>, transform_indices = @transform_9, window_bounds = array<i64: 128, 32>}, {pipeline_mode = #tpu.pipeline_mode<synchronous>, transform_indices = @transform_10, window_bounds = array<i64: 1, 32>}, {pipeline_mode = #tpu.pipeline_mode<synchronous>, transform_indices = @transform_11, window_bounds = array<i64: 1, 32>}, {pipeline_mode = #tpu.pipeline_mode<synchronous>, transform_indices = @transform_12, window_bounds = array<i64: 1, 32>}, {pipeline_mode = #tpu.pipeline_mode<synchronous>, transform_indices = @transform_13, window_bounds = array<i64: 32, 32>}, {pipeline_mode = #tpu.pipeline_mode<synchronous>, transform_indices = @transform_14, window_bounds = array<i64: 1, 32>}, {transform_indices = @transform_15, window_bounds = array<i64: 32, 32>}]} {
    %c0 = arith.constant 0 : index
    %c0_0 = arith.constant 0 : index
    %0 = vector.load %arg1[%c0, %c0_0] : memref<32x4xf32, #tpu.memory_space<vmem>>, vector<32x4xf32>
    %c0_1 = arith.constant 0 : index
    %c0_2 = arith.constant 0 : index
    %1 = vector.load %arg2[%c0_1, %c0_2] : memref<4x64xf32, #tpu.memory_space<vmem>>, vector<4x64xf32>
    %cst = arith.constant dense<0.000000e+00> : vector<32x64xf32>
    %2 = tpu.matmul %0, %1, %cst {dimension_numbers = #tpu.dot_dimension_numbers<[1], [0], [0], [1], [0, 0, 1, 1], [], []>, precision = #tpu.contract_precision<fp32>} : vector<32x4xf32>, vector<4x64xf32>, vector<32x64xf32> -> vector<32x64xf32>
    %c0_3 = arith.constant 0 : index
    %c0_4 = arith.constant 0 : index
    %3 = vector.load %arg3[%c0_3, %c0_4] : memref<1x64xf32, #tpu.memory_space<vmem>>, vector<1x64xf32>
    %4 = vector.broadcast %3 : vector<1x64xf32> to vector<32x64xf32>
    %5 = arith.addf %2, %4 : vector<32x64xf32>
    %6 = math.cos %5 : vector<32x64xf32>
    %c0_5 = arith.constant 0 : index
    %c0_6 = arith.constant 0 : index
    %7 = vector.load %arg4[%c0_5, %c0_6] : memref<64x128xf32, #tpu.memory_space<vmem>>, vector<64x128xf32>
    %cst_7 = arith.constant dense<0.000000e+00> : vector<32x128xf32>
    %8 = tpu.matmul %6, %7, %cst_7 {dimension_numbers = #tpu.dot_dimension_numbers<[1], [0], [0], [1], [0, 0, 1, 1], [], []>, precision = #tpu.contract_precision<fp32>} : vector<32x64xf32>, vector<64x128xf32>, vector<32x128xf32> -> vector<32x128xf32>
    %c0_8 = arith.constant 0 : index
    %c0_9 = arith.constant 0 : index
    %9 = vector.load %arg5[%c0_8, %c0_9] : memref<4x128xf32, #tpu.memory_space<vmem>>, vector<4x128xf32>
    %cst_10 = arith.constant dense<0.000000e+00> : vector<32x128xf32>
    %10 = tpu.matmul %0, %9, %cst_10 {dimension_numbers = #tpu.dot_dimension_numbers<[1], [0], [0], [1], [0, 0, 1, 1], [], []>, precision = #tpu.contract_precision<fp32>} : vector<32x4xf32>, vector<4x128xf32>, vector<32x128xf32> -> vector<32x128xf32>
    %11 = arith.addf %8, %10 : vector<32x128xf32>
    %c0_11 = arith.constant 0 : index
    %c0_12 = arith.constant 0 : index
    %12 = vector.load %arg6[%c0_11, %c0_12] : memref<1x128xf32, #tpu.memory_space<vmem>>, vector<1x128xf32>
    %13 = vector.broadcast %12 : vector<1x128xf32> to vector<32x128xf32>
    %14 = arith.addf %11, %13 : vector<32x128xf32>
    %c0_13 = arith.constant 0 : index
    %c0_14 = arith.constant 0 : index
    %15 = vector.load %arg9[%c0_13, %c0_14] : memref<128x128xf32, #tpu.memory_space<vmem>>, vector<128x128xf32>
    %cst_15 = arith.constant dense<0.000000e+00> : vector<32x128xf32>
    %16 = tpu.matmul %14, %15, %cst_15 {dimension_numbers = #tpu.dot_dimension_numbers<[1], [0], [0], [1], [0, 0, 1, 1], [], []>, precision = #tpu.contract_precision<fp32>} : vector<32x128xf32>, vector<128x128xf32>, vector<32x128xf32> -> vector<32x128xf32>
    %17 = arith.mulf %14, %14 : vector<32x128xf32>
    %c0_16 = arith.constant 0 : index
    %c0_17 = arith.constant 0 : index
    %18 = vector.load %arg9[%c0_16, %c0_17] : memref<128x128xf32, #tpu.memory_space<vmem>>, vector<128x128xf32>
    %cst_18 = arith.constant dense<0.000000e+00> : vector<32x128xf32>
    %19 = tpu.matmul %17, %18, %cst_18 {dimension_numbers = #tpu.dot_dimension_numbers<[1], [0], [0], [1], [0, 0, 1, 1], [], []>, precision = #tpu.contract_precision<fp32>} : vector<32x128xf32>, vector<128x128xf32>, vector<32x128xf32> -> vector<32x128xf32>
    %20 = arith.mulf %16, %16 : vector<32x128xf32>
    %21 = arith.subf %19, %20 : vector<32x128xf32>
    %cst_19 = arith.constant 0.000000e+00 : f32
    %22 = vector.broadcast %cst_19 : f32 to vector<32x128xf32>
    %23 = arith.maximumf %21, %22 : vector<32x128xf32>
    %24 = arith.subf %14, %16 : vector<32x128xf32>
    %cst_20 = arith.constant 9.99999974E-6 : f32
    %25 = vector.broadcast %cst_20 : f32 to vector<32x128xf32>
    %26 = arith.addf %23, %25 : vector<32x128xf32>
    %27 = math.rsqrt %26 : vector<32x128xf32>
    %28 = arith.mulf %24, %27 : vector<32x128xf32>
    %c0_21 = arith.constant 0 : index
    %c0_22 = arith.constant 0 : index
    %29 = vector.load %arg7[%c0_21, %c0_22] : memref<1x128xf32, #tpu.memory_space<vmem>>, vector<1x128xf32>
    %30 = vector.broadcast %29 : vector<1x128xf32> to vector<32x128xf32>
    %31 = arith.mulf %28, %30 : vector<32x128xf32>
    %c0_23 = arith.constant 0 : index
    %c0_24 = arith.constant 0 : index
    %32 = vector.load %arg8[%c0_23, %c0_24] : memref<1x128xf32, #tpu.memory_space<vmem>>, vector<1x128xf32>
    %33 = vector.broadcast %32 : vector<1x128xf32> to vector<32x128xf32>
    %34 = arith.addf %31, %33 : vector<32x128xf32>
    %cst_25 = arith.constant 0.000000e+00 : f32
    %35 = vector.broadcast %cst_25 : f32 to vector<32x128xf32>
    %36 = arith.maximumf %34, %35 : vector<32x128xf32>
    %c0_26 = arith.constant 0 : index
    %c0_27 = arith.constant 0 : index
    %37 = vector.load %arg10[%c0_26, %c0_27] : memref<128x32xf32, #tpu.memory_space<vmem>>, vector<128x32xf32>
    %cst_28 = arith.constant dense<0.000000e+00> : vector<32x32xf32>
    %38 = tpu.matmul %36, %37, %cst_28 {dimension_numbers = #tpu.dot_dimension_numbers<[1], [0], [0], [1], [0, 0, 1, 1], [], []>, precision = #tpu.contract_precision<fp32>} : vector<32x128xf32>, vector<128x32xf32>, vector<32x32xf32> -> vector<32x32xf32>
    %c0_29 = arith.constant 0 : index
    %c0_30 = arith.constant 0 : index
    %39 = vector.load %arg11[%c0_29, %c0_30] : memref<1x32xf32, #tpu.memory_space<vmem>>, vector<1x32xf32>
    %40 = vector.broadcast %39 : vector<1x32xf32> to vector<32x32xf32>
    %41 = arith.addf %38, %40 : vector<32x32xf32>
    %c0_31 = arith.constant 0 : index
    %c0_32 = arith.constant 0 : index
    %42 = vector.load %arg12[%c0_31, %c0_32] : memref<1x32xf32, #tpu.memory_space<vmem>>, vector<1x32xf32>
    %c0_33 = arith.constant 0 : index
    %c0_34 = arith.constant 0 : index
    %43 = vector.load %arg13[%c0_33, %c0_34] : memref<1x32xf32, #tpu.memory_space<vmem>>, vector<1x32xf32>
    %cst_35 = arith.constant dense<0.000000e+00> : vector<32xf32>
    %44 = vector.multi_reduction <add>, %41, %cst_35 [1] : vector<32x32xf32> to vector<32xf32>
    %45 = vector.shape_cast %44 : vector<32xf32> to vector<32x1xf32>
    %cst_36 = arith.constant 3.200000e+01 : f32
    %46 = vector.broadcast %cst_36 : f32 to vector<32x1xf32>
    %47 = arith.divf %45, %46 : vector<32x1xf32>
    %48 = vector.broadcast %47 : vector<32x1xf32> to vector<32x32xf32>
    %49 = arith.subf %41, %48 : vector<32x32xf32>
    %50 = arith.mulf %49, %49 : vector<32x32xf32>
    %cst_37 = arith.constant dense<0.000000e+00> : vector<32xf32>
    %51 = vector.multi_reduction <add>, %50, %cst_37 [1] : vector<32x32xf32> to vector<32xf32>
    %52 = vector.shape_cast %51 : vector<32xf32> to vector<32x1xf32>
    %cst_38 = arith.constant 3.200000e+01 : f32
    %53 = vector.broadcast %cst_38 : f32 to vector<32x1xf32>
    %54 = arith.divf %52, %53 : vector<32x1xf32>
    %55 = vector.broadcast %47 : vector<32x1xf32> to vector<32x32xf32>
    %56 = arith.subf %41, %55 : vector<32x32xf32>
    %cst_39 = arith.constant 9.99999974E-6 : f32
    %57 = vector.broadcast %cst_39 : f32 to vector<32x1xf32>
    %58 = arith.addf %54, %57 : vector<32x1xf32>
    %59 = math.rsqrt %58 : vector<32x1xf32>
    %60 = vector.broadcast %59 : vector<32x1xf32> to vector<32x32xf32>
    %61 = arith.mulf %56, %60 : vector<32x32xf32>
    %62 = vector.broadcast %42 : vector<1x32xf32> to vector<32x32xf32>
    %63 = arith.mulf %61, %62 : vector<32x32xf32>
    %64 = vector.broadcast %43 : vector<1x32xf32> to vector<32x32xf32>
    %65 = arith.addf %63, %64 : vector<32x32xf32>
    %cst_40 = arith.constant 0.000000e+00 : f32
    %66 = vector.broadcast %cst_40 : f32 to vector<32x32xf32>
    %67 = arith.maximumf %65, %66 : vector<32x32xf32>
    %c0_41 = arith.constant 0 : index
    %c0_42 = arith.constant 0 : index
    %68 = vector.load %arg14[%c0_41, %c0_42] : memref<32x32xf32, #tpu.memory_space<vmem>>, vector<32x32xf32>
    %cst_43 = arith.constant dense<0.000000e+00> : vector<32x32xf32>
    %69 = tpu.matmul %67, %68, %cst_43 {dimension_numbers = #tpu.dot_dimension_numbers<[1], [0], [0], [1], [0, 0, 1, 1], [], []>, precision = #tpu.contract_precision<fp32>} : vector<32x32xf32>, vector<32x32xf32>, vector<32x32xf32> -> vector<32x32xf32>
    %c0_44 = arith.constant 0 : index
    %c0_45 = arith.constant 0 : index
    %70 = vector.load %arg15[%c0_44, %c0_45] : memref<1x32xf32, #tpu.memory_space<vmem>>, vector<1x32xf32>
    %71 = vector.broadcast %70 : vector<1x32xf32> to vector<32x32xf32>
    %72 = arith.addf %69, %71 : vector<32x32xf32>
    %c0_46 = arith.constant 0 : index
    %c0_47 = arith.constant 0 : index
    %73 = vector.load %arg16[%c0_46, %c0_47] : memref<32x32xf32, #tpu.memory_space<vmem>>, vector<32x32xf32>
    tpu.vector_store %arg16[%c0_46, %c0_47], %72 {strides = array<i32>} : memref<32x32xf32, #tpu.memory_space<vmem>>, vector<32x32xf32>,
    return
  }
  func.func @transform_0(%arg0: i32) -> (i32, i32) {
    %c0_i32 = arith.constant 0 : i32
    %c0_i32_0 = arith.constant 0 : i32
    return %arg0, %c0_i32 : i32, i32
  }
  func.func @transform_1(%arg0: i32) -> (i32, i32) {
    %c0_i32 = arith.constant 0 : i32
    %c0_i32_0 = arith.constant 0 : i32
    %c0_i32_1 = arith.constant 0 : i32
    return %c0_i32, %c0_i32_0 : i32, i32
  }
  func.func @transform_2(%arg0: i32) -> (i32, i32) {
    %c0_i32 = arith.constant 0 : i32
    %c0_i32_0 = arith.constant 0 : i32
    %c0_i32_1 = arith.constant 0 : i32
    return %c0_i32, %c0_i32_0 : i32, i32
  }
  func.func @transform_3(%arg0: i32) -> (i32, i32) {
    %c0_i32 = arith.constant 0 : i32
    %c0_i32_0 = arith.constant 0 : i32
    %c0_i32_1 = arith.constant 0 : i32
    return %c0_i32, %c0_i32_0 : i32, i32
  }
  func.func @transform_4(%arg0: i32) -> (i32, i32) {
    %c0_i32 = arith.constant 0 : i32
    %c0_i32_0 = arith.constant 0 : i32
    %c0_i32_1 = arith.constant 0 : i32
    return %c0_i32, %c0_i32_0 : i32, i32
  }
  func.func @transform_5(%arg0: i32) -> (i32, i32) {
    %c0_i32 = arith.constant 0 : i32
    %c0_i32_0 = arith.constant 0 : i32
    %c0_i32_1 = arith.constant 0 : i32
    return %c0_i32, %c0_i32_0 : i32, i32
  }
  func.func @transform_6(%arg0: i32) -> (i32, i32) {
    %c0_i32 = arith.constant 0 : i32
    %c0_i32_0 = arith.constant 0 : i32
    %c0_i32_1 = arith.constant 0 : i32
    return %c0_i32, %c0_i32_0 : i32, i32
  }
  func.func @transform_7(%arg0: i32) -> (i32, i32) {
    %c0_i32 = arith.constant 0 : i32
    %c0_i32_0 = arith.constant 0 : i32
    %c0_i32_1 = arith.constant 0 : i32
    return %c0_i32, %c0_i32_0 : i32, i32
  }
  func.func @transform_8(%arg0: i32) -> (i32, i32) {
    %c0_i32 = arith.constant 0 : i32
    %c0_i32_0 = arith.constant 0 : i32
    %c0_i32_1 = arith.constant 0 : i32
    return %c0_i32, %c0_i32_0 : i32, i32
  }
  func.func @transform_9(%arg0: i32) -> (i32, i32) {
    %c0_i32 = arith.constant 0 : i32
    %c0_i32_0 = arith.constant 0 : i32
    %c0_i32_1 = arith.constant 0 : i32
    return %c0_i32, %c0_i32_0 : i32, i32
  }
  func.func @transform_10(%arg0: i32) -> (i32, i32) {
    %c0_i32 = arith.constant 0 : i32
    %c0_i32_0 = arith.constant 0 : i32
    %c0_i32_1 = arith.constant 0 : i32
    return %c0_i32, %c0_i32_0 : i32, i32
  }
  func.func @transform_11(%arg0: i32) -> (i32, i32) {
    %c0_i32 = arith.constant 0 : i32
    %c0_i32_0 = arith.constant 0 : i32
    %c0_i32_1 = arith.constant 0 : i32
    return %c0_i32, %c0_i32_0 : i32, i32
  }
  func.func @transform_12(%arg0: i32) -> (i32, i32) {
    %c0_i32 = arith.constant 0 : i32
    %c0_i32_0 = arith.constant 0 : i32
    %c0_i32_1 = arith.constant 0 : i32
    return %c0_i32, %c0_i32_0 : i32, i32
  }
  func.func @transform_13(%arg0: i32) -> (i32, i32) {
    %c0_i32 = arith.constant 0 : i32
    %c0_i32_0 = arith.constant 0 : i32
    %c0_i32_1 = arith.constant 0 : i32
    return %c0_i32, %c0_i32_0 : i32, i32
  }
  func.func @transform_14(%arg0: i32) -> (i32, i32) {
    %c0_i32 = arith.constant 0 : i32
    %c0_i32_0 = arith.constant 0 : i32
    %c0_i32_1 = arith.constant 0 : i32
    return %c0_i32, %c0_i32_0 : i32, i32
  }
  func.func @transform_15(%arg0: i32) -> (i32, i32) {
    %c0_i32 = arith.constant 0 : i32
    %c0_i32_0 = arith.constant 0 : i32
    return %arg0, %c0_i32 : i32, i32
  }
}

</mosaic_0001>

<bundles_post_ra>
// kernel: tpu_custom_call.1
= control target key start
LH: loop header
LB: loop body
LE: loop exit
PB: predicated region body
PF: predicated region fallthrough
CT: control target
= control target key end

     0   :  { %20 = vsyncpa [#allocation3], 0  ;;  %s7777_s18 = smov 0   ;;  %s9787_s0 = inlined_call_operand.vmem [shape: f32[64,4], index: 0, kind: input, shape index: {}]   ;;  %s9788_s1 = inlined_call_operand.vmem [shape: f32[4,64], index: 1, kind: input, shape index: {}]   ;;  %s9789_s2 = inlined_call_operand.vmem [shape: f32[1,64], index: 2, kind: input, shape index: {}]   ;;  %s9790_s3 = inlined_call_operand.vmem [shape: f32[64,128], index: 3, kind: input, shape index: {}]   ;;  %s9791_s4 = inlined_call_operand.vmem [shape: f32[4,128], index: 4, kind: input, shape index: {}]   ;;  %s9792_s5 = inlined_call_operand.vmem [shape: f32[1,128], index: 5, kind: input, shape index: {}]   ;;  %s9793_s6 = inlined_call_operand.vmem [shape: f32[1,128], index: 6, kind: input, shape index: {}]   ;;  %s9794_s7 = inlined_call_operand.vmem [shape: f32[1,128], index: 7, kind: input, shape index: {}]   ;;  %s9795_s8 = inlined_call_operand.vmem [shape: f32[128,128], index: 8, kind: input, shape index: {}]   ;;  %s9796_s9 = inlined_call_operand.vmem [shape: f32[128,32], index: 9, kind: input, shape index: {}]   ;;  %s9797_s10 = inlined_call_operand.vmem [shape: f32[1,32], index: 10, kind: input, shape index: {}]   ;;  %s9798_s11 = inlined_call_operand.vmem [shape: f32[1,32], index: 11, kind: input, shape index: {}]   ;;  %s9799_s12 = inlined_call_operand.vmem [shape: f32[1,32], index: 12, kind: input, shape index: {}]   ;;  %s9800_s13 = inlined_call_operand.hbm [shape: f32[32,32], index: 13, kind: input, shape index: {}]   ;;  %s9801_s14 = inlined_call_operand.vmem [shape: f32[1,32], index: 14, kind: input, shape index: {}]   ;;  %s9802_s15 = inlined_call_operand.vmem [shape: f32[64,32], index: 15, kind: output, shape index: {}]  }
   0x1 LB: > { %s6002_s19 = sadd.s32 4294967295, %s7686_s18   ;;  %p6004_p0 = scmp.ge.s32.totalorder %s7686_s18, 1  ;;  %s7686_s18 = sphi %s7777_s18, %s26_s18  }
   0x2   : > { %p377_p1 = scmp.lt.s32.totalorder %s7686_s18, 3  ;;  %s7688_s20 = smov [#allocation2]  }
   0x3   : > { %s425_s21 = sshll.u32 %s7688_s20, 4  ;;  %p7789_p3 = scmp.eq.s32.totalorder %s6002_s19, 0  ;;  %s426_s21 = int_to_ptr.vmem [resolvable:$true] %s425_s21 }
   0x4   : > { %p7785_p2 = pnand %p6004_p0, %p377_p1  ;;  %s7661_s24 = scalar_lea.vmem %s426_s21, 512 }
   0x5   : > { %p7662_p7 = scmp.ne.s32.totalorder %s426_s21, %s7661_s24  ;;  %p7669_p10 = scmp.lt.s32.totalorder %s426_s21, %s426_s21 }
   0x6   : > { %p7595_p4 = pneg %p7785_p2  ;;  %p7670_p11 = scmp.lt.s32.totalorder %s7661_s24, %s7661_s24 }
   0x8   : > { %p7596_p5 = pnand %p7789_p3, %p7595_p4  ;;  %p7671_p12 = por %p7670_p11, %p7669_p10 }
   0xa   : > { %p7652_p6 = pneg %p7596_p5 }
   0xc   : > { %p7664_p8 = pnand %p7662_p7, %p7652_p6 }
   0xe   : > { %p7665_p9 = pneg %p7664_p8 }
  0x10   : > { %p7672_p13 = pnand %p7671_p12, %p7665_p9 }
  0x12   : > { %7675 = shalt.err (!%p7672_p13)
}
  0x13   : > { %s7689_s25 = smov 128   ;;  %s7690_s26 = smov 8  }
  0x14   : > { %7598 = dma.hbm_to_vmem [thread:$0]  (!%p7596_p5), %s9800_s13, 512, %s426_s21, [#allocation3], %s7689_s25, %s7689_s25, %s7690_s26  }
  0x15   : > { %453 = sbr.rel (%p7785_p2) target bundleno = 1878 (0x756), region = 80 }
  0x1a   : > { %7681 = dma.done.wait (%p7789_p3), [#allocation3], 512  }
  0x1b   : > { %7683 = vsyncadd (%p7789_p3), [#allocation3], 4294966784  ;;  %s6009_s29 = sshll.u32 %s6002_s19, 2  ;;  %vm538_vm0 = vcmask 1043456   ;;  %vm525_vm1 = vcmask 31744   ;;  %v1536_v51 = vld [vmem:[%s9790_s3 + $0x38] sm:$0xff] }
  0x1c   : > { %p502_p0 = scmp.lt.s32.totalorder %s6009_s29, 7  ;;  %v517_v0 = vld [vmem:[%s9788_s1] sm:$0xf]  ;;  %v7898_v54 = vand.u32 4294901760, %v1536_v51  ;;  %v1535_v56 = vld [vmem:[%s9790_s3 + $0x30] sm:$0xff] }
  0x1d   : > { %v540_v3 = vsel %vm538_vm0, %v517_v0, 0  ;;  %v1537_v35 = vld [vmem:[%s9791_s4] sm:$0xf]  ;;  %v7909_v61 = vand.u32 4294901760, %v1535_v56  ;;  %v1534_v0 = vld [vmem:[%s9790_s3 + $0x28] sm:$0xff] }
  0x1e   : > { %s10197_s29 = smov (!%p502_p0, %s6009_s29), 7  ;;  %v573_v8 = vand.u32 4294901760, %v540_v3  ;;  %v1539_v36 = vsel %vm538_vm0, %v1537_v35, 0  ;;  %v6013_v44 = vld [vmem:[%s9789_s2] ss:$0 sm:$0xff]  ;;  %v7907_v60 = vsub.f32 %v1536_v51, %v7898_v54 }
  0x1f   : > { %s6010_s30 = sshll.u32 %s10197_s29, 3  ;;  %v1572_v37 = vand.u32 4294901760, %v1539_v36 }
  0x20   : > { %s505_s20 = scalar_lea.vmem %s9787_s0, %s6010_s30  ;;  %6579 = vmatprep.subr.mxu0 %v573_v8  ;;  %v680_v15 = vsub.f32 %v540_v3, %v573_v8  ;;  %s511_s26 = scalar_lea.vmem %s9802_s15, %s6010_s30 }
  0x21   : > { %v513_v1 = vld [vmem:[%s505_s20] sm:$0xff]  ;;  %v514_v2 = vld [vmem:[%s505_s20 + $0x8] sm:$0xff]  ;;  %v515_v6 = vld [vmem:[%s505_s20 + $0x10] sm:$0xff]  ;;  %6580 = vmatpush3.msra.mxu0 %v573_v8  ;;  %v1679_v38 = vsub.f32 %v1539_v36, %v1572_v37 }
  0x22   : > { %v527_v4 = vsel %vm525_vm1, %v513_v1, 0  ;;  %v530_v5 = vsel %vm525_vm1, %v514_v2, 0  ;;  %v516_v7 = vld [vmem:[%s505_s20 + $0x18] sm:$0xff]  ;;  %v533_v11 = vsel %vm525_vm1, %v515_v6, 0  ;;  %v681_v20 = vand.u32 4294901760, %v680_v15  ;;  %6595 = vmatprep.subr.mxu0 %v680_v15 }
  0x23   : > { %v7818_v9 = vand.u32 4294901760, %v527_v4  ;;  %v7820_v10 = vand.u32 4294901760, %v530_v5  ;;  %v7822_v12 = vand.u32 4294901760, %v533_v11  ;;  %v536_v13 = vsel %vm525_vm1, %v516_v7, 0 }
  0x24   : > { %v7831_v17 = vand.u32 4294901760, %v536_v13  ;;  %v682_v25 = vsub.f32 %v680_v15, %v681_v20  ;;  %v1680_v39 = vand.u32 4294901760, %v1679_v38  ;;  %v7925_v7 = vand.u32 4294901760, %v1534_v0 }
  0x25   : > { %v7825_v14 = vsub.f32 %v527_v4, %v7818_v9  ;;  %v7828_v16 = vsub.f32 %v530_v5, %v7820_v10  ;;  %6589 = vmatprep.mubr.f32.mxu1 %v7818_v9  ;;  %v7834_v18 = vsub.f32 %v533_v11, %v7822_v12  ;;  %v7917_v4 = vand.u32 4294901760, %v7907_v60 }
  0x26   : > { %v7843_v22 = vsub.f32 %v536_v13, %v7831_v17  ;;  %v683_v30 = vand.u32 4294901760, %v682_v25  ;;  %v1681_v40 = vsub.f32 %v1679_v38, %v1680_v39  ;;  %v7920_v5 = vsub.f32 %v1535_v56, %v7909_v61 }
  0x27   : > { %v7837_v19 = vand.u32 4294901760, %v7825_v14  ;;  %v7840_v21 = vand.u32 4294901760, %v7828_v16  ;;  %v7846_v23 = vand.u32 4294901760, %v7834_v18 }
  0x28   : > { %v7853_v27 = vand.u32 4294901760, %v7843_v22  ;;  %6587 = vmatprep.subr.mxu1 %v683_v30  ;;  %v1682_v41 = vand.u32 4294901760, %v1681_v40 }
  0x29   : > { %v611_v24 = vsub.f32 %v7825_v14, %v7837_v19  ;;  %v621_v26 = vsub.f32 %v7828_v16, %v7840_v21  ;;  %v631_v28 = vsub.f32 %v7834_v18, %v7846_v23  ;;  %6588 = vmatpush3.msra.mxu1 %v683_v30 }
  0x2a   : > { %v641_v32 = vsub.f32 %v7843_v22, %v7853_v27  ;;  %6590 = vmatmul.mubr.f32.vlgmr.msra.gmra.mxu1 %v7820_v10  ;;  %6603 = vmatprep.subr.mxu1 %v573_v8 }
  0x2b   : > { %v612_v29 = vand.u32 4294901760, %v611_v24  ;;  %v622_v31 = vand.u32 4294901760, %v621_v26  ;;  %v632_v33 = vand.u32 4294901760, %v631_v28  ;;  %6604 = vmatpush3.msra.mxu1 %v573_v8  ;;  %6592 = vmatprep.mubr.f32.mxu1 %v7822_v12 }
  0x2c   : > { %v642_v34 = vand.u32 4294901760, %v641_v32  ;;  %6619 = vmatprep.subr.mxu1 %v573_v8 }
  0x2d   : > { %6581 = vmatprep.mubr.f32.mxu0 %v612_v29 }
  0x2e   : > { %6582 = vmatmul.mubr.f32.vlgmr.msra.gmra.mxu0 %v622_v31  ;;  %6593 = vmatmul.mubr.f32.gmra.mxu1 %v7831_v17 }
  0x2f   : > { %6596 = vmatpush3.msra.mxu0 %v680_v15  ;;  %6584 = vmatprep.mubr.f32.mxu0 %v632_v33  ;;  %v2262_v15 = vsub.f32 %v7907_v60, %v7917_v4 }
  0x30   : > { %6611 = vmatprep.subr.mxu0 %v681_v20  ;;  %6605 = vmatprep.mubr.f32.mxu1 %v7837_v19 }
  0x31   : > { %v2263_v25 = vand.u32 4294901760, %v2262_v15 }
  0x32   : > { %6585 = vmatmul.mubr.f32.gmra.mxu0 %v642_v34  ;;  %6606 = vmatmul.mubr.f32.vlgmr.msra.gmra.mxu1 %v7840_v21 }
  0x33   : > { %6597 = vmatprep.mubr.f32.mxu0 %v7825_v14  ;;  %6620 = vmatpush3.msra.mxu1 %v573_v8  ;;  %v1533_v8 = vld [vmem:[%s9790_s3 + $0x20] sm:$0xff] }
  0x34   : > { %6608 = vmatprep.mubr.f32.mxu1 %v7846_v23  ;;  %6635 = vmatprep.subr.mxu1 %v1682_v41 }
  0x36   : > { %6598 = vmatmul.mubr.f32.vlgmr.msra.gmra.mxu0 %v7828_v16  ;;  %6609 = vmatmul.mubr.f32.gmra.mxu1 %v7853_v27 }
  0x37   : > { %6612 = vmatpush3.msra.mxu0 %v681_v20  ;;  %6600 = vmatprep.mubr.f32.mxu0 %v7834_v18  ;;  %v7938_v20 = vsub.f32 %v1534_v0, %v7925_v7 }
  0x38   : > { %6621 = vmatprep.mubr.f32.mxu1 %v7818_v9  ;;  %6627 = vmatprep.subr.mxu0 %v1572_v37 }
  0x39   : > { %v7951_v28 = vand.u32 4294901760, %v7938_v20 }
  0x3a   : > { %6601 = vmatmul.mubr.f32.gmra.mxu0 %v7843_v22  ;;  %6622 = vmatmul.mubr.f32.vlgmr.msra.gmra.mxu1 %v7820_v10 }
  0x3b   : > { %6613 = vmatprep.mubr.f32.mxu0 %v7818_v9  ;;  %6624 = vmatprep.mubr.f32.mxu1 %v7822_v12 }
  0x3c   : > { %6636 = vmatpush3.msra.mxu1 %v1682_v41 }
  0x3d   : > { %6651 = vmatprep.subr.mxu1 %v1572_v37 }
  0x3e   : > { %6614 = vmatmul.mubr.f32.vlgmr.msra.gmra.mxu0 %v7820_v10  ;;  %6625 = vmatmul.mubr.f32.gmra.mxu1 %v7831_v17 }
  0x3f   : > { %6616 = vmatprep.mubr.f32.mxu0 %v7822_v12  ;;  %6637 = vmatprep.mubr.f32.mxu1 %v7818_v9 }
  0x40   : > { %6628 = vmatpush3.msra.mxu0 %v1572_v37 }
  0x41   : > { %6643 = vmatprep.subr.mxu0 %v1679_v38 }
  0x42   : > { %6617 = vmatmul.mubr.f32.gmra.mxu0 %v7831_v17  ;;  %6638 = vmatmul.mubr.f32.vlgmr.msra.gmra.mxu1 %v7820_v10 }
  0x43   : > { %6629 = vmatprep.mubr.f32.mxu0 %v612_v29  ;;  %6640 = vmatprep.mubr.f32.mxu1 %v7822_v12 }
  0x44   : > { %6652 = vmatpush3.msra.mxu1 %v1572_v37 }
  0x45   : > { %6667 = vmatprep.subr.mxu1 %v1572_v37 }
  0x46   : > { %6630 = vmatmul.mubr.f32.vlgmr.msra.gmra.mxu0 %v622_v31  ;;  %6641 = vmatmul.mubr.f32.gmra.mxu1 %v7831_v17 }
  0x47   : > { %6632 = vmatprep.mubr.f32.mxu0 %v632_v33  ;;  %6644 = vmatpush3.msra.mxu0 %v1679_v38 }
  0x48   : > { %6659 = vmatprep.subr.mxu0 %v1680_v39  ;;  %6653 = vmatprep.mubr.f32.mxu1 %v7837_v19 }
  0x4a   : > { %6633 = vmatmul.mubr.f32.gmra.mxu0 %v642_v34  ;;  %6654 = vmatmul.mubr.f32.vlgmr.msra.gmra.mxu1 %v7840_v21  ;;  %v7940_v21 = vand.u32 4294901760, %v1533_v8 }
  0x4b   : > { %6645 = vmatprep.mubr.f32.mxu0 %v7825_v14  ;;  %6656 = vmatprep.mubr.f32.mxu1 %v7846_v23 }
  0x4c   : > { %6668 = vmatpush3.msra.mxu1 %v1572_v37  ;;  %v7954_v29 = vsub.f32 %v1533_v8, %v7940_v21  ;;  %v2276_v37 = vsub.f32 %v7938_v20, %v7951_v28 }
  0x4d   : > { %6697 = vmatprep.subr.mxu1 %v2263_v25 }
  0x4e   : > { %6646 = vmatmul.mubr.f32.vlgmr.msra.gmra.mxu0 %v7828_v16  ;;  %6657 = vmatmul.mubr.f32.gmra.mxu1 %v7853_v27  ;;  %v7934_v16 = vand.u32 4294901760, %v7920_v5  ;;  %v7966_v38 = vand.u32 4294901760, %v7954_v29 }
  0x4f   : > { %6648 = vmatprep.mubr.f32.mxu0 %v7834_v18  ;;  %6660 = vmatpush3.msra.mxu0 %v1680_v39 }
  0x50   : > { %6675 = vmatprep.subr.mxu0 %v7898_v54  ;;  %6669 = vmatprep.mubr.f32.mxu1 %v7818_v9  ;;  %v2269_v26 = vsub.f32 %v7920_v5, %v7934_v16 }
  0x52   : > { %6649 = vmatmul.mubr.f32.gmra.mxu0 %v7843_v22  ;;  %v1532_v22 = vld [vmem:[%s9790_s3 + $0x18] sm:$0xff]  ;;  %6670 = vmatmul.mubr.f32.vlgmr.msra.gmra.mxu1 %v7820_v10  ;;  %v2270_v35 = vand.u32 4294901760, %v2269_v26 }
  0x53   : > { %6661 = vmatprep.mubr.f32.mxu0 %v7818_v9  ;;  %v7956_v30 = vand.u32 4294901760, %v1532_v22  ;;  %6672 = vmatprep.mubr.f32.mxu1 %v7822_v12 }
  0x54   : > { %6698 = vmatpush3.msra.mxu1 %v2263_v25 }
  0x55   : > { %v7969_v39 = vsub.f32 %v1532_v22, %v7956_v30  ;;  %6699 = vmatprep.subr.mxu1 %v2270_v35 }
  0x56   : > { %6662 = vmatmul.mubr.f32.vlgmr.msra.gmra.mxu0 %v7820_v10  ;;  %v1531_v10 = vld [vmem:[%s9790_s3 + $0x10] sm:$0xff]  ;;  %6673 = vmatmul.mubr.f32.gmra.mxu1 %v7831_v17 }
  0x57   : > { %6664 = vmatprep.mubr.f32.mxu0 %v7822_v12  ;;  %6676 = vmatpush3.msra.mxu0 %v7898_v54  ;;  %v7974_v12 = vld [vmem:[%s9790_s3 + $0x8] sm:$0xff] }
  0x58   : > { %6677 = vmatprep.subr.mxu0 %v7909_v61  ;;  %6700 = vmatpush3.msra.mxu1 %v2270_v35 }
  0x59   : > { %6678 = vmatpush3.msra.mxu0 %v7909_v61 }
  0x5a   : > { %6665 = vmatmul.mubr.f32.gmra.mxu0 %v7831_v17  ;;  %6679 = vmatprep.subr.mxu0 %v7925_v7 }
  0x5b   : > { %6680 = vmatpush3.msra.mxu0 %v7925_v7 }
  0x5c   : > { %6681 = vmatprep.subr.mxu0 %v7940_v21 }
  0x5d   : > { %6682 = vmatpush3.msra.mxu0 %v7940_v21 }
  0x5e   : > { %6683 = vmatprep.subr.mxu0 %v7956_v30 }
  0x5f   : > { %6684 = vmatpush3.msra.mxu0 %v7956_v30 }
  0xea   : > { %v6591_v43 = vpop.f32.mrf.mxu1 }
  0xec   : > { %v720_v46 = vpop.f32.mrf.mxu1 }
  0xee   : > { %v6583_v42 = vpop.f32.mrf.mxu0  ;;  %v6594_v49 = vpop.f32.mrf.mxu1 }
  0xef   : > { %v625_v48 = vadd.f32 %v6583_v42, %v6013_v44 }
  0xf0   : > { %v614_v45 = vpop.f32.mrf.mxu0  ;;  %v732_v53 = vpop.f32.mrf.mxu1 }
  0xf1   : > { %v615_v52 = vadd.f32 %v6013_v44, %v614_v45  ;;  %v727_v57 = vadd.f32 %v6591_v43, %v625_v48  ;;  %v2277_v45 = vand.u32 4294901760, %v2276_v37  ;;  %v7986_v48 = vand.u32 4294901760, %v1531_v10 }
  0xf2   : > { %v6586_v47 = vpop.f32.mrf.mxu0  ;;  %v6607_v59 = vpop.f32.mrf.mxu1 }
  0xf3   : > { %v645_v58 = vadd.f32 %v6586_v47, %v6013_v44  ;;  %v721_v1 = vadd.f32 %v720_v46, %v615_v52  ;;  %v2283_v46 = vsub.f32 %v7954_v29, %v7966_v38  ;;  %v7984_v47 = vand.u32 4294901760, %v7969_v39  ;;  %6701 = vmatprep.subr.mxu1 %v2277_v45  ;;  %6685 = vmatprep.subr.mxu0 %v7986_v48 }
  0xf4   : > { %v634_v50 = vpop.f32.mrf.mxu0  ;;  %v907_v3 = vpop.f32.mrf.mxu1  ;;  %6702 = vmatpush3.msra.mxu1 %v2277_v45  ;;  %6686 = vmatpush3.msra.mxu0 %v7986_v48 }
  0xf5   : > { %v635_v62 = vadd.f32 %v6013_v44, %v634_v50  ;;  %v739_v11 = vadd.f32 %v6594_v49, %v645_v58  ;;  %v7991_v49 = vld [vmem:[%s9790_s3] sm:$0xff]  ;;  %v2284_v58 = vand.u32 4294901760, %v2283_v46  ;;  %v9811_v46 = vmov 2475754826  }
  0xf6   : > { %v6599_v55 = vpop.f32.mrf.mxu0  ;;  %v6610_v14 = vpop.f32.mrf.mxu1  ;;  %v8008_v0 = vand.u32 4294901760, %v7991_v49 }
  0xf7   : > { %v820_v2 = vadd.f32 %v6599_v55, %v727_v57  ;;  %v733_v18 = vadd.f32 %v732_v53, %v635_v62  ;;  %v7997_v53 = vand.u32 4294901760, %v7974_v12  ;;  %6703 = vmatprep.subr.mxu1 %v2284_v58 }
  0xf8   : > { %v812_v63 = vpop.f32.mrf.mxu0  ;;  %v923_v24 = vpop.f32.mrf.mxu1  ;;  %6704 = vmatpush3.msra.mxu1 %v2284_v58  ;;  %v9808_v58 = vmov 920167782  }
  0xf9   : > { %v813_v13 = vadd.f32 %v812_v63, %v721_v1  ;;  %v916_v9 = vadd.f32 %v6607_v59, %v820_v2  ;;  %v2290_v59 = vsub.f32 %v7969_v39, %v7984_v47  ;;  %6687 = vmatprep.subr.mxu0 %v7997_v53 }
  0xfa   : > { %v6602_v6 = vpop.f32.mrf.mxu0  ;;  %v6623_v34 = vpop.f32.mrf.mxu1  ;;  %6688 = vmatpush3.msra.mxu0 %v7997_v53 }
  0xfb   : > { %v834_v23 = vadd.f32 %v6602_v6, %v739_v11  ;;  %v908_v31 = vadd.f32 %v907_v3, %v813_v13  ;;  %v2291_v13 = vand.u32 4294901760, %v2290_v59  ;;  %6689 = vmatprep.subr.mxu0 %v8008_v0 }
  0xfc   : > { %v826_v19 = vpop.f32.mrf.mxu0  ;;  %v1095_v43 = vpop.f32.mrf.mxu1  ;;  %6690 = vmatpush3.msra.mxu0 %v8008_v0 }
  0xfd   : > { %v827_v32 = vadd.f32 %v826_v19, %v733_v18  ;;  %v932_v40 = vadd.f32 %v6610_v14, %v834_v23  ;;  %6705 = vmatprep.subr.mxu1 %v2291_v13  ;;  %6719 = vmatprep.subr.mxu0 %v7907_v60 }
  0xfe   : > { %v6615_v27 = vpop.f32.mrf.mxu0  ;;  %v6626_v52 = vpop.f32.mrf.mxu1  ;;  %6706 = vmatpush3.msra.mxu1 %v2291_v13 }
  0xff   : > { %v1012_v33 = vadd.f32 %v6615_v27, %v916_v9  ;;  %v924_v50 = vadd.f32 %v923_v24, %v827_v32  ;;  %v8022_v9 = vsub.f32 %v1531_v10, %v7986_v48 }
 0x100   : > { %v1005_v36 = vpop.f32.mrf.mxu0  ;;  %v1107_v11 = vpop.f32.mrf.mxu1 }
 0x101   : > { %v7977_v41 = vadd.f32 %v6623_v34, %v1012_v33  ;;  %v1006_v42 = vadd.f32 %v1005_v36, %v908_v31  ;;  %v8032_v10 = vand.u32 4294901760, %v8022_v9 }
 0x102   : > { %v6618_v44 = vpop.f32.mrf.mxu0 }
 0x103   : > { %v9805_v51 = vand.u32 2147483647, %v7977_v41  ;;  %v1223_v17 = vand.u32 2139095040, %v7977_v41  ;;  %v8000_v55 = vadd.f32 %v1095_v43, %v1006_v42  ;;  %v1024_v56 = vadd.f32 %v6618_v44, %v932_v40 }
 0x104   : > { %v1017_v57 = vpop.f32.mrf.mxu0  ;;  %v7691_v44 = vmov 683565275   ;;  %vm1222_vm15 = vcmp.lt.s32.totalorder %v7977_v41, 0 }
 0x105   : > { %v1224_v62 = vshrl.u32 %v1223_v17, 23  ;;  %v1227_v63 = vand.u32 8388607, %v9805_v51  ;;  %v9804_v1 = vand.u32 2147483647, %v8000_v55  ;;  %v1120_v2 = vand.u32 2139095040, %v8000_v55 }
 0x106   : > { %v1018_v3 = vadd.f32 %v1017_v57, %v924_v50  ;;  %v8013_v6 = vadd.f32 %v6626_v52, %v1024_v56  ;;  %v9815_v17 = vmov 2131351028   ;;  %v9813_v56 = vmov 2102212464  }
 0x107   : > { %v6018_v8 = vadd.s32 4294967169, %v1224_v62  ;;  %v1121_v14 = vshrl.u32 %v1120_v2, 23  ;;  %v1124_v15 = vand.u32 8388607, %v9804_v1  ;;  %v1228_v18 = vor.u32 8388608, %v1227_v63 }
 0x108   : > { %v1429_v22 = vand.u32 2139095040, %v8013_v6  ;;  %v9803_v25 = vand.u32 2147483647, %v8013_v6  ;;  %v8026_v26 = vadd.f32 %v1107_v11, %v1018_v3  ;;  %v9806_v11 = vmov 1326507024  }
 0x109   : > { %v1230_v19 = vadd.s32 1, %v6018_v8  ;;  %v6014_v23 = vadd.s32 4294967169, %v1121_v14  ;;  %v1125_v24 = vor.u32 8388608, %v1124_v15  ;;  %v8029_v35 = vshll.u32 %v1228_v18, 8 }
 0x10a   : > { %v1430_v27 = vshrl.u32 %v1429_v22, 23  ;;  %v8040_v40 = vand.u32 8388607, %v9803_v25  ;;  %v9810_v42 = vand.u32 2147483647, %v8026_v26 }
 0x10b   : > { %vm1231_vm2 = vcmp.gt.s32.totalorder %v1230_v19, 0  ;;  %v1127_v32 = vadd.s32 1, %v6014_v23  ;;  %v8034_v36 = vshll.u32 %v1125_v24, 8 }
 0x10c   : > { %v1232_v31 = vsel %vm1231_vm2, %v1230_v19, 0  ;;  %v8036_v37 = vadd.s32 4294967169, %v1430_v27 }
 0x10d   : > { %v1233_v33 = vshrl.u32 %v1232_v31, 5  ;;  %v1234_v34 = vand.u32 31, %v1232_v31  ;;  %vm1128_vm3 = vcmp.gt.s32.totalorder %v1127_v32, 0 }
 0x10e   : > { %v1129_v19 = vsel %vm1128_vm3, %v1127_v32, 0 }
 0x10f   : > { %v1235_v43 = vsub.s32 32, %v1234_v34  ;;  %v1237_v45 = vshll.u32 %v7691_v44, %v1234_v34  ;;  %v1240_v50 = vshll.u32 %v9811_v46, %v1234_v34  ;;  %v1243_v52 = vshll.u32 %v9815_v17, %v1234_v34 }
 0x110   : > { %v1246_v57 = vshll.u32 %v9813_v56, %v1234_v34  ;;  %v1249_v59 = vshll.u32 %v9808_v58, %v1234_v34  ;;  %vm1252_vm4 = vcmp.lt.s32.totalorder %v1233_v33, 1  ;;  %vm1253_vm5 = vcmp.lt.s32.totalorder %v1233_v33, 2 }
 0x111   : > { %v1238_v62 = vshrl.u32 %v9811_v46, %v1235_v43  ;;  %v1241_v63 = vshrl.u32 %v9815_v17, %v1235_v43  ;;  %v1244_v2 = vshrl.u32 %v9813_v56, %v1235_v43  ;;  %v1236_v3 = vshrl.u32 %v7691_v44, %v1235_v43 }
 0x112   : > { %v1247_v8 = vshrl.u32 %v9808_v58, %v1235_v43  ;;  %v1250_v13 = vshrl.u32 %v9806_v11, %v1235_v43  ;;  %vm1254_vm6 = vcmp.lt.s32.totalorder %v1233_v33, 3  ;;  %vm1255_vm7 = vcmp.lt.s32.totalorder %v1233_v33, 4 }
 0x113   : > { %v1239_v14 = vor.u32 %v1238_v62, %v1237_v45  ;;  %v1242_v15 = vor.u32 %v1241_v63, %v1240_v50  ;;  %v1245_v18 = vor.u32 %v1244_v2, %v1243_v52  ;;  %v1131_v24 = vand.u32 31, %v1129_v19 }
 0x114   : > { %v1248_v22 = vor.u32 %v1247_v8, %v1246_v57  ;;  %v1251_v23 = vor.u32 %v1250_v13, %v1249_v59  ;;  %v1326_v57 = vand.u32 2139095040, %v8026_v26  ;;  %v1130_v63 = vshrl.u32 %v1129_v19, 5 }
 0x115   : > { %v1256_v27 = vsel %vm1252_vm4, %v1236_v3, %v1239_v14  ;;  %v1257_v31 = vsel %vm1255_vm7, %v1245_v18, 2102212464  ;;  %v1260_v34 = vsel %vm1252_vm4, %v1239_v14, %v1242_v15  ;;  %v1264_v25 = vsel %vm1252_vm4, %v1242_v15, %v1245_v18 }
 0x116   : > { %v1258_v1 = vsel %vm1254_vm6, %v1242_v15, %v1257_v31  ;;  %v1261_v43 = vsel %vm1255_vm7, %v1248_v22, 920167782  ;;  %v1265_v51 = vsel %vm1255_vm7, %v1251_v23, 1326507024  ;;  %v1132_v45 = vsub.s32 32, %v1131_v24 }
 0x117   : > { %v1259_v50 = vsel %vm1253_vm5, %v1256_v27, %v1258_v1  ;;  %v1262_v32 = vsel %vm1254_vm6, %v1245_v18, %v1261_v43  ;;  %v1266_v52 = vsel %vm1254_vm6, %v1248_v22, %v1265_v51  ;;  %v1134_v2 = vshll.u32 %v7691_v44, %v1131_v24 }
 0x118   : > { %v1263_v59 = vsel %vm1253_vm5, %v1260_v34, %v1262_v32  ;;  %v1267_v62 = vsel %vm1253_vm5, %v1264_v25, %v1266_v52  ;;  %v1275_v14 = vmul.u32 %v8029_v35, %v1259_v50  ;;  %v1135_v51 = vshrl.u32 %v9811_v46, %v1132_v45 }
 0x119   : > { %v8067_v3 = vmul.u32.u64.low %v8029_v35, %v1267_v62  ;;  %v8068_v8 = vmul.u32.u64.high %v8029_v35, %v1267_v62, %v8067_v3  ;;  %v8071_v13 = vmul.u32.u64.low %v8029_v35, %v1263_v59  ;;  %v8072_v1 = vmul.u32.u64.high %v8029_v35, %v1263_v59, %v8071_v13 }
 0x11a   : > { %v1137_v15 = vshll.u32 %v9811_v46, %v1131_v24  ;;  %v1138_v33 = vshrl.u32 %v9815_v17, %v1132_v45  ;;  %v1140_v25 = vshll.u32 %v9815_v17, %v1131_v24  ;;  %v1141_v18 = vshrl.u32 %v9813_v56, %v1132_v45 }
 0x11b   : > { %v1143_v19 = vshll.u32 %v9813_v56, %v1131_v24  ;;  %v1144_v22 = vshrl.u32 %v9808_v58, %v1132_v45  ;;  %v1136_v23 = vor.u32 %v1135_v51, %v1134_v2  ;;  %v1146_v31 = vshll.u32 %v9808_v58, %v1131_v24 }
 0x11c   : > { %v1139_v27 = vor.u32 %v1138_v33, %v1137_v15  ;;  %v1147_v35 = vshrl.u32 %v9806_v11, %v1132_v45  ;;  %vm1277_vm8 = vc.u32 %v8068_v8, %v8071_v13  ;;  %v1278_v34 = vadd.s32 1, %v8072_v1 }
 0x11d   : > { %v1133_v43 = vshrl.u32 %v7691_v44, %v1132_v45  ;;  %v1142_v50 = vor.u32 %v1141_v18, %v1140_v25  ;;  %v1145_v32 = vor.u32 %v1144_v22, %v1143_v19  ;;  %vm1149_vm9 = vcmp.lt.s32.totalorder %v1130_v63, 1 }
 0x11e   : > { %v1148_v52 = vor.u32 %v1147_v35, %v1146_v31  ;;  %vm1150_vm10 = vcmp.lt.s32.totalorder %v1130_v63, 2  ;;  %v1279_v59 = vsel %vm1277_vm8, %v1278_v34, %v8072_v1  ;;  %vm1151_vm11 = vcmp.lt.s32.totalorder %v1130_v63, 3 }
 0x11f   : > { %vm1152_vm12 = vcmp.lt.s32.totalorder %v1130_v63, 4  ;;  %v1157_v62 = vsel %vm1149_vm9, %v1136_v23, %v1139_v27  ;;  %v1280_v2 = vadd.s32 %v1279_v59, %v1275_v14  ;;  %v1161_v51 = vsel %vm1149_vm9, %v1139_v27, %v1142_v50 }
 0x120   : > { %v1154_v24 = vsel %vm1152_vm12, %v1142_v50, 2102212464  ;;  %v1158_v3 = vsel %vm1152_vm12, %v1145_v32, 920167782  ;;  %v1153_v15 = vsel %vm1149_vm9, %v1133_v43, %v1136_v23  ;;  %v1162_v11 = vsel %vm1152_vm12, %v1148_v52, 1326507024 }
 0x121   : > { %v1159_v33 = vsel %vm1151_vm11, %v1142_v50, %v1158_v3  ;;  %v1436_v58 = vadd.s32 1, %v8036_v37  ;;  %v1281_v45 = vadd.s32 536870912, %v1280_v2  ;;  %v1155_v25 = vsel %vm1151_vm11, %v1139_v27, %v1154_v24 }
 0x122   : > { %v1160_v18 = vsel %vm1150_vm10, %v1157_v62, %v1159_v33  ;;  %v1163_v19 = vsel %vm1151_vm11, %v1145_v32, %v1162_v11  ;;  %v2297_v14 = vsub.f32 %v8022_v9, %v8032_v10  ;;  %v1156_v37 = vsel %vm1150_vm10, %v1153_v15, %v1155_v25 }
 0x123   : > { %v1164_v22 = vsel %vm1150_vm10, %v1161_v51, %v1163_v19  ;;  %v8092_v1 = vmul.u32.u64.low %v8034_v36, %v1160_v18  ;;  %v8093_v31 = vmul.u32.u64.high %v8034_v36, %v1160_v18, %v8092_v1  ;;  %v1282_v23 = vshrl.u32 %v1281_v45, 30 }
 0x124   : > { %v8099_v35 = vmul.u32.u64.low %v8034_v36, %v1164_v22  ;;  %v8100_v34 = vmul.u32.u64.high %v8034_v36, %v1164_v22, %v8099_v35  ;;  %vm1437_vm13 = vcmp.gt.s32.totalorder %v1436_v58, 0  ;;  %v1434_v43 = vor.u32 8388608, %v8040_v40 }
 0x125   : > { %v1438_v27 = vsel %vm1437_vm13, %v1436_v58, 0  ;;  %v1283_v11 = vshll.u32 %v1282_v23, 30  ;;  %v8106_v32 = vand.u32 8388607, %v9810_v42  ;;  %v1175_v52 = vadd.s32 1, %v8093_v31 }
 0x126   : > { %v1440_v50 = vand.u32 31, %v1438_v27  ;;  %v2298_v59 = vand.u32 4294901760, %v2297_v14  ;;  %v8111_v62 = vsub.f32 %v7974_v12, %v7997_v53  ;;  %v1172_v63 = vmul.u32 %v8034_v36, %v1156_v37 }
 0x127   : > { %v8113_v24 = vsub.s32 %v1280_v2, %v1283_v11  ;;  %vm1174_vm14 = vc.u32 %v8100_v34, %v8092_v1  ;;  %v1327_v40 = vshrl.u32 %v1326_v57, 23  ;;  %v1276_v58 = vadd.s32 %v8071_v13, %v8068_v8 }
 0x128   : > { %v1176_v3 = vsel %vm1174_vm14, %v1175_v52, %v8093_v31  ;;  %v1441_v51 = vsub.s32 32, %v1440_v50  ;;  %6707 = vmatprep.subr.mxu1 %v2298_v59  ;;  %v8124_v15 = vshll.u32 %v1434_v43, 8  ;;  %v1306_v33 = vsub.s32 4, %v1282_v23 }
 0x129   : > { %v1286_v12 = vsub.s32 0, %v8113_v24  ;;  %v1177_v2 = vadd.s32 %v1176_v3, %v1172_v63  ;;  %6708 = vmatpush3.msra.mxu1 %v2298_v59  ;;  %v8127_v45 = vshrl.u32 %v1438_v27, 5  ;;  %v6022_v19 = vadd.s32 4294967169, %v1327_v40 }
 0x12a   : > { %v1444_v57 = vshrl.u32 %v9811_v46, %v1441_v51  ;;  %v1447_v25 = vshrl.u32 %v9815_v17, %v1441_v51  ;;  %v1450_v18 = vshrl.u32 %v9813_v56, %v1441_v51  ;;  %v1443_v22 = vshll.u32 %v7691_v44, %v1440_v50 }
 0x12b   : > { %v6019_v8 = vmin.u32 %v1286_v12, %v8113_v24  ;;  %v1178_v13 = vadd.s32 536870912, %v1177_v2  ;;  %v1446_v31 = vshll.u32 %v9811_v46, %v1440_v50  ;;  %v1452_v14 = vshll.u32 %v9813_v56, %v1440_v50 }
 0x12c   : > { %v9997_v35 = vmov 920167782   ;;  %v1449_v43 = vshll.u32 %v9815_v17, %v1440_v50  ;;  %v9998_v52 = vmov 1326507024   ;;  %v1445_v63 = vor.u32 %v1444_v57, %v1443_v22 }
 0x12d   : > { %v1453_v37 = vshrl.u32 %v9997_v35, %v1441_v51  ;;  %v1288_v27 = vclz %v6019_v8  ;;  %v8137_v11 = vshrl.u32 %v1178_v13, 30  ;;  %v1456_v59 = vshrl.u32 %v9998_v52, %v1441_v51 }
 0x12e   : > { %v1448_v3 = vor.u32 %v1447_v25, %v1446_v31  ;;  %v1455_v40 = vshll.u32 %v9997_v35, %v1440_v50  ;;  %v1307_v46 = vsel %vm1222_vm15, %v1306_v33, %v1282_v23  ;;  %v1451_v36 = vor.u32 %v1450_v18, %v1449_v43 }
 0x12f   : > { %v1454_v12 = vor.u32 %v1453_v37, %v1452_v14  ;;  %v6020_v42 = vadd.s32 4294967294, %v1288_v27  ;;  %v1180_v56 = vshll.u32 %v8137_v11, 30  ;;  %v9999_v8 = vand.u32 2147483647, %v7977_v41 }
 0x130   : > { %v1442_v17 = vshrl.u32 %v7691_v44, %v1441_v51  ;;  %v1457_v57 = vor.u32 %v1456_v59, %v1455_v40  ;;  %vm1458_vm1 = vcmp.lt.s32.totalorder %v8127_v45, 1  ;;  %vm1459_vm2 = vcmp.lt.s32.totalorder %v8127_v45, 2 }
 0x131   : > { %vm8147_vm0 = vcmp.le.f32.partialorder %v9999_v8, 0.7853982  ;;  %vm6021_vm3 = vcmp.lt.s32.totalorder %v6020_v42, 0  ;;  %v8154_v50 = vsub.s32 %v1177_v2, %v1180_v56  ;;  %vm1460_vm4 = vcmp.lt.s32.totalorder %v8127_v45, 3 }
 0x132   : > { %vm1461_vm5 = vcmp.lt.s32.totalorder %v8127_v45, 4  ;;  %v1291_v23 = vsel %vm6021_vm3, 0, %v6020_v42  ;;  %v1462_v33 = vsel %vm1458_vm1, %v1442_v17, %v1445_v63  ;;  %v1466_v25 = vsel %vm1458_vm1, %v1445_v63, %v1448_v3 }
 0x133   : > { %v1467_v51 = vsel %vm1461_vm5, %v1454_v12, 920167782  ;;  %v1292_v18 = vsub.s32 32, %v1291_v23  ;;  %v1296_v22 = vsub.s32 4294967266, %v1291_v23  ;;  %vm1119_vm6 = vcmp.lt.s32.totalorder %v8000_v55, 0 }
 0x134   : > { %v1183_v31 = vsub.s32 0, %v8154_v50  ;;  %v1463_v56 = vsel %vm1461_vm5, %v1451_v36, 2102212464  ;;  %v1293_v2 = vshll.u32 %v8113_v24, %v1291_v23  ;;  %v1468_v14 = vsel %vm1460_vm4, %v1451_v36, %v1467_v51 }
 0x135   : > { %v1470_v42 = vsel %vm1458_vm1, %v1448_v3, %v1451_v36  ;;  %v1471_v17 = vsel %vm1461_vm5, %v1457_v57, 1326507024  ;;  %v1294_v37 = vshrl.u32 %v1276_v58, %v1292_v18  ;;  %v1297_v27 = vadd.s32 127, %v1296_v22 }
 0x136   : > { %v6015_v43 = vmin.u32 %v1183_v31, %v8154_v50  ;;  %v1469_v59 = vsel %vm1459_vm2, %v1466_v25, %v1468_v14  ;;  %v1464_v63 = vsel %vm1460_vm4, %v1448_v3, %v1463_v56  ;;  %v1472_v24 = vsel %vm1460_vm4, %v1454_v12, %v1471_v17 }
 0x137   : > { %v8177_v40 = vmul.u32.u64.low %v8124_v15, %v1469_v59  ;;  %v8178_v8 = vmul.u32.u64.high %v8124_v15, %v1469_v59, %v8177_v40  ;;  %v1295_v36 = vor.u32 %v1294_v37, %v1293_v2  ;;  %v1298_v57 = vshll.u32 %v1297_v27, 23 }
 0x138   : > { %v1185_v58 = vclz %v6015_v43  ;;  %v1473_v23 = vsel %vm1459_vm2, %v1470_v42, %v1472_v24  ;;  %v1203_v51 = vsub.s32 4, %v8137_v11  ;;  %v1333_v3 = vadd.s32 1, %v6022_v19 }
 0x139   : > { %v8185_v25 = vmul.u32.u64.low %v8124_v15, %v1473_v23  ;;  %v8186_v18 = vmul.u32.u64.high %v8124_v15, %v1473_v23, %v8185_v25  ;;  %v1299_v22 = vor.u32 4788187, %v1298_v57  ;;  %v1309_v12 = vsel %vm8147_vm0, 0, %v1307_v46 }
 0x13a   : > { %v6016_v31 = vadd.s32 4294967294, %v1185_v58  ;;  %v10002_v56 = vor.u32 8388608, %v8106_v32  ;;  %v1173_v14 = vadd.s32 %v8092_v1, %v8100_v34  ;;  %v1465_v42 = vsel %vm1459_vm2, %v1462_v33, %v1464_v63 }
 0x13b   : > { %v1484_v17 = vadd.s32 1, %v8178_v8  ;;  %vm1334_vm7 = vcmp.gt.s32.totalorder %v1333_v3, 0  ;;  %v1300_v37 = vand.u32 2147483647, %v1299_v22  ;;  %v1302_v19 = vcvt.s32.f32 %v1295_v36 }
 0x13c   : > { %v8192_v2 = vshll.u32 %v10002_v56, 8  ;;  %vm6017_vm8 = vcmp.lt.s32.totalorder %v6016_v31, 0  ;;  %v1335_v27 = vsel %vm1334_vm7, %v1333_v3, 0  ;;  %v8199_v43 = vand.u32 3, %v1309_v12 }
 0x13d   : > { %v1188_v46 = vsel %vm6017_vm8, 0, %v6016_v31  ;;  %v8204_v32 = vsel %vm1119_vm6, %v1203_v51, %v8137_v11  ;;  %vm1483_vm9 = vc.u32 %v8186_v18, %v8177_v40  ;;  %v1303_v1 = vmul.f32 %v1302_v19, %v1300_v37 }
 0x13e   : > { %v1189_v34 = vsub.s32 32, %v1188_v46  ;;  %v1193_v45 = vsub.s32 4294967266, %v1188_v46  ;;  %v1481_v33 = vmul.u32 %v8124_v15, %v1465_v42  ;;  %v1190_v59 = vshll.u32 %v8154_v50, %v1188_v46 }
 0x13f   : > { %v1485_v63 = vsel %vm1483_vm9, %v1484_v17, %v8178_v8  ;;  %v1337_v24 = vand.u32 31, %v1335_v27  ;;  %v8212_v36 = vand.u32 4294901760, %v8111_v62  ;;  %v1304_v57 = vxor.u32 2147483648, %v1303_v1 }
 0x140   : > { %v1191_v58 = vshrl.u32 %v1173_v14, %v1189_v34  ;;  %v1194_v11 = vadd.s32 127, %v1193_v45  ;;  %v1486_v23 = vadd.s32 %v1485_v63, %v1481_v33  ;;  %v8214_v51 = vshrl.u32 %v1335_v27, 5 }
 0x141   : > { %v1338_v25 = vsub.s32 32, %v1337_v24  ;;  %v1340_v3 = vshll.u32 %v7691_v44, %v1337_v24  ;;  %v8219_v15 = vsub.f32 %v7991_v49, %v8008_v0  ;;  %v1305_v50 = vsel %vm1222_vm15, %v1304_v57, %v1303_v1 }
 0x142   : > { %v1192_v8 = vor.u32 %v1191_v58, %v1190_v59  ;;  %v1195_v22 = vshll.u32 %v1194_v11, 23  ;;  %v1487_v12 = vadd.s32 536870912, %v1486_v23  ;;  %v1308_v31 = vsel %vm8147_vm0, %v7977_v41, %v1305_v50 }
 0x143   : > { %v10003_v56 = vmov 2475754826   ;;  %v10004_v17 = vmov 2131351028   ;;  %7618 = vcosq.f32 %v1308_v31  ;;  %v10005_v49 = vand.u32 2147483647, %v8000_v55 }
 0x144   : > { %v1341_v14 = vshrl.u32 %v10003_v56, %v1338_v25  ;;  %v1343_v42 = vshll.u32 %v10003_v56, %v1337_v24  ;;  %v1344_v37 = vshrl.u32 %v10004_v17, %v1338_v25  ;;  %v1196_v27 = vor.u32 4788187, %v1195_v22 }
 0x145   : > { %vm8231_vm10 = vcmp.le.f32.partialorder %v10005_v49, 0.7853982  ;;  %v8235_v46 = vshrl.u32 %v1487_v12, 30  ;;  %v1346_v1 = vshll.u32 %v10004_v17, %v1337_v24  ;;  %7620 = vsinq.f32 %v1308_v31 }
 0x146   : > { %v1199_v13 = vcvt.s32.f32 %v1192_v8  ;;  %v1342_v34 = vor.u32 %v1341_v14, %v1340_v3  ;;  %v10008_v45 = vmov 2102212464   ;;  %v1197_v59 = vand.u32 2147483647, %v1196_v27 }
 0x147   : > { %v1347_v33 = vshrl.u32 %v10008_v45, %v1338_v25  ;;  %v1489_v63 = vshll.u32 %v8235_v46, 30  ;;  %v1345_v57 = vor.u32 %v1344_v37, %v1343_v42  ;;  %v1349_v58 = vshll.u32 %v10008_v45, %v1337_v24 }
 0x148   : > { %v1350_v50 = vshrl.u32 %v9997_v35, %v1338_v25  ;;  %v1352_v22 = vshll.u32 %v9997_v35, %v1337_v24  ;;  %v1353_v12 = vshrl.u32 %v9998_v52, %v1338_v25  ;;  %v1200_v56 = vmul.f32 %v1199_v13, %v1197_v59 }
 0x149   : > { %v1348_v11 = vor.u32 %v1347_v33, %v1346_v1  ;;  %v8244_v17 = vsub.s32 %v1486_v23, %v1489_v63  ;;  %v2304_v3 = vsub.f32 %v8111_v62, %v8212_v36  ;;  %v8249_v8 = vand.u32 4294901760, %v8219_v15 }
 0x14a   : > { %v1351_v31 = vor.u32 %v1350_v50, %v1349_v58  ;;  %v1354_v14 = vor.u32 %v1353_v12, %v1352_v22  ;;  %vm1355_vm11 = vcmp.lt.s32.totalorder %v8214_v51, 1  ;;  %vm1356_vm12 = vcmp.lt.s32.totalorder %v8214_v51, 2 }
 0x14b   : > { %v1201_v42 = vxor.u32 2147483648, %v1200_v56  ;;  %v1492_v35 = vsub.s32 0, %v8244_v17  ;;  %v1339_v52 = vshrl.u32 %v7691_v44, %v1338_v25  ;;  %vm1358_vm13 = vcmp.lt.s32.totalorder %v8214_v51, 4 }
 0x14c   : > { %vm1357_vm14 = vcmp.lt.s32.totalorder %v8214_v51, 3  ;;  %v1360_v24 = vsel %vm1358_vm13, %v1348_v11, 2102212464  ;;  %v1363_v23 = vsel %vm1355_vm11, %v1342_v34, %v1345_v57  ;;  %v1364_v37 = vsel %vm1358_vm13, %v1351_v31, 920167782 }
 0x14d   : > { %v1202_v49 = vsel %vm1119_vm6, %v1201_v42, %v1200_v56  ;;  %v6027_v27 = vmin.u32 %v1492_v35, %v8244_v17  ;;  %v1365_v1 = vsel %vm1357_vm14, %v1348_v11, %v1364_v37  ;;  %v1367_v13 = vsel %vm1355_vm11, %v1345_v57, %v1348_v11 }
 0x14e   : > { %v1205_v45 = vsel %vm8231_vm10, %v8000_v55, %v1202_v49  ;;  %v1359_v33 = vsel %vm1355_vm11, %v1339_v52, %v1342_v34  ;;  %v1366_v44 = vsel %vm1356_vm12, %v1363_v23, %v1365_v1  ;;  %v1368_v25 = vsel %vm1358_vm13, %v1354_v14, 1326507024 }
 0x14f   : > { %7622 = vcosq.f32 %v1205_v45  ;;  %v1494_v59 = vclz %v6027_v27  ;;  %v1361_v63 = vsel %vm1357_vm14, %v1345_v57, %v1360_v24  ;;  %v1369_v58 = vsel %vm1357_vm14, %v1351_v31, %v1368_v25 }
 0x150   : > { %7624 = vsinq.f32 %v1205_v45  ;;  %v1370_v50 = vsel %vm1356_vm12, %v1367_v13, %v1369_v58  ;;  %v8268_v22 = vmul.u32.u64.low %v8192_v2, %v1366_v44  ;;  %v8269_v11 = vmul.u32.u64.high %v8192_v2, %v1366_v44, %v8268_v22  ;;  %v7619_v14 = vpop.eup %7618 }
 0x151   : > { %v6028_v12 = vadd.s32 4294967294, %v1494_v59  ;;  %v8273_v34 = vmul.u32.u64.low %v8192_v2, %v1370_v50  ;;  %v8274_v56 = vmul.u32.u64.high %v8192_v2, %v1370_v50, %v8273_v34  ;;  %v2305_v42 = vand.u32 4294901760, %v2304_v3 }
 0x152   : > { %v1362_v57 = vsel %vm1356_vm12, %v1359_v33, %v1361_v63  ;;  %v2311_v31 = vsub.f32 %v8219_v15, %v8249_v8  ;;  %v7621_v35 = vpop.eup %7620  ;;  %v1206_v52 = vsel %vm8231_vm10, 0, %v8204_v32  ;;  %v1482_v24 = vadd.s32 %v8177_v40, %v8186_v18 }
 0x153   : > { %vm6029_vm15 = vcmp.lt.s32.totalorder %v6028_v12, 0  ;;  %6709 = vmatprep.subr.mxu1 %v2305_v42  ;;  %v1381_v3 = vadd.s32 1, %v8269_v11  ;;  %v1316_v51 = vxor.u32 2147483648, %v7621_v35  ;;  %v1378_v1 = vmul.u32 %v8192_v2, %v1362_v57 }
 0x154   : > { %v1497_v23 = vsel %vm6029_vm15, 0, %v6028_v12  ;;  %6710 = vmatpush3.msra.mxu1 %v2305_v42  ;;  %v2312_v37 = vand.u32 4294901760, %v2311_v31  ;;  %vm1315_vm0 = vcmp.eq.s32.totalorder %v8199_v43, 0  ;;  %vm1380_vm1 = vc.u32 %v8274_v56, %v8268_v22 }
 0x155   : > { %v1498_v49 = vsub.s32 32, %v1497_v23  ;;  %v1502_v27 = vsub.s32 4294967266, %v1497_v23  ;;  %v1317_v32 = vsel %vm1315_vm0, %v7619_v14, %v1316_v51  ;;  %vm1318_vm2 = vcmp.eq.s32.totalorder %v8199_v43, 2 }
 0x156   : > { %6711 = vmatprep.subr.mxu1 %v2312_v37  ;;  %v1319_v40 = vxor.u32 2147483648, %v7619_v14  ;;  %v1499_v18 = vshll.u32 %v8244_v17, %v1497_v23  ;;  %v1382_v45 = vsel %vm1380_vm1, %v1381_v3, %v8269_v11  ;;  %vm2116_vm3 = vcmask 523264  }
 0x157   : > { %v1500_v19 = vshrl.u32 %v1482_v24, %v1498_v49  ;;  %v1503_v13 = vadd.s32 127, %v1502_v27  ;;  %6712 = vmatpush3.msra.mxu1 %v2312_v37  ;;  %v1383_v33 = vadd.s32 %v1382_v45, %v1378_v1  ;;  %vm1314_vm4 = vcmp.lt.s32.totalorder %v8199_v43, 2 }
 0x158   : > { %6741 = vmatprep.subr.mxu1 %v7898_v54  ;;  %v1320_v2 = vsel %vm1318_vm2, %v1319_v40, %v7621_v35  ;;  %vm1312_vm5 = vweird.f32 %v7977_v41  ;;  %v1210_v63 = vand.u32 3, %v1206_v52  ;;  %vm1209_vm9 = vweird.f32 %v8000_v55 }
 0x159   : > { %v1501_v44 = vor.u32 %v1500_v19, %v1499_v18  ;;  %v1504_v25 = vshll.u32 %v1503_v13, 23  ;;  %v1321_v59 = vsel %vm1314_vm4, %v1317_v32, %v1320_v2  ;;  %v1384_v58 = vadd.s32 536870912, %v1383_v33 }
 0x15a   : > { %v1322_v17 = vsel %vm1312_vm5, nan, %v1321_v59  ;;  %vm1215_vm6 = vcmp.eq.s32.totalorder %v1210_v63, 2  ;;  %vm1212_vm7 = vcmp.eq.s32.totalorder %v1210_v63, 0  ;;  %vm1211_vm8 = vcmp.lt.s32.totalorder %v1210_v63, 2 }
 0x15b   : > { %v1505_v50 = vor.u32 4788187, %v1504_v25  ;;  %v2121_v12 = vsel %vm2116_vm3, %v1322_v17, 0  ;;  %v8297_v34 = vshrl.u32 %v1384_v58, 30  ;;  %v1508_v57 = vcvt.s32.f32 %v1501_v44 }
 0x15c   : > { %v7623_v11 = vpop.eup %7622  ;;  %v8299_v43 = vand.u32 4294901760, %v2121_v12  ;;  %vm1428_vm10 = vcmp.lt.s32.totalorder %v8013_v6, 0  ;;  %v10009_v13 = vand.u32 2147483647, %v8013_v6  ;;  %vm1325_vm13 = vcmp.lt.s32.totalorder %v8026_v26, 0 }
 0x15d   : > { %v7625_v42 = vpop.eup %7624  ;;  %v1506_v14 = vand.u32 2147483647, %v1505_v50  ;;  %v1216_v31 = vxor.u32 2147483648, %v7623_v11  ;;  %v1386_v41 = vshll.u32 %v8297_v34, 30  ;;  %v1379_v50 = vadd.s32 %v8268_v22, %v8274_v56 }
 0x15e   : > { %v1213_v35 = vxor.u32 2147483648, %v7625_v42  ;;  %v8304_v49 = vsub.f32 %v2121_v12, %v8299_v43  ;;  %vm8314_vm11 = vcmp.le.f32.partialorder %v10009_v13, 0.7853982  ;;  %vm1518_vm2 = vweird.f32 %v8013_v6 }
 0x15f   : > { %v1509_v24 = vmul.f32 %v1508_v57, %v1506_v14  ;;  %v1217_v52 = vsel %vm1215_vm6, %v1216_v31, %v7625_v42  ;;  %v1387_v23 = vsub.s32 %v1383_v33, %v1386_v41 }
 0x160   : > { %v1214_v3 = vsel %vm1212_vm7, %v7623_v11, %v1213_v35  ;;  %v2214_v45 = vand.u32 4294901760, %v8304_v49  ;;  %v1512_v35 = vsub.s32 4, %v8235_v46  ;;  %vm1415_vm7 = vweird.f32 %v8026_v26 }
 0x161   : > { %v1510_v37 = vxor.u32 2147483648, %v1509_v24  ;;  %v1218_v51 = vsel %vm1211_vm8, %v1214_v3, %v1217_v52  ;;  %v1389_v27 = vsub.s32 0, %v1387_v23 }
 0x162   : > { %v1219_v1 = vsel %vm1209_vm9, nan, %v1218_v51  ;;  %v2215_v63 = vsub.f32 %v8304_v49, %v2214_v45  ;;  %v1513_v52 = vsel %vm1428_vm10, %v1512_v35, %v8235_v46 }
 0x163   : > { %v1511_v32 = vsel %vm1428_vm10, %v1510_v37, %v1509_v24  ;;  %v2118_v40 = vsel %vm2116_vm3, %v1219_v1, 0  ;;  %v6023_v18 = vmin.u32 %v1389_v27, %v1387_v23  ;;  %v1515_v3 = vsel %vm8314_vm11, 0, %v1513_v52 }
 0x164   : > { %v8310_v19 = vand.u32 4294901760, %v2118_v40  ;;  %v1514_v33 = vsel %vm8314_vm11, %v8013_v6, %v1511_v32  ;;  %v2216_v14 = vand.u32 4294901760, %v2215_v63  ;;  %v1519_v51 = vand.u32 3, %v1515_v3 }
 0x165   : > { %v1391_v2 = vclz %v6023_v18  ;;  %7626 = vcosq.f32 %v1514_v33  ;;  %v10012_v27 = vand.u32 2147483647, %v8026_v26  ;;  %v1409_v18 = vsub.s32 4, %v8297_v34 }
 0x166   : > { %6713 = vmatprep.mubr.f32.mxu1 %v8310_v19  ;;  %v8324_v44 = vsub.f32 %v2118_v40, %v8310_v19  ;;  %7628 = vsinq.f32 %v1514_v33  ;;  %vm1521_vm15 = vcmp.eq.s32.totalorder %v1519_v51, 0  ;;  %vm1524_vm0 = vcmp.eq.s32.totalorder %v1519_v51, 2 }
 0x167   : > { %6714 = vmatmul.mubr.f32.vlgmr.msra.gmra.mxu1 %v8299_v43  ;;  %v6024_v25 = vadd.s32 4294967294, %v1391_v2  ;;  %vm8371_vm14 = vcmp.le.f32.partialorder %v10012_v27, 0.7853982  ;;  %vm1520_vm1 = vcmp.lt.s32.totalorder %v1519_v51, 2 }
 0x168   : > { %6742 = vmatpush3.msra.mxu1 %v7898_v54  ;;  %v2204_v59 = vand.u32 4294901760, %v8324_v44 }
 0x169   : > { %6743 = vmatprep.subr.mxu1 %v7909_v61  ;;  %vm6025_vm12 = vcmp.lt.s32.totalorder %v6024_v25, 0 }
 0x16a   : > { %6744 = vmatpush3.msra.mxu1 %v7909_v61  ;;  %v2205_v58 = vsub.f32 %v8324_v44, %v2204_v59  ;;  %v1394_v17 = vsel %vm6025_vm12, 0, %v6024_v25 }
 0x16b   : > { %6745 = vmatprep.subr.mxu1 %v7925_v7  ;;  %v1395_v12 = vsub.s32 32, %v1394_v17  ;;  %v1399_v11 = vsub.s32 4294967266, %v1394_v17  ;;  %v1396_v57 = vshll.u32 %v1387_v23, %v1394_v17 }
 0x16c   : > { %6746 = vmatpush3.msra.mxu1 %v7925_v7  ;;  %v2206_v42 = vand.u32 4294901760, %v2205_v58 }
 0x16d   : > { %6747 = vmatprep.subr.mxu1 %v7940_v21  ;;  %v1397_v31 = vshrl.u32 %v1379_v50, %v1395_v12  ;;  %v1400_v41 = vadd.s32 127, %v1399_v11 }
 0x16e   : > { %6748 = vmatpush3.msra.mxu1 %v7940_v21  ;;  %6691 = vmatprep.mubr.f32.mxu0 %v2206_v42 }
 0x16f   : > { %6749 = vmatprep.subr.mxu1 %v7956_v30  ;;  %6692 = vmatmul.mubr.f32.vlgmr.msra.gmra.mxu0 %v2216_v14  ;;  %v1398_v22 = vor.u32 %v1397_v31, %v1396_v57  ;;  %v1401_v56 = vshll.u32 %v1400_v41, 23 }
 0x170   : > { %6720 = vmatpush3.msra.mxu0 %v7907_v60  ;;  %6750 = vmatpush3.msra.mxu1 %v7956_v30 }
 0x171   : > { %6721 = vmatprep.subr.mxu0 %v7920_v5  ;;  %6751 = vmatprep.subr.mxu1 %v7986_v48  ;;  %v1402_v24 = vor.u32 4788187, %v1401_v56  ;;  %v1405_v23 = vcvt.s32.f32 %v1398_v22 }
 0x172   : > { %6722 = vmatpush3.msra.mxu0 %v7920_v5  ;;  %6752 = vmatpush3.msra.mxu1 %v7986_v48  ;;  %v7627_v5 = vpop.eup %7626 }
 0x173   : > { %6723 = vmatprep.subr.mxu0 %v7938_v20  ;;  %6753 = vmatprep.subr.mxu1 %v7997_v53  ;;  %v1403_v60 = vand.u32 2147483647, %v1402_v24  ;;  %v7629_v46 = vpop.eup %7628  ;;  %v1525_v40 = vxor.u32 2147483648, %v7627_v5 }
 0x174   : > { %6724 = vmatpush3.msra.mxu0 %v7938_v20  ;;  %6754 = vmatpush3.msra.mxu1 %v7997_v53  ;;  %v1522_v32 = vxor.u32 2147483648, %v7629_v46 }
 0x175   : > { %6725 = vmatprep.subr.mxu0 %v7954_v29  ;;  %6755 = vmatprep.subr.mxu1 %v8008_v0  ;;  %v1406_v37 = vmul.f32 %v1405_v23, %v1403_v60  ;;  %v1526_v55 = vsel %vm1524_vm0, %v1525_v40, %v7629_v46  ;;  %v2815_v46 = vld [vmem:[%s9795_s8 + $0x48] sm:$0xff] }
 0x176   : > { %6726 = vmatpush3.msra.mxu0 %v7954_v29  ;;  %6756 = vmatpush3.msra.mxu1 %v8008_v0  ;;  %v1523_v13 = vsel %vm1521_vm15, %v7627_v5, %v1522_v32  ;;  %v8527_v27 = vand.u32 4294901760, %v2815_v46 }
 0x177   : > { %6727 = vmatprep.subr.mxu0 %v7969_v39  ;;  %6785 = vmatprep.subr.mxu1 %v7898_v54  ;;  %v1407_v20 = vxor.u32 2147483648, %v1406_v37  ;;  %v1527_v33 = vsel %vm1520_vm1, %v1523_v13, %v1526_v55  ;;  %v2813_v55 = vld [vmem:[%s9795_s8 + $0x38] sm:$0xff] }
 0x178   : > { %6728 = vmatpush3.msra.mxu0 %v7969_v39  ;;  %v1528_v2 = vsel %vm1518_vm2, nan, %v1527_v33 }
 0x179   : > { %6729 = vmatprep.subr.mxu0 %v8022_v9  ;;  %v1408_v29 = vsel %vm1325_vm13, %v1407_v20, %v1406_v37  ;;  %v2127_v63 = vsel %vm2116_vm3, %v1528_v2, 0 }
 0x17a   : > { %6730 = vmatpush3.msra.mxu0 %v8022_v9  ;;  %v1411_v39 = vsel %vm8371_vm14, %v8026_v26, %v1408_v29  ;;  %v1410_v9 = vsel %vm1325_vm13, %v1409_v18, %v8297_v34  ;;  %v8394_v50 = vand.u32 4294901760, %v2127_v63  ;;  %v2814_v29 = vld [vmem:[%s9795_s8 + $0x40] sm:$0xff] }
 0x17b   : > { %6731 = vmatprep.subr.mxu0 %v8111_v62  ;;  %7630 = vcosq.f32 %v1411_v39  ;;  %v8546_v18 = vand.u32 4294901760, %v2814_v29 }
 0x17c   : > { %6732 = vmatpush3.msra.mxu0 %v8111_v62  ;;  %7632 = vsinq.f32 %v1411_v39  ;;  %v1412_v62 = vsel %vm8371_vm14, 0, %v1410_v9  ;;  %v2233_v42 = vsub.f32 %v2127_v63, %v8394_v50  ;;  %v8544_v39 = vsub.f32 %v2815_v46, %v8527_v27  ;;  %v2812_v63 = vld [vmem:[%s9795_s8 + $0x30] sm:$0xff]  ;;  %v2807_v46 = vld [vmem:[%s9795_s8 + $0x8] sm:$0xff] }
 0x17d   : > { %6733 = vmatprep.subr.mxu0 %v8219_v15  ;;  %v1416_v25 = vand.u32 3, %v1412_v62  ;;  %v8563_v62 = vsub.f32 %v2814_v29, %v8546_v18  ;;  %v2806_v29 = vld [vmem:[%s9795_s8] sm:$0xff] }
 0x17e   : > { %6734 = vmatpush3.msra.mxu0 %v8219_v15  ;;  %v2234_v41 = vand.u32 4294901760, %v2233_v42  ;;  %v8560_v33 = vand.u32 4294901760, %v8544_v39 }
 0x17f   : > { %6763 = vmatprep.subr.mxu0 %v7917_v4  ;;  %vm1421_vm4 = vcmp.eq.s32.totalorder %v1416_v25, 2  ;;  %vm1418_vm5 = vcmp.eq.s32.totalorder %v1416_v25, 0  ;;  %vm1417_vm6 = vcmp.lt.s32.totalorder %v1416_v25, 2  ;;  %10026 = vst [vmem:[#allocation16_spill] sm:$0xff] %v8563_v62  ;;  %v8569_v25 = vand.u32 4294901760, %v2813_v55 }
 0x180   : > { %v2235_v56 = vsub.f32 %v2233_v42, %v2234_v41  ;;  %10025 = vst [vmem:[#allocation15_spill] sm:$0xff] %v8560_v33 }
 0x182   : > { %v2236_v52 = vand.u32 4294901760, %v2235_v56 }
 0x188   : > { %v7631_v58 = vpop.eup %7630 }
 0x189   : > { %v7633_v17 = vpop.eup %7632  ;;  %v1422_v15 = vxor.u32 2147483648, %v7631_v58 }
 0x18a   : > { %v1419_v12 = vxor.u32 2147483648, %v7633_v17 }
 0x18b   : > { %v1423_v11 = vsel %vm1421_vm4, %v1422_v15, %v7633_v17  ;;  %v8579_v17 = vand.u32 4294901760, %v8563_v62  ;;  %v8581_v15 = vand.u32 4294901760, %v2812_v63 }
 0x18c   : > { %v1420_v34 = vsel %vm1418_vm5, %v7631_v58, %v1419_v12  ;;  %v2989_v58 = vsub.f32 %v8544_v39, %v8560_v33  ;;  %v8588_v12 = vsub.f32 %v2813_v55, %v8569_v25 }
 0x18d   : > { %v1424_v6 = vsel %vm1417_vm6, %v1420_v34, %v1423_v11  ;;  %10028 = vst [vmem:[#allocation18_spill] sm:$0xff] %v8579_v17  ;;  %v2811_v11 = vld [vmem:[%s9795_s8 + $0x28] sm:$0xff]  ;;  %v2996_v34 = vsub.f32 %v8563_v62, %v8579_v17 }
 0x18e   : > { %v1425_v14 = vsel %vm1415_vm7, nan, %v1424_v6  ;;  %10030 = vst [vmem:[#allocation20_spill] sm:$0xff] %v8588_v12  ;;  %v8598_v6 = vsub.f32 %v2812_v63, %v8581_v15  ;;  %v8688_v63 = vand.u32 4294901760, %v2807_v46 }
 0x18f   : > { %v2124_v57 = vsel %vm2116_vm3, %v1425_v14, 0  ;;  %v8604_v14 = vand.u32 4294901760, %v2989_v58  ;;  %v8692_v58 = vand.u32 4294901760, %v2806_v29  ;;  %vm5215_vm3 = vcmask 261120  }
 0x190   : > { %v2222_v31 = vand.u32 4294901760, %v2124_v57  ;;  %10031 = vst [vmem:[#allocation21_spill] sm:$0xff] %v8598_v6  ;;  %10049 = vst [vmem:[#allocation39_spill] sm:$0xff] %v8688_v63 }
 0x191   : > { %10032 = vst [vmem:[#allocation22_spill] sm:$0xff] %v8604_v14  ;;  %10050 = vst [vmem:[#allocation40_spill] sm:$0xff] %v8692_v58 }
 0x192   : > { %6716 = vmatprep.mubr.f32.mxu1 %v2222_v31  ;;  %v2223_v35 = vsub.f32 %v2124_v57, %v2222_v31  ;;  %v8607_v57 = vand.u32 4294901760, %v8588_v12 }
 0x193   : > { %6717 = vmatmul.mubr.f32.gmra.mxu1 %v8394_v50 }
 0x194   : > { %6757 = vmatprep.mubr.f32.mxu1 %v2204_v59  ;;  %v2224_v22 = vand.u32 4294901760, %v2223_v35  ;;  %v2816_v59 = vld [vmem:[%s9795_s8 + $0x50] sm:$0xff]  ;;  %10033 = vst [vmem:[#allocation23_spill] sm:$0xff] %v8607_v57 }
 0x195   : > { %v8508_v23 = vand.u32 4294901760, %v2816_v59 }
 0x196   : > { %v2225_v24 = vsub.f32 %v2223_v35, %v2224_v22 }
 0x197   : > { %6758 = vmatmul.mubr.f32.vlgmr.msra.gmra.mxu1 %v2214_v45  ;;  %v8525_v51 = vsub.f32 %v2816_v59, %v8508_v23 }
 0x198   : > { %v2226_v26 = vand.u32 4294901760, %v2225_v24  ;;  %6760 = vmatprep.mubr.f32.mxu1 %v2224_v22  ;;  %6786 = vmatpush3.msra.mxu1 %v7898_v54  ;;  %v2821_v54 = vld [vmem:[%s9795_s8 + $0x78] sm:$0xff]  ;;  %v3003_v22 = vsub.f32 %v8588_v12, %v8607_v57 }
 0x199   : > { %6787 = vmatprep.subr.mxu1 %v7909_v61  ;;  %v8541_v40 = vand.u32 4294901760, %v8525_v51 }
 0x19a   : > { %6694 = vmatprep.mubr.f32.mxu0 %v2226_v26  ;;  %6788 = vmatpush3.msra.mxu1 %v7909_v61  ;;  %v2820_v61 = vld [vmem:[%s9795_s8 + $0x70] sm:$0xff]  ;;  %v8632_v26 = vand.u32 4294901760, %v3003_v22 }
 0x19b   : > { %6695 = vmatmul.mubr.f32.gmra.mxu0 %v2236_v52  ;;  %6761 = vmatmul.mubr.f32.gmra.mxu1 %v2234_v41  ;;  %10023 = vst [vmem:[#allocation13_spill] sm:$0xff] %v8541_v40  ;;  %v2982_v9 = vsub.f32 %v8525_v51, %v8541_v40 }
 0x19c   : > { %6735 = vmatprep.mubr.f32.mxu0 %v8324_v44  ;;  %6789 = vmatprep.subr.mxu1 %v7925_v7  ;;  %10038 = vst [vmem:[#allocation28_spill] sm:$0xff] %v8632_v26 }
 0x19d   : > { %6790 = vmatpush3.msra.mxu1 %v7925_v7  ;;  %6801 = vmatprep.mubr.f32.mxu1 %v8310_v19  ;;  %v8451_v7 = vand.u32 4294901760, %v2821_v54 }
 0x19e   : > { %6791 = vmatprep.subr.mxu1 %v7940_v21 }
 0x19f   : > { %6792 = vmatpush3.msra.mxu1 %v7940_v21  ;;  %6736 = vmatmul.mubr.f32.vlgmr.msra.gmra.mxu0 %v8304_v49 }
 0x1a0   : > { %6793 = vmatprep.subr.mxu1 %v7956_v30  ;;  %6738 = vmatprep.mubr.f32.mxu0 %v2223_v35  ;;  %v8619_v35 = vand.u32 4294901760, %v2996_v34 }
 0x1a1   : > { %6764 = vmatpush3.msra.mxu0 %v7917_v4  ;;  %6794 = vmatpush3.msra.mxu1 %v7956_v30  ;;  %v2819_v4 = vld [vmem:[%s9795_s8 + $0x68] sm:$0xff]  ;;  %v8461_v30 = vsub.f32 %v2821_v54, %v8451_v7 }
 0x1a2   : > { %6765 = vmatprep.subr.mxu0 %v7934_v16  ;;  %6795 = vmatprep.subr.mxu1 %v7986_v48  ;;  %v8455_v21 = vand.u32 4294901760, %v2819_v4  ;;  %10036 = vst [vmem:[#allocation26_spill] sm:$0xff] %v8619_v35 }
 0x1a3   : > { %6766 = vmatpush3.msra.mxu0 %v7934_v16  ;;  %6796 = vmatpush3.msra.mxu1 %v7986_v48  ;;  %v8453_v16 = vand.u32 4294901760, %v2820_v61 }
 0x1a4   : > { %6739 = vmatmul.mubr.f32.gmra.mxu0 %v2233_v42  ;;  %6767 = vmatprep.subr.mxu0 %v7951_v28  ;;  %v8600_v42 = vand.u32 4294901760, %v2811_v11 }
 0x1a5   : > { %6797 = vmatprep.subr.mxu1 %v7997_v53  ;;  %6768 = vmatpush3.msra.mxu0 %v7951_v28  ;;  %v2818_v28 = vld [vmem:[%s9795_s8 + $0x60] sm:$0xff] }
 0x1a6   : > { %6779 = vmatprep.mubr.f32.mxu0 %v8310_v19  ;;  %6798 = vmatpush3.msra.mxu1 %v7997_v53  ;;  %v8469_v48 = vand.u32 4294901760, %v2818_v28  ;;  %v2817_v53 = vld [vmem:[%s9795_s8 + $0x58] sm:$0xff]  ;;  %v8615_v41 = vsub.f32 %v2811_v11, %v8600_v42 }
 0x1a7   : > { %6769 = vmatprep.subr.mxu0 %v7966_v38  ;;  %6799 = vmatprep.subr.mxu1 %v8008_v0 }
 0x1a8   : > { %6770 = vmatpush3.msra.mxu0 %v7966_v38  ;;  %6800 = vmatpush3.msra.mxu1 %v8008_v0  ;;  %v8464_v38 = vsub.f32 %v2820_v61, %v8453_v16  ;;  %v8477_v0 = vand.u32 4294901760, %v8461_v30  ;;  %10035 = vst [vmem:[#allocation25_spill] sm:$0xff] %v8615_v41  ;;  %v8628_v24 = vand.u32 4294901760, %v8615_v41  ;;  %v2810_v61 = vld [vmem:[%s9795_s8 + $0x20] sm:$0xff] }
 0x1a9   : > { %6771 = vmatprep.subr.mxu0 %v7984_v47  ;;  %6802 = vmatmul.mubr.f32.vlgmr.msra.gmra.mxu1 %v8299_v43 }
 0x1aa   : > { %6772 = vmatpush3.msra.mxu0 %v7984_v47  ;;  %6804 = vmatprep.mubr.f32.mxu1 %v2222_v31  ;;  %v8467_v47 = vsub.f32 %v2819_v4, %v8455_v21  ;;  %10015 = vst [vmem:[#allocation5_spill] sm:$0xff] %v8477_v0  ;;  %v2947_v49 = vsub.f32 %v8461_v30, %v8477_v0  ;;  %10037 = vst [vmem:[#allocation27_spill] sm:$0xff] %v8628_v24  ;;  %v2809_v4 = vld [vmem:[%s9795_s8 + $0x18] sm:$0xff] }
 0x1ab   : > { %6773 = vmatprep.subr.mxu0 %v8032_v10  ;;  %v3017_v52 = vsub.f32 %v8615_v41, %v8628_v24 }
 0x1ac   : > { %6774 = vmatpush3.msra.mxu0 %v8032_v10  ;;  %v8480_v10 = vand.u32 4294901760, %v8464_v38  ;;  %v8511_v5 = vand.u32 4294901760, %v2947_v49  ;;  %v8654_v49 = vand.u32 4294901760, %v2809_v4 }
 0x1ad   : > { %6775 = vmatprep.subr.mxu0 %v8212_v36  ;;  %6805 = vmatmul.mubr.f32.gmra.mxu1 %v8394_v50 }
 0x1ae   : > { %6776 = vmatpush3.msra.mxu0 %v8212_v36  ;;  %10016 = vst [vmem:[#allocation6_spill] sm:$0xff] %v8480_v10  ;;  %v8483_v36 = vand.u32 4294901760, %v8467_v47  ;;  %v2954_v19 = vsub.f32 %v8464_v38, %v8480_v10  ;;  %10019 = vst [vmem:[#allocation9_spill] sm:$0xff] %v8511_v5  ;;  %6845 = vmatprep.subr.mxu1 %v8511_v5  ;;  %v8665_v59 = vsub.f32 %v2809_v4, %v8654_v49 }
 0x1af   : > { %6777 = vmatprep.subr.mxu0 %v8249_v8  ;;  %6846 = vmatpush3.msra.mxu1 %v8511_v5  ;;  %10042 = vst [vmem:[#allocation32_spill] sm:$0xff] %v8654_v49 }
 0x1b0   : > { %6778 = vmatpush3.msra.mxu0 %v8249_v8  ;;  %10017 = vst [vmem:[#allocation7_spill] sm:$0xff] %v8483_v36  ;;  %v8486_v8 = vsub.f32 %v2818_v28, %v8469_v48  ;;  %v2961_v45 = vsub.f32 %v8467_v47, %v8483_v36  ;;  %v8513_v3 = vand.u32 4294901760, %v2954_v19  ;;  %v8650_v28 = vand.u32 4294901760, %v3017_v52  ;;  %v2808_v19 = vld [vmem:[%s9795_s8 + $0x10] sm:$0xff]  ;;  %10044 = vst [vmem:[#allocation34_spill] sm:$0xff] %v8665_v59 }
 0x1b1   : > { %6780 = vmatmul.mubr.f32.vlgmr.msra.gmra.mxu0 %v8299_v43  ;;  %6807 = vmatprep.subr.mxu0 %v8451_v7  ;;  %v8489_v43 = vand.u32 4294901760, %v2817_v53  ;;  %v8683_v55 = vand.u32 4294901760, %v8665_v59  ;;  %v8707_v52 = vsub.f32 %v2806_v29, %v8692_v58 }
 0x1b2   : > { %6782 = vmatprep.mubr.f32.mxu0 %v2222_v31  ;;  %6808 = vmatpush3.msra.mxu0 %v8451_v7  ;;  %v8499_v44 = vand.u32 4294901760, %v8486_v8  ;;  %10020 = vst [vmem:[#allocation10_spill] sm:$0xff] %v8513_v3  ;;  %v8531_v1 = vand.u32 4294901760, %v2961_v45  ;;  %v8612_v31 = vand.u32 4294901760, %v8598_v6  ;;  %10040 = vst [vmem:[#allocation30_spill] sm:$0xff] %v8650_v28 }
 0x1b3   : > { %6809 = vmatprep.subr.mxu0 %v8453_v16  ;;  %v8506_v60 = vsub.f32 %v2817_v53, %v8489_v43  ;;  %6847 = vmatprep.subr.mxu1 %v8513_v3  ;;  %v8652_v53 = vand.u32 4294901760, %v2810_v61  ;;  %10047 = vst [vmem:[#allocation37_spill] sm:$0xff] %v8683_v55  ;;  %v3031_v34 = vsub.f32 %v8665_v59, %v8683_v55  ;;  %10053 = vst [vmem:[#allocation43_spill] sm:$0xff] %v8707_v52 }
 0x1b4   : > { %6810 = vmatpush3.msra.mxu0 %v8453_v16  ;;  %10018 = vst [vmem:[#allocation8_spill] sm:$0xff] %v8499_v44  ;;  %v2968_v37 = vsub.f32 %v8486_v8, %v8499_v44  ;;  %10022 = vst [vmem:[#allocation12_spill] sm:$0xff] %v8531_v1  ;;  %6848 = vmatpush3.msra.mxu1 %v8513_v3  ;;  %v3010_v56 = vsub.f32 %v8598_v6, %v8612_v31 }
 0x1b5   : > { %6783 = vmatmul.mubr.f32.gmra.mxu0 %v8394_v50  ;;  %6811 = vmatprep.subr.mxu0 %v8455_v21  ;;  %v8522_v20 = vand.u32 4294901760, %v8506_v60  ;;  %v8585_v50 = vand.u32 4294901760, %v2982_v9  ;;  %10034 = vst [vmem:[#allocation24_spill] sm:$0xff] %v8612_v31  ;;  %10041 = vst [vmem:[#allocation31_spill] sm:$0xff] %v8652_v53  ;;  %v8662_v45 = vsub.f32 %v2810_v61, %v8652_v53  ;;  %v8712_v4 = vand.u32 4294901760, %v3031_v34 }
 0x1b6   : > { %6812 = vmatpush3.msra.mxu0 %v8455_v21  ;;  %v8550_v13 = vand.u32 4294901760, %v2968_v37  ;;  %6849 = vmatprep.subr.mxu1 %v8531_v1  ;;  %v8640_v54 = vand.u32 4294901760, %v3010_v56  ;;  %v8667_v37 = vand.u32 4294901760, %v2808_v19  ;;  %v8703_v56 = vsub.f32 %v2807_v46, %v8688_v63 }
 0x1b7   : > { %6813 = vmatprep.subr.mxu0 %v8469_v48  ;;  %10021 = vst [vmem:[#allocation11_spill] sm:$0xff] %v8522_v20  ;;  %v2975_v32 = vsub.f32 %v8506_v60, %v8522_v20  ;;  %6850 = vmatpush3.msra.mxu1 %v8531_v1  ;;  %10029 = vst [vmem:[#allocation19_spill] sm:$0xff] %v8585_v50  ;;  %v8721_v46 = vand.u32 4294901760, %v8707_v52 }
 0x1b8   : > { %6814 = vmatpush3.msra.mxu0 %v8469_v48  ;;  %10024 = vst [vmem:[#allocation14_spill] sm:$0xff] %v8550_v13  ;;  %6851 = vmatprep.subr.mxu1 %v8550_v13  ;;  %10039 = vst [vmem:[#allocation29_spill] sm:$0xff] %v8640_v54  ;;  %v8686_v9 = vsub.f32 %v2808_v19, %v8667_v37 }
 0x1b9   : > { %6815 = vmatprep.subr.mxu0 %v8489_v43  ;;  %v8567_v2 = vand.u32 4294901760, %v2975_v32  ;;  %6852 = vmatpush3.msra.mxu1 %v8550_v13  ;;  %10043 = vst [vmem:[#allocation33_spill] sm:$0xff] %v8662_v45  ;;  %10045 = vst [vmem:[#allocation35_spill] sm:$0xff] %v8667_v37  ;;  %v8680_v32 = vand.u32 4294901760, %v8662_v45  ;;  %v3052_v34 = vsub.f32 %v8707_v52, %v8721_v46 }
 0x1ba   : > { %6816 = vmatpush3.msra.mxu0 %v8489_v43  ;;  %10048 = vst [vmem:[#allocation38_spill] sm:$0xff] %v8686_v9  ;;  %v8700_v22 = vand.u32 4294901760, %v8686_v9  ;;  %10052 = vst [vmem:[#allocation42_spill] sm:$0xff] %v8703_v56 }
 0x1bb   : > { %6817 = vmatprep.subr.mxu0 %v8508_v23  ;;  %10027 = vst [vmem:[#allocation17_spill] sm:$0xff] %v8567_v2  ;;  %6853 = vmatprep.subr.mxu1 %v8567_v2  ;;  %10046 = vst [vmem:[#allocation36_spill] sm:$0xff] %v8680_v32  ;;  %v3024_v11 = vsub.f32 %v8662_v45, %v8680_v32 }
 0x1bc   : > { %6818 = vmatpush3.msra.mxu0 %v8508_v23  ;;  %6854 = vmatpush3.msra.mxu1 %v8567_v2  ;;  %10051 = vst [vmem:[#allocation41_spill] sm:$0xff] %v8700_v22  ;;  %10055 = vst [vmem:[#allocation45_spill] sm:$0xff] %v8712_v4  ;;  %v3038_v19 = vsub.f32 %v8686_v9, %v8700_v22 }
 0x1bd   : > { %6819 = vmatprep.subr.mxu0 %v8527_v27  ;;  %6855 = vmatprep.subr.mxu1 %v8585_v50  ;;  %v8710_v61 = vand.u32 4294901760, %v3024_v11  ;;  %10057 = vst [vmem:[#allocation47_spill] sm:$0xff] %v8721_v46 }
 0x1be   : > { %6820 = vmatpush3.msra.mxu0 %v8527_v27  ;;  %6856 = vmatpush3.msra.mxu1 %v8585_v50  ;;  %v8725_v29 = vand.u32 4294901760, %v3038_v19  ;;  %v8740_v19 = vand.u32 4294901760, %v3052_v34 }
 0x1bf   : > { %6821 = vmatprep.subr.mxu0 %v8546_v18  ;;  %6857 = vmatprep.subr.mxu1 %v8604_v14  ;;  %10054 = vst [vmem:[#allocation44_spill] sm:$0xff] %v8710_v61 }
 0x1c0   : > { %6822 = vmatpush3.msra.mxu0 %v8546_v18  ;;  %6858 = vmatpush3.msra.mxu1 %v8604_v14  ;;  %10058 = vst [vmem:[#allocation48_spill] sm:$0xff] %v8725_v29  ;;  %10060 = vst [vmem:[#allocation50_spill] sm:$0xff] %v8740_v19 }
 0x1c1   : > { %6823 = vmatprep.subr.mxu0 %v8569_v25  ;;  %6859 = vmatprep.subr.mxu1 %v8619_v35 }
 0x1c2   : > { %6824 = vmatpush3.msra.mxu0 %v8569_v25  ;;  %6860 = vmatpush3.msra.mxu1 %v8619_v35 }
 0x1c3   : > { %6825 = vmatprep.subr.mxu0 %v8581_v15  ;;  %6861 = vmatprep.subr.mxu1 %v8632_v26 }
 0x1c4   : > { %6826 = vmatpush3.msra.mxu0 %v8581_v15  ;;  %6862 = vmatpush3.msra.mxu1 %v8632_v26 }
 0x1c5   : > { %6827 = vmatprep.subr.mxu0 %v8600_v42  ;;  %6863 = vmatprep.subr.mxu1 %v8640_v54 }
 0x1c6   : > { %6828 = vmatpush3.msra.mxu0 %v8600_v42  ;;  %6864 = vmatpush3.msra.mxu1 %v8640_v54 }
 0x1c7   : > { %6829 = vmatprep.subr.mxu0 %v8652_v53  ;;  %6865 = vmatprep.subr.mxu1 %v8650_v28 }
 0x1c8   : > { %6830 = vmatpush3.msra.mxu0 %v8652_v53  ;;  %6866 = vmatpush3.msra.mxu1 %v8650_v28  ;;  %v8717_v28 = vand.u32 4294901760, %v8703_v56 }
 0x1c9   : > { %6831 = vmatprep.subr.mxu0 %v8654_v49  ;;  %6867 = vmatprep.subr.mxu1 %v8710_v61 }
 0x1ca   : > { %6832 = vmatpush3.msra.mxu0 %v8654_v49  ;;  %10056 = vst [vmem:[#allocation46_spill] sm:$0xff] %v8717_v28  ;;  %v3045_v11 = vsub.f32 %v8703_v56, %v8717_v28  ;;  %6868 = vmatpush3.msra.mxu1 %v8710_v61  ;;  %v6631_v61 = vpop.f32.mrf.mxu0 }
 0x1cb   : > { %6833 = vmatprep.subr.mxu0 %v8667_v37  ;;  %6869 = vmatprep.subr.mxu1 %v8712_v4 }
 0x1cc   : > { %6834 = vmatpush3.msra.mxu0 %v8667_v37  ;;  %v8735_v54 = vand.u32 4294901760, %v3045_v11  ;;  %6870 = vmatpush3.msra.mxu1 %v8712_v4  ;;  %v6639_v11 = vpop.f32.mrf.mxu1  ;;  %v1613_v4 = vpop.f32.mrf.mxu0 }
 0x1cd   : > { %6835 = vmatprep.subr.mxu0 %v8688_v63  ;;  %6871 = vmatprep.subr.mxu1 %v8725_v29  ;;  %v1726_v33 = vadd.f32 %v6639_v11, %v6631_v61 }
 0x1ce   : > { %6836 = vmatpush3.msra.mxu0 %v8688_v63  ;;  %10059 = vst [vmem:[#allocation49_spill] sm:$0xff] %v8735_v54  ;;  %6872 = vmatpush3.msra.mxu1 %v8725_v29  ;;  %v1719_v26 = vpop.f32.mrf.mxu1  ;;  %v6634_v14 = vpop.f32.mrf.mxu0 }
 0x1cf   : > { %6837 = vmatprep.subr.mxu0 %v8692_v58  ;;  %6873 = vmatprep.subr.mxu1 %v8735_v54  ;;  %v1720_v44 = vadd.f32 %v1719_v26, %v1613_v4 }
 0x1d0   : > { %6838 = vmatpush3.msra.mxu0 %v8692_v58  ;;  %6874 = vmatpush3.msra.mxu1 %v8735_v54  ;;  %v6642_v35 = vpop.f32.mrf.mxu1  ;;  %v1633_v50 = vpop.f32.mrf.mxu0 }
 0x1d1   : > { %6883 = vmatprep.subr.mxu0 %v8461_v30  ;;  %6875 = vmatprep.subr.mxu1 %v8740_v19  ;;  %v1738_v36 = vadd.f32 %v6642_v35, %v6634_v14 }
 0x1d2   : > { %6876 = vmatpush3.msra.mxu1 %v8740_v19  ;;  %v1731_v34 = vpop.f32.mrf.mxu1  ;;  %v6647_v29 = vpop.f32.mrf.mxu0 }
 0x1d3   : > { %6921 = vmatprep.subr.mxu1 %v8451_v7  ;;  %v1819_v10 = vadd.f32 %v6647_v29, %v1726_v33  ;;  %v1732_v56 = vadd.f32 %v1731_v34, %v1633_v50 }
 0x1d4   : > { %v6655_v2 = vpop.f32.mrf.mxu1  ;;  %v1811_v46 = vpop.f32.mrf.mxu0 }
 0x1d5   : > { %v1812_v9 = vadd.f32 %v1811_v46, %v1720_v44  ;;  %v1915_v59 = vadd.f32 %v6655_v2, %v1819_v10 }
 0x1d6   : > { %v1906_v13 = vpop.f32.mrf.mxu1  ;;  %v6650_v54 = vpop.f32.mrf.mxu0 }
 0x1d7   : > { %v1833_v58 = vadd.f32 %v6650_v54, %v1738_v36  ;;  %v1907_v41 = vadd.f32 %v1906_v13, %v1812_v9 }
 0x1d8   : > { %v6658_v1 = vpop.f32.mrf.mxu1  ;;  %v1825_v3 = vpop.f32.mrf.mxu0 }
 0x1d9   : > { %v1826_v37 = vadd.f32 %v1825_v3, %v1732_v56  ;;  %v1931_v49 = vadd.f32 %v6658_v1, %v1833_v58 }
 0x1da   : > { %v1922_v28 = vpop.f32.mrf.mxu1  ;;  %v6663_v19 = vpop.f32.mrf.mxu0 }
 0x1db   : > { %v2011_v12 = vadd.f32 %v6663_v19, %v1915_v59  ;;  %v1923_v61 = vadd.f32 %v1922_v28, %v1826_v37 }
 0x1dc   : > { %v6671_v22 = vpop.f32.mrf.mxu1  ;;  %v2004_v55 = vpop.f32.mrf.mxu0 }
 0x1dd   : > { %v2005_v11 = vadd.f32 %v2004_v55, %v1907_v41  ;;  %v2101_v14 = vadd.f32 %v6671_v22, %v2011_v12 }
 0x1de   : > { %v2094_v5 = vpop.f32.mrf.mxu1  ;;  %v6666_v24 = vpop.f32.mrf.mxu0 }
 0x1df   : > { %v2023_v33 = vadd.f32 %v6666_v24, %v1931_v49  ;;  %v2095_v35 = vadd.f32 %v2094_v5, %v2005_v11 }
 0x1e0   : > { %v6674_v32 = vpop.f32.mrf.mxu1  ;;  %v2016_v17 = vpop.f32.mrf.mxu0 }
 0x1e1   : > { %v2017_v4 = vadd.f32 %v2016_v17, %v1923_v61  ;;  %v2113_v36 = vadd.f32 %v6674_v32, %v2023_v33 }
 0x1e2   : > { %v2106_v31 = vpop.f32.mrf.mxu1 }
 0x1e3   : > { %v2107_v54 = vadd.f32 %v2106_v31, %v2017_v4 }
 0x227   : > { %v6715_v57 = vpop.f32.mrf.mxu1 }
 0x229   : > { %v2349_v40 = vpop.f32.mrf.mxu1 }
 0x22f   : > { %v6693_v20 = vpop.f32.mrf.mxu0 }
 0x230   : > { %v2219_v50 = vadd.f32 %v6693_v20, %v2101_v14 }
 0x231   : > { %v2208_v52 = vpop.f32.mrf.mxu0 }
 0x232   : > { %v2209_v2 = vadd.f32 %v2208_v52, %v2095_v35  ;;  %v2356_v3 = vadd.f32 %v6715_v57, %v2219_v50  ;;  %v6030_v57 = vld [vmem:[%s9792_s5] ss:$0 sm:$0xff] }
 0x234   : > { %v2350_v28 = vadd.f32 %v2349_v40, %v2209_v2 }
 0x253   : > { %v6718_v0 = vpop.f32.mrf.mxu1 }
 0x255   : > { %v2361_v45 = vpop.f32.mrf.mxu1 }
 0x257   : > { %v6759_v6 = vpop.f32.mrf.mxu1 }
 0x259   : > { %v2557_v62 = vpop.f32.mrf.mxu1 }
 0x25b   : > { %v6696_v63 = vpop.f32.mrf.mxu0  ;;  %v6762_v44 = vpop.f32.mrf.mxu1 }
 0x25c   : > { %v2239_v13 = vadd.f32 %v6696_v63, %v2113_v36 }
 0x25d   : > { %v2228_v53 = vpop.f32.mrf.mxu0  ;;  %v2573_v9 = vpop.f32.mrf.mxu1 }
 0x25e   : > { %v2229_v59 = vadd.f32 %v2228_v53, %v2107_v54  ;;  %v2368_v55 = vadd.f32 %v6718_v0, %v2239_v13 }
 0x25f   : > { %v6737_v26 = vpop.f32.mrf.mxu0 }
 0x260   : > { %v2463_v58 = vadd.f32 %v6737_v26, %v2356_v3  ;;  %v2362_v5 = vadd.f32 %v2361_v45, %v2229_v59 }
 0x261   : > { %v2455_v10 = vpop.f32.mrf.mxu0 }
 0x262   : > { %v2456_v37 = vadd.f32 %v2455_v10, %v2350_v28  ;;  %v2566_v17 = vadd.f32 %v6759_v6, %v2463_v58 }
 0x264   : > { %v6740_v1 = vpop.f32.mrf.mxu0  ;;  %v2558_v56 = vadd.f32 %v2557_v62, %v2456_v37 }
 0x265   : > { %v2477_v24 = vadd.f32 %v6740_v1, %v2368_v55 }
 0x266   : > { %v2469_v12 = vpop.f32.mrf.mxu0 }
 0x267   : > { %v2470_v22 = vadd.f32 %v2469_v12, %v2362_v5  ;;  %v2582_v40 = vadd.f32 %v6762_v44, %v2477_v24  ;;  %v10064_v5 = vld [vmem:[#allocation16_spill] sm:$0xff] }
 0x269   : > { %v6803_v41 = vpop.f32.mrf.mxu1  ;;  %v2574_v6 = vadd.f32 %v2573_v9, %v2470_v22  ;;  %v10068_v22 = vld [vmem:[#allocation21_spill] sm:$0xff] }
 0x26b   : > { %v2773_v20 = vpop.f32.mrf.mxu1 }
 0x26d   : > { %v6806_v52 = vpop.f32.mrf.mxu1 }
 0x26f   : > { %v2785_v11 = vpop.f32.mrf.mxu1 }
 0x271   : > { %v6781_v49 = vpop.f32.mrf.mxu0 }
 0x272   : > { %v2683_v32 = vadd.f32 %v6781_v49, %v2566_v17  ;;  %v10065_v17 = vld [vmem:[#allocation31_spill] sm:$0xff]  ;;  %v10067_v49 = vld [vmem:[#allocation32_spill] sm:$0xff] }
 0x273   : > { %v2676_v31 = vpop.f32.mrf.mxu0 }
 0x274   : > { %v2780_v53 = vadd.f32 %v6803_v41, %v2683_v32  ;;  %v2677_v63 = vadd.f32 %v2676_v31, %v2558_v56  ;;  %v10069_v32 = vld [vmem:[#allocation35_spill] sm:$0xff]  ;;  %v10070_v56 = vld [vmem:[#allocation25_spill] sm:$0xff] }
 0x275   : > { %v6784_v46 = vpop.f32.mrf.mxu0  ;;  %v10072_v31 = vld [vmem:[#allocation33_spill] sm:$0xff] }
 0x276   : > { %v8751_v0 = vadd.f32 %v6030_v57, %v2780_v53  ;;  %v2774_v29 = vadd.f32 %v2773_v20, %v2677_v63  ;;  %v2695_v45 = vadd.f32 %v6784_v46, %v2582_v40  ;;  %v10066_v20 = vld [vmem:[#allocation20_spill] sm:$0xff]  ;;  %v10074_v63 = vld [vmem:[#allocation34_spill] sm:$0xff]  ;;  %v10077_v46 = vld [vmem:[#allocation43_spill] sm:$0xff] }
 0x277   : > { %v2688_v19 = vpop.f32.mrf.mxu0  ;;  %v10073_v53 = vld [vmem:[#allocation40_spill] sm:$0xff]  ;;  %v10075_v40 = vld [vmem:[#allocation38_spill] sm:$0xff] }
 0x278   : > { %v8753_v34 = vadd.f32 %v6030_v57, %v2774_v29  ;;  %v2792_v61 = vadd.f32 %v6806_v52, %v2695_v45  ;;  %v2689_v62 = vadd.f32 %v2688_v19, %v2574_v6  ;;  %v8756_v26 = vand.u32 4294901760, %v8751_v0  ;;  %v10076_v52 = vld [vmem:[#allocation42_spill] sm:$0xff]  ;;  %v10078_v29 = vld [vmem:[#allocation5_spill] sm:$0xff]  ;;  %v10080_v6 = vld [vmem:[#allocation7_spill] sm:$0xff] }
 0x279   : > { %v10079_v45 = vld [vmem:[#allocation6_spill] sm:$0xff]  ;;  %v10081_v19 = vld [vmem:[#allocation8_spill] sm:$0xff] }
 0x27a   : > { %10061 = vst [vmem:[#allocation51_spill] sm:$0xff] %v8753_v34  ;;  %v8758_v14 = vadd.f32 %v6030_v57, %v2792_v61  ;;  %v2786_v33 = vadd.f32 %v2785_v11, %v2689_v62  ;;  %v8761_v35 = vand.u32 4294901760, %v8753_v34  ;;  %v8765_v4 = vsub.f32 %v8751_v0, %v8756_v26  ;;  %v10082_v61 = vld [vmem:[#allocation11_spill] sm:$0xff]  ;;  %v10083_v62 = vld [vmem:[#allocation13_spill] sm:$0xff] }
 0x27b   : > { %v10084_v11 = vld [vmem:[#allocation15_spill] sm:$0xff] }
 0x27c   : > { %10062 = vst [vmem:[#allocation52_spill] sm:$0xff] %v8758_v14  ;;  %v8767_v50 = vadd.f32 %v6030_v57, %v2786_v33  ;;  %6877 = vmatprep.mubr.f32.mxu1 %v8761_v35  ;;  %v8771_v44 = vand.u32 4294901760, %v8758_v14  ;;  %v2904_v10 = vsub.f32 %v8753_v34, %v8761_v35  ;;  %v2915_v36 = vand.u32 4294901760, %v8765_v4  ;;  %v10071_v57 = vld [vmem:[#allocation39_spill] sm:$0xff]  ;;  %v10085_v33 = vld [vmem:[#allocation18_spill] sm:$0xff] }
 0x27d   : > { %6878 = vmatmul.mubr.f32.vlgmr.msra.gmra.mxu1 %v8756_v26 }
 0x27e   : > { %10063 = vst [vmem:[#allocation53_spill] sm:$0xff] %v8767_v50  ;;  %6922 = vmatpush3.msra.mxu1 %v8451_v7  ;;  %v8779_v2 = vand.u32 4294901760, %v8767_v50  ;;  %v2905_v54 = vand.u32 4294901760, %v2904_v10  ;;  %v8783_v13 = vsub.f32 %v8758_v14, %v8771_v44  ;;  %v2916_v3 = vsub.f32 %v8765_v4, %v2915_v36 }
 0x27f   : > { %6923 = vmatprep.subr.mxu1 %v8453_v16 }
 0x280   : > { %6924 = vmatpush3.msra.mxu1 %v8453_v16  ;;  %6880 = vmatprep.mubr.f32.mxu1 %v8779_v2  ;;  %v2906_v9 = vsub.f32 %v2904_v10, %v2905_v54  ;;  %v8793_v1 = vsub.f32 %v8767_v50, %v8779_v2  ;;  %v2935_v59 = vand.u32 4294901760, %v8783_v13  ;;  %v2917_v41 = vand.u32 4294901760, %v2916_v3  ;;  %v10090_v3 = vld [vmem:[#allocation37_spill] sm:$0xff] }
 0x281   : > { %6925 = vmatprep.subr.mxu1 %v8455_v21  ;;  %6881 = vmatmul.mubr.f32.gmra.mxu1 %v8771_v44 }
 0x282   : > { %6926 = vmatpush3.msra.mxu1 %v8455_v21  ;;  %6953 = vmatprep.mubr.f32.mxu1 %v2905_v54  ;;  %v2907_v58 = vand.u32 4294901760, %v2906_v9  ;;  %v2925_v28 = vand.u32 4294901760, %v8793_v1  ;;  %v2936_v55 = vsub.f32 %v8783_v13, %v2935_v59  ;;  %v10089_v54 = vld [vmem:[#allocation36_spill] sm:$0xff]  ;;  %v10091_v9 = vld [vmem:[#allocation9_spill] sm:$0xff] }
 0x283   : > { %6927 = vmatprep.subr.mxu1 %v8469_v48 }
 0x284   : > { %6928 = vmatpush3.msra.mxu1 %v8469_v48  ;;  %6839 = vmatprep.mubr.f32.mxu0 %v2907_v58  ;;  %v2926_v37 = vsub.f32 %v8793_v1, %v2925_v28  ;;  %v2937_v24 = vand.u32 4294901760, %v2936_v55  ;;  %v10093_v58 = vld [vmem:[#allocation10_spill] sm:$0xff]  ;;  %v10096_v55 = vld [vmem:[#allocation47_spill] sm:$0xff] }
 0x285   : > { %6929 = vmatprep.subr.mxu1 %v8489_v43  ;;  %6840 = vmatmul.mubr.f32.vlgmr.msra.gmra.mxu0 %v2917_v41  ;;  %v10095_v41 = vld [vmem:[#allocation12_spill] sm:$0xff] }
 0x286   : > { %6884 = vmatpush3.msra.mxu0 %v8461_v30  ;;  %6930 = vmatpush3.msra.mxu1 %v8489_v43  ;;  %v2927_v12 = vand.u32 4294901760, %v2926_v37 }
 0x287   : > { %6885 = vmatprep.subr.mxu0 %v8464_v38  ;;  %6931 = vmatprep.subr.mxu1 %v8508_v23 }
 0x288   : > { %6886 = vmatpush3.msra.mxu0 %v8464_v38  ;;  %6932 = vmatpush3.msra.mxu1 %v8508_v23 }
 0x289   : > { %6842 = vmatprep.mubr.f32.mxu0 %v2927_v12  ;;  %6887 = vmatprep.subr.mxu0 %v8467_v47  ;;  %v10097_v12 = vld [vmem:[#allocation14_spill] sm:$0xff] }
 0x28a   : > { %6933 = vmatprep.subr.mxu1 %v8527_v27  ;;  %6843 = vmatmul.mubr.f32.gmra.mxu0 %v2937_v24  ;;  %v10098_v24 = vld [vmem:[#allocation17_spill] sm:$0xff] }
 0x28b   : > { %6888 = vmatpush3.msra.mxu0 %v8467_v47  ;;  %6934 = vmatpush3.msra.mxu1 %v8527_v27 }
 0x28c   : > { %6889 = vmatprep.subr.mxu0 %v8486_v8  ;;  %6915 = vmatprep.mubr.f32.mxu0 %v2904_v10  ;;  %v3592_v10 = vmul.f32 %v8753_v34, %v8753_v34 }
 0x28d   : > { %6935 = vmatprep.subr.mxu1 %v8546_v18  ;;  %6890 = vmatpush3.msra.mxu0 %v8486_v8 }
 0x28e   : > { %6936 = vmatpush3.msra.mxu1 %v8546_v18  ;;  %6891 = vmatprep.subr.mxu0 %v8506_v60 }
 0x28f   : > { %6937 = vmatprep.subr.mxu1 %v8569_v25  ;;  %6892 = vmatpush3.msra.mxu0 %v8506_v60 }
 0x290   : > { %6938 = vmatpush3.msra.mxu1 %v8569_v25  ;;  %6893 = vmatprep.subr.mxu0 %v8525_v51 }
 0x291   : > { %6939 = vmatprep.subr.mxu1 %v8581_v15  ;;  %6894 = vmatpush3.msra.mxu0 %v8525_v51 }
 0x292   : > { %6940 = vmatpush3.msra.mxu1 %v8581_v15  ;;  %6895 = vmatprep.subr.mxu0 %v8544_v39 }
 0x293   : > { %6941 = vmatprep.subr.mxu1 %v8600_v42  ;;  %6896 = vmatpush3.msra.mxu0 %v8544_v39 }
 0x294   : > { %6942 = vmatpush3.msra.mxu1 %v8600_v42  ;;  %6897 = vmatprep.subr.mxu0 %v10064_v5 }
 0x295   : > { %6943 = vmatprep.subr.mxu1 %v10065_v17  ;;  %6898 = vmatpush3.msra.mxu0 %v10064_v5 }
 0x296   : > { %6944 = vmatpush3.msra.mxu1 %v10065_v17  ;;  %6899 = vmatprep.subr.mxu0 %v10066_v20 }
 0x297   : > { %6945 = vmatprep.subr.mxu1 %v10067_v49  ;;  %6900 = vmatpush3.msra.mxu0 %v10066_v20 }
 0x298   : > { %6946 = vmatpush3.msra.mxu1 %v10067_v49  ;;  %6901 = vmatprep.subr.mxu0 %v10068_v22 }
 0x299   : > { %6947 = vmatprep.subr.mxu1 %v10069_v32  ;;  %6902 = vmatpush3.msra.mxu0 %v10068_v22 }
 0x29a   : > { %6948 = vmatpush3.msra.mxu1 %v10069_v32  ;;  %6903 = vmatprep.subr.mxu0 %v10070_v56 }
 0x29b   : > { %6949 = vmatprep.subr.mxu1 %v10071_v57  ;;  %6904 = vmatpush3.msra.mxu0 %v10070_v56 }
 0x29c   : > { %6950 = vmatpush3.msra.mxu1 %v10071_v57  ;;  %6905 = vmatprep.subr.mxu0 %v10072_v31 }
 0x29d   : > { %6951 = vmatprep.subr.mxu1 %v10073_v53  ;;  %6906 = vmatpush3.msra.mxu0 %v10072_v31 }
 0x29e   : > { %6952 = vmatpush3.msra.mxu1 %v10073_v53  ;;  %6907 = vmatprep.subr.mxu0 %v10074_v63 }
 0x29f   : > { %6954 = vmatmul.mubr.f32.vlgmr.msra.gmra.mxu1 %v2915_v36  ;;  %6997 = vmatprep.subr.mxu1 %v8451_v7  ;;  %v10088_v36 = vld [vmem:[#allocation27_spill] sm:$0xff] }
 0x2a0   : > { %6908 = vmatpush3.msra.mxu0 %v10074_v63  ;;  %6956 = vmatprep.mubr.f32.mxu1 %v2925_v28  ;;  %v10094_v28 = vld [vmem:[#allocation46_spill] sm:$0xff] }
 0x2a1   : > { %6998 = vmatpush3.msra.mxu1 %v8451_v7  ;;  %6909 = vmatprep.subr.mxu0 %v10075_v40 }
 0x2a2   : > { %6999 = vmatprep.subr.mxu1 %v8453_v16  ;;  %6910 = vmatpush3.msra.mxu0 %v10075_v40 }
 0x2a3   : > { %7000 = vmatpush3.msra.mxu1 %v8453_v16  ;;  %6911 = vmatprep.subr.mxu0 %v10076_v52 }
 0x2a4   : > { %6957 = vmatmul.mubr.f32.gmra.mxu1 %v2935_v59  ;;  %7001 = vmatprep.subr.mxu1 %v8455_v21 }
 0x2a5   : > { %6912 = vmatpush3.msra.mxu0 %v10076_v52  ;;  %7002 = vmatpush3.msra.mxu1 %v8455_v21 }
 0x2a6   : > { %7029 = vmatprep.mubr.f32.mxu1 %v8761_v35  ;;  %6913 = vmatprep.subr.mxu0 %v10077_v46 }
 0x2a7   : > { %7003 = vmatprep.subr.mxu1 %v8469_v48  ;;  %6914 = vmatpush3.msra.mxu0 %v10077_v46 }
 0x2a8   : > { %7004 = vmatpush3.msra.mxu1 %v8469_v48  ;;  %6916 = vmatmul.mubr.f32.vlgmr.msra.gmra.mxu0 %v8765_v4  ;;  %v10087_v4 = vld [vmem:[#allocation24_spill] sm:$0xff] }
 0x2a9   : > { %6959 = vmatprep.subr.mxu0 %v10078_v29  ;;  %7005 = vmatprep.subr.mxu1 %v8489_v43 }
 0x2aa   : > { %6918 = vmatprep.mubr.f32.mxu0 %v8793_v1  ;;  %6960 = vmatpush3.msra.mxu0 %v10078_v29  ;;  %v10092_v1 = vld [vmem:[#allocation41_spill] sm:$0xff] }
 0x2ab   : > { %7006 = vmatpush3.msra.mxu1 %v8489_v43  ;;  %6961 = vmatprep.subr.mxu0 %v10079_v45 }
 0x2ac   : > { %7007 = vmatprep.subr.mxu1 %v8508_v23  ;;  %6962 = vmatpush3.msra.mxu0 %v10079_v45 }
 0x2ad   : > { %7008 = vmatpush3.msra.mxu1 %v8508_v23  ;;  %6919 = vmatmul.mubr.f32.gmra.mxu0 %v8783_v13  ;;  %v8931_v13 = vand.u32 4294901760, %v3592_v10 }
 0x2ae   : > { %6963 = vmatprep.subr.mxu0 %v10080_v6  ;;  %7009 = vmatprep.subr.mxu1 %v8527_v27 }
 0x2af   : > { %6964 = vmatpush3.msra.mxu0 %v10080_v6  ;;  %6991 = vmatprep.mubr.f32.mxu0 %v8761_v35  ;;  %v10086_v35 = vld [vmem:[#allocation23_spill] sm:$0xff]  ;;  %v8942_v59 = vsub.f32 %v3592_v10, %v8931_v13 }
 0x2b0   : > { %7010 = vmatpush3.msra.mxu1 %v8527_v27  ;;  %6965 = vmatprep.subr.mxu0 %v10081_v19 }
 0x2b1   : > { %7011 = vmatprep.subr.mxu1 %v8546_v18  ;;  %6966 = vmatpush3.msra.mxu0 %v10081_v19  ;;  %v9909_v37 = vand.u32 4294901760, %v8942_v59 }
 0x2b2   : > { %7012 = vmatpush3.msra.mxu1 %v8546_v18  ;;  %6967 = vmatprep.subr.mxu0 %v10082_v61 }
 0x2b3   : > { %7013 = vmatprep.subr.mxu1 %v8569_v25  ;;  %6968 = vmatpush3.msra.mxu0 %v10082_v61  ;;  %v3680_v10 = vsub.f32 %v8942_v59, %v9909_v37 }
 0x2b4   : > { %7014 = vmatpush3.msra.mxu1 %v8569_v25  ;;  %6969 = vmatprep.subr.mxu0 %v10083_v62 }
 0x2b5   : > { %7015 = vmatprep.subr.mxu1 %v8581_v15  ;;  %6970 = vmatpush3.msra.mxu0 %v10083_v62 }
 0x2b6   : > { %7016 = vmatpush3.msra.mxu1 %v8581_v15  ;;  %6971 = vmatprep.subr.mxu0 %v10084_v11 }
 0x2b7   : > { %7017 = vmatprep.subr.mxu1 %v8600_v42  ;;  %6972 = vmatpush3.msra.mxu0 %v10084_v11 }
 0x2b8   : > { %7018 = vmatpush3.msra.mxu1 %v8600_v42  ;;  %6973 = vmatprep.subr.mxu0 %v10085_v33 }
 0x2b9   : > { %7019 = vmatprep.subr.mxu1 %v10065_v17  ;;  %6974 = vmatpush3.msra.mxu0 %v10085_v33 }
 0x2ba   : > { %7020 = vmatpush3.msra.mxu1 %v10065_v17  ;;  %6975 = vmatprep.subr.mxu0 %v10086_v35 }
 0x2bb   : > { %7021 = vmatprep.subr.mxu1 %v10067_v49  ;;  %6976 = vmatpush3.msra.mxu0 %v10086_v35 }
 0x2bc   : > { %7022 = vmatpush3.msra.mxu1 %v10067_v49  ;;  %6977 = vmatprep.subr.mxu0 %v10087_v4 }
 0x2bd   : > { %7023 = vmatprep.subr.mxu1 %v10069_v32  ;;  %6978 = vmatpush3.msra.mxu0 %v10087_v4 }
 0x2be   : > { %7024 = vmatpush3.msra.mxu1 %v10069_v32  ;;  %6979 = vmatprep.subr.mxu0 %v10088_v36 }
 0x2bf   : > { %7025 = vmatprep.subr.mxu1 %v10071_v57  ;;  %6980 = vmatpush3.msra.mxu0 %v10088_v36 }
 0x2c0   : > { %7026 = vmatpush3.msra.mxu1 %v10071_v57  ;;  %6981 = vmatprep.subr.mxu0 %v10089_v54 }
 0x2c1   : > { %7027 = vmatprep.subr.mxu1 %v10073_v53  ;;  %6982 = vmatpush3.msra.mxu0 %v10089_v54 }
 0x2c2   : > { %7028 = vmatpush3.msra.mxu1 %v10073_v53  ;;  %6983 = vmatprep.subr.mxu0 %v10090_v3 }
 0x2c3   : > { %7030 = vmatmul.mubr.f32.vlgmr.msra.gmra.mxu1 %v8756_v26  ;;  %7073 = vmatprep.subr.mxu1 %v10091_v9 }
 0x2c4   : > { %6984 = vmatpush3.msra.mxu0 %v10090_v3  ;;  %7032 = vmatprep.mubr.f32.mxu1 %v8779_v2 }
 0x2c5   : > { %7074 = vmatpush3.msra.mxu1 %v10091_v9  ;;  %6985 = vmatprep.subr.mxu0 %v10092_v1  ;;  %v10099_v9 = vld [vmem:[#allocation19_spill] sm:$0xff] }
 0x2c6   : > { %7075 = vmatprep.subr.mxu1 %v10093_v58  ;;  %6986 = vmatpush3.msra.mxu0 %v10092_v1 }
 0x2c7   : > { %7076 = vmatpush3.msra.mxu1 %v10093_v58  ;;  %6987 = vmatprep.subr.mxu0 %v10094_v28  ;;  %v10100_v58 = vld [vmem:[#allocation22_spill] sm:$0xff] }
 0x2c8   : > { %7033 = vmatmul.mubr.f32.gmra.mxu1 %v8771_v44  ;;  %7077 = vmatprep.subr.mxu1 %v10095_v41 }
 0x2c9   : > { %6988 = vmatpush3.msra.mxu0 %v10094_v28  ;;  %7078 = vmatpush3.msra.mxu1 %v10095_v41  ;;  %v10103_v41 = vld [vmem:[#allocation29_spill] sm:$0xff] }
 0x2ca   : > { %7105 = vmatprep.mubr.f32.mxu1 %v8931_v13  ;;  %6989 = vmatprep.subr.mxu0 %v10096_v55 }
 0x2cb   : > { %7079 = vmatprep.subr.mxu1 %v10097_v12  ;;  %6990 = vmatpush3.msra.mxu0 %v10096_v55 }
 0x2cc   : > { %7080 = vmatpush3.msra.mxu1 %v10097_v12  ;;  %6992 = vmatmul.mubr.f32.vlgmr.msra.gmra.mxu0 %v8756_v26  ;;  %v3681_v26 = vand.u32 4294901760, %v3680_v10  ;;  %v3593_v12 = vmul.f32 %v8751_v0, %v8751_v0  ;;  %v3594_v10 = vmul.f32 %v8767_v50, %v8767_v50  ;;  %v10109_v50 = vld [vmem:[#allocation50_spill] sm:$0xff] }
 0x2cd   : > { %7035 = vmatprep.subr.mxu0 %v8451_v7  ;;  %7081 = vmatprep.subr.mxu1 %v10098_v24 }
 0x2ce   : > { %6994 = vmatprep.mubr.f32.mxu0 %v8779_v2  ;;  %7036 = vmatpush3.msra.mxu0 %v8451_v7  ;;  %v10101_v2 = vld [vmem:[#allocation26_spill] sm:$0xff] }
 0x2cf   : > { %7082 = vmatpush3.msra.mxu1 %v10098_v24  ;;  %7037 = vmatprep.subr.mxu0 %v8453_v16  ;;  %v10104_v24 = vld [vmem:[#allocation30_spill] sm:$0xff] }
 0x2d0   : > { %7083 = vmatprep.subr.mxu1 %v10099_v9  ;;  %7038 = vmatpush3.msra.mxu0 %v8453_v16 }
 0x2d1   : > { %7084 = vmatpush3.msra.mxu1 %v10099_v9  ;;  %6995 = vmatmul.mubr.f32.gmra.mxu0 %v8771_v44  ;;  %v10102_v44 = vld [vmem:[#allocation28_spill] sm:$0xff] }
 0x2d2   : > { %7039 = vmatprep.subr.mxu0 %v8455_v21  ;;  %7085 = vmatprep.subr.mxu1 %v10100_v58  ;;  %v10105_v9 = vld [vmem:[#allocation44_spill] sm:$0xff] }
 0x2d3   : > { %7040 = vmatpush3.msra.mxu0 %v8455_v21  ;;  %7067 = vmatprep.mubr.f32.mxu0 %v3681_v26  ;;  %v9001_v26 = vand.u32 4294901760, %v3593_v12 }
 0x2d4   : > { %7086 = vmatpush3.msra.mxu1 %v10100_v58  ;;  %7041 = vmatprep.subr.mxu0 %v8469_v48  ;;  %v10106_v58 = vld [vmem:[#allocation45_spill] sm:$0xff] }
 0x2d5   : > { %7087 = vmatprep.subr.mxu1 %v10101_v2  ;;  %7042 = vmatpush3.msra.mxu0 %v8469_v48 }
 0x2d6   : > { %7088 = vmatpush3.msra.mxu1 %v10101_v2  ;;  %7043 = vmatprep.subr.mxu0 %v8489_v43  ;;  %v3595_v2 = vmul.f32 %v8758_v14, %v8758_v14 }
 0x2d7   : > { %7089 = vmatprep.subr.mxu1 %v10102_v44  ;;  %7044 = vmatpush3.msra.mxu0 %v8489_v43 }
 0x2d8   : > { %7090 = vmatpush3.msra.mxu1 %v10102_v44  ;;  %7045 = vmatprep.subr.mxu0 %v8508_v23  ;;  %v9009_v44 = vand.u32 4294901760, %v3594_v10 }
 0x2d9   : > { %7091 = vmatprep.subr.mxu1 %v10103_v41  ;;  %7046 = vmatpush3.msra.mxu0 %v8508_v23 }
 0x2da   : > { %7092 = vmatpush3.msra.mxu1 %v10103_v41  ;;  %7047 = vmatprep.subr.mxu0 %v8527_v27  ;;  %v10107_v41 = vld [vmem:[#allocation48_spill] sm:$0xff]  ;;  %v9025_v37 = vsub.f32 %v3594_v10, %v9009_v44 }
 0x2db   : > { %7093 = vmatprep.subr.mxu1 %v10104_v24  ;;  %7048 = vmatpush3.msra.mxu0 %v8527_v27 }
 0x2dc   : > { %7094 = vmatpush3.msra.mxu1 %v10104_v24  ;;  %7049 = vmatprep.subr.mxu0 %v8546_v18  ;;  %v9016_v24 = vsub.f32 %v3593_v12, %v9001_v26  ;;  %v9914_v10 = vand.u32 4294901760, %v9025_v37 }
 0x2dd   : > { %7095 = vmatprep.subr.mxu1 %v10105_v9  ;;  %7050 = vmatpush3.msra.mxu0 %v8546_v18 }
 0x2de   : > { %7096 = vmatpush3.msra.mxu1 %v10105_v9  ;;  %7051 = vmatprep.subr.mxu0 %v8569_v25  ;;  %v10108_v9 = vld [vmem:[#allocation49_spill] sm:$0xff]  ;;  %v9911_v12 = vand.u32 4294901760, %v9016_v24 }
 0x2df   : > { %7097 = vmatprep.subr.mxu1 %v10106_v58  ;;  %7052 = vmatpush3.msra.mxu0 %v8569_v25 }
 0x2e0   : > { %7098 = vmatpush3.msra.mxu1 %v10106_v58  ;;  %7053 = vmatprep.subr.mxu0 %v8581_v15  ;;  %v9020_v58 = vand.u32 4294901760, %v3595_v2 }
 0x2e1   : > { %7099 = vmatprep.subr.mxu1 %v10107_v41  ;;  %7054 = vmatpush3.msra.mxu0 %v8581_v15 }
 0x2e2   : > { %7100 = vmatpush3.msra.mxu1 %v10107_v41  ;;  %7055 = vmatprep.subr.mxu0 %v8600_v42  ;;  %v9035_v41 = vsub.f32 %v3595_v2, %v9020_v58 }
 0x2e3   : > { %7101 = vmatprep.subr.mxu1 %v10108_v9  ;;  %7056 = vmatpush3.msra.mxu0 %v8600_v42 }
 0x2e4   : > { %7102 = vmatpush3.msra.mxu1 %v10108_v9  ;;  %7057 = vmatprep.subr.mxu0 %v10065_v17  ;;  %v3709_v2 = vand.u32 4294901760, %v9035_v41  ;;  %v3700_v9 = vsub.f32 %v9025_v37, %v9914_v10 }
 0x2e5   : > { %7103 = vmatprep.subr.mxu1 %v10109_v50  ;;  %7058 = vmatpush3.msra.mxu0 %v10065_v17 }
 0x2e6   : > { %7104 = vmatpush3.msra.mxu1 %v10109_v50  ;;  %7059 = vmatprep.subr.mxu0 %v10067_v49  ;;  %v3690_v50 = vsub.f32 %v9016_v24, %v9911_v12  ;;  %v10110_v12 = vand.u32 4294901760, %v8942_v59  ;;  %v3710_v34 = vsub.f32 %v9035_v41, %v3709_v2  ;;  %v3701_v10 = vand.u32 4294901760, %v3700_v9  ;;  %v4421_v9 = vld [vmem:[%s9796_s9 + $0x8] sm:$0xff] }
 0x2e7   : > { %7106 = vmatmul.mubr.f32.vlgmr.msra.gmra.mxu1 %v9001_v26  ;;  %7149 = vmatprep.subr.mxu1 %v8451_v7 }
 0x2e8   : > { %7060 = vmatpush3.msra.mxu0 %v10067_v49  ;;  %7108 = vmatprep.mubr.f32.mxu1 %v9009_v44  ;;  %v3691_v14 = vand.u32 4294901760, %v3690_v50  ;;  %v4423_v50 = vld [vmem:[%s9796_s9 + $0x18] sm:$0xff] }
 0x2e9   : > { %7150 = vmatpush3.msra.mxu1 %v8451_v7  ;;  %7061 = vmatprep.subr.mxu0 %v10069_v32 }
 0x2ea   : > { %7151 = vmatprep.subr.mxu1 %v8453_v16  ;;  %7062 = vmatpush3.msra.mxu0 %v10069_v32 }
 0x2eb   : > { %7152 = vmatpush3.msra.mxu1 %v8453_v16  ;;  %7063 = vmatprep.subr.mxu0 %v10071_v57 }
 0x2ec   : > { %7109 = vmatmul.mubr.f32.gmra.mxu1 %v9020_v58  ;;  %7153 = vmatprep.subr.mxu1 %v8455_v21 }
 0x2ed   : > { %7064 = vmatpush3.msra.mxu0 %v10071_v57  ;;  %7154 = vmatpush3.msra.mxu1 %v8455_v21 }
 0x2ee   : > { %7181 = vmatprep.mubr.f32.mxu1 %v10110_v12  ;;  %7065 = vmatprep.subr.mxu0 %v10073_v53  ;;  %v3711_v12 = vand.u32 4294901760, %v3710_v34  ;;  %v4429_v34 = vld [vmem:[%s9796_s9 + $0x48] sm:$0xff] }
 0x2ef   : > { %7155 = vmatprep.subr.mxu1 %v8469_v48  ;;  %7066 = vmatpush3.msra.mxu0 %v10073_v53 }
 0x2f0   : > { %7156 = vmatpush3.msra.mxu1 %v8469_v48  ;;  %7068 = vmatmul.mubr.f32.vlgmr.msra.gmra.mxu0 %v3691_v14 }
 0x2f1   : > { %7111 = vmatprep.subr.mxu0 %v8461_v30  ;;  %7157 = vmatprep.subr.mxu1 %v8489_v43 }
 0x2f2   : > { %7070 = vmatprep.mubr.f32.mxu0 %v3701_v10  ;;  %7112 = vmatpush3.msra.mxu0 %v8461_v30  ;;  %v10111_v30 = vand.u32 4294901760, %v9016_v24 }
 0x2f3   : > { %7158 = vmatpush3.msra.mxu1 %v8489_v43  ;;  %7113 = vmatprep.subr.mxu0 %v8464_v38 }
 0x2f4   : > { %7159 = vmatprep.subr.mxu1 %v8508_v23  ;;  %7114 = vmatpush3.msra.mxu0 %v8464_v38  ;;  %v10112_v38 = vand.u32 4294901760, %v9025_v37 }
 0x2f5   : > { %7160 = vmatpush3.msra.mxu1 %v8508_v23  ;;  %7071 = vmatmul.mubr.f32.gmra.mxu0 %v3711_v12 }
 0x2f6   : > { %7115 = vmatprep.subr.mxu0 %v8467_v47  ;;  %7161 = vmatprep.subr.mxu1 %v8527_v27 }
 0x2f7   : > { %7116 = vmatpush3.msra.mxu0 %v8467_v47  ;;  %7143 = vmatprep.mubr.f32.mxu0 %v8942_v59 }
 0x2f8   : > { %7162 = vmatpush3.msra.mxu1 %v8527_v27  ;;  %7117 = vmatprep.subr.mxu0 %v8486_v8 }
 0x2f9   : > { %7163 = vmatprep.subr.mxu1 %v8546_v18  ;;  %7118 = vmatpush3.msra.mxu0 %v8486_v8  ;;  %v4433_v8 = vld [vmem:[%s9796_s9 + $0x68] sm:$0xff] }
 0x2fa   : > { %7164 = vmatpush3.msra.mxu1 %v8546_v18  ;;  %7119 = vmatprep.subr.mxu0 %v8506_v60 }
 0x2fb   : > { %7165 = vmatprep.subr.mxu1 %v8569_v25  ;;  %7120 = vmatpush3.msra.mxu0 %v8506_v60 }
 0x2fc   : > { %7166 = vmatpush3.msra.mxu1 %v8569_v25  ;;  %7121 = vmatprep.subr.mxu0 %v8525_v51 }
 0x2fd   : > { %7167 = vmatprep.subr.mxu1 %v8581_v15  ;;  %7122 = vmatpush3.msra.mxu0 %v8525_v51  ;;  %v4432_v51 = vld [vmem:[%s9796_s9 + $0x60] sm:$0xff] }
 0x2fe   : > { %7168 = vmatpush3.msra.mxu1 %v8581_v15  ;;  %7123 = vmatprep.subr.mxu0 %v8544_v39 }
 0x2ff   : > { %7169 = vmatprep.subr.mxu1 %v8600_v42  ;;  %7124 = vmatpush3.msra.mxu0 %v8544_v39 }
 0x300   : > { %7170 = vmatpush3.msra.mxu1 %v8600_v42  ;;  %7125 = vmatprep.subr.mxu0 %v10064_v5 }
 0x301   : > { %7171 = vmatprep.subr.mxu1 %v10065_v17  ;;  %7126 = vmatpush3.msra.mxu0 %v10064_v5 }
 0x302   : > { %7172 = vmatpush3.msra.mxu1 %v10065_v17  ;;  %7127 = vmatprep.subr.mxu0 %v10066_v20 }
 0x303   : > { %7173 = vmatprep.subr.mxu1 %v10067_v49  ;;  %7128 = vmatpush3.msra.mxu0 %v10066_v20 }
 0x304   : > { %7174 = vmatpush3.msra.mxu1 %v10067_v49  ;;  %7129 = vmatprep.subr.mxu0 %v10068_v22 }
 0x305   : > { %7175 = vmatprep.subr.mxu1 %v10069_v32  ;;  %7130 = vmatpush3.msra.mxu0 %v10068_v22  ;;  %v4427_v22 = vld [vmem:[%s9796_s9 + $0x38] sm:$0xff] }
 0x306   : > { %7176 = vmatpush3.msra.mxu1 %v10069_v32  ;;  %7131 = vmatprep.subr.mxu0 %v10070_v56 }
 0x307   : > { %7177 = vmatprep.subr.mxu1 %v10071_v57  ;;  %7132 = vmatpush3.msra.mxu0 %v10070_v56 }
 0x308   : > { %7178 = vmatpush3.msra.mxu1 %v10071_v57  ;;  %7133 = vmatprep.subr.mxu0 %v10072_v31 }
 0x309   : > { %7179 = vmatprep.subr.mxu1 %v10073_v53  ;;  %7134 = vmatpush3.msra.mxu0 %v10072_v31 }
 0x30a   : > { %7180 = vmatpush3.msra.mxu1 %v10073_v53  ;;  %7135 = vmatprep.subr.mxu0 %v10074_v63 }
 0x30b   : > { %7182 = vmatmul.mubr.f32.vlgmr.msra.gmra.mxu1 %v10111_v30  ;;  %7225 = vmatprep.subr.mxu1 %v8451_v7 }
 0x30c   : > { %7136 = vmatpush3.msra.mxu0 %v10074_v63  ;;  %7184 = vmatprep.mubr.f32.mxu1 %v10112_v38 }
 0x30d   : > { %7226 = vmatpush3.msra.mxu1 %v8451_v7  ;;  %7137 = vmatprep.subr.mxu0 %v10075_v40  ;;  %v4435_v7 = vld [vmem:[%s9796_s9 + $0x78] sm:$0xff] }
 0x30e   : > { %7227 = vmatprep.subr.mxu1 %v8453_v16  ;;  %7138 = vmatpush3.msra.mxu0 %v10075_v40 }
 0x30f   : > { %7228 = vmatpush3.msra.mxu1 %v8453_v16  ;;  %7139 = vmatprep.subr.mxu0 %v10076_v52  ;;  %v9207_v16 = vand.u32 4294901760, %v4435_v7 }
 0x310   : > { %7185 = vmatmul.mubr.f32.gmra.mxu1 %v3709_v2  ;;  %7229 = vmatprep.subr.mxu1 %v8455_v21  ;;  %v4422_v2 = vld [vmem:[%s9796_s9 + $0x10] sm:$0xff] }
 0x311   : > { %7140 = vmatpush3.msra.mxu0 %v10076_v52  ;;  %7230 = vmatpush3.msra.mxu1 %v8455_v21  ;;  %v4434_v21 = vld [vmem:[%s9796_s9 + $0x70] sm:$0xff]  ;;  %v9213_v47 = vsub.f32 %v4435_v7, %v9207_v16 }
 0x312   : > { %7257 = vmatprep.mubr.f32.mxu1 %v8931_v13  ;;  %7141 = vmatprep.subr.mxu0 %v10077_v46 }
 0x313   : > { %7231 = vmatprep.subr.mxu1 %v8469_v48  ;;  %7142 = vmatpush3.msra.mxu0 %v10077_v46  ;;  %v9288_v46 = vand.u32 4294901760, %v4427_v22 }
 0x314   : > { %7232 = vmatpush3.msra.mxu1 %v8469_v48  ;;  %7144 = vmatmul.mubr.f32.vlgmr.msra.gmra.mxu0 %v9016_v24  ;;  %v9215_v48 = vand.u32 4294901760, %v4434_v21  ;;  %v4425_v24 = vld [vmem:[%s9796_s9 + $0x28] sm:$0xff] }
 0x315   : > { %7187 = vmatprep.subr.mxu0 %v10078_v29  ;;  %7233 = vmatprep.subr.mxu1 %v8489_v43  ;;  %10121 = vst [vmem:[#allocation33_spill] sm:$0xff] %v9288_v46  ;;  %v9364_v38 = vand.u32 4294901760, %v4425_v24 }
 0x316   : > { %7146 = vmatprep.mubr.f32.mxu0 %v9025_v37  ;;  %7188 = vmatpush3.msra.mxu0 %v10078_v29  ;;  %v9226_v60 = vsub.f32 %v4434_v21, %v9215_v48  ;;  %v4420_v21 = vld [vmem:[%s9796_s9] sm:$0xff] }
 0x317   : > { %7234 = vmatpush3.msra.mxu1 %v8489_v43  ;;  %7189 = vmatprep.subr.mxu0 %v10079_v45  ;;  %v9223_v43 = vand.u32 4294901760, %v9213_v47  ;;  %10135 = vst [vmem:[#allocation23_spill] sm:$0xff] %v9364_v38 }
 0x318   : > { %7235 = vmatprep.subr.mxu1 %v8508_v23  ;;  %7190 = vmatpush3.msra.mxu0 %v10079_v45  ;;  %v9238_v39 = vand.u32 4294901760, %v9226_v60 }
 0x319   : > { %7236 = vmatpush3.msra.mxu1 %v8508_v23  ;;  %7147 = vmatmul.mubr.f32.gmra.mxu0 %v9035_v41  ;;  %10113 = vst [vmem:[#allocation16_spill] sm:$0xff] %v9223_v43  ;;  %v9228_v23 = vand.u32 4294901760, %v4433_v8 }
 0x31a   : > { %7191 = vmatprep.subr.mxu0 %v10080_v6  ;;  %7237 = vmatprep.subr.mxu1 %v8527_v27  ;;  %10114 = vst [vmem:[#allocation31_spill] sm:$0xff] %v9238_v39  ;;  %v4575_v5 = vsub.f32 %v9226_v60, %v9238_v39 }
 0x31b   : > { %7192 = vmatpush3.msra.mxu0 %v10080_v6  ;;  %7219 = vmatprep.mubr.f32.mxu0 %v8931_v13 }
 0x31c   : > { %7238 = vmatpush3.msra.mxu1 %v8527_v27  ;;  %7193 = vmatprep.subr.mxu0 %v10081_v19  ;;  %v4568_v27 = vsub.f32 %v9213_v47, %v9223_v43  ;;  %v4576_v63 = vand.u32 4294901760, %v4575_v5 }
 0x31d   : > { %7239 = vmatprep.subr.mxu1 %v8546_v18  ;;  %7194 = vmatpush3.msra.mxu0 %v10081_v19 }
 0x31e   : > { %7240 = vmatpush3.msra.mxu1 %v8546_v18  ;;  %7195 = vmatprep.subr.mxu0 %v10082_v61  ;;  %v9241_v18 = vsub.f32 %v4433_v8, %v9228_v23  ;;  %v4569_v14 = vand.u32 4294901760, %v4568_v27  ;;  %v9375_v27 = vand.u32 4294901760, %v4422_v2 }
 0x31f   : > { %7241 = vmatprep.subr.mxu1 %v8569_v25  ;;  %7196 = vmatpush3.msra.mxu0 %v10082_v61 }
 0x320   : > { %7242 = vmatpush3.msra.mxu1 %v8569_v25  ;;  %7197 = vmatprep.subr.mxu0 %v10083_v62  ;;  %10115 = vst [vmem:[#allocation20_spill] sm:$0xff] %v9241_v18  ;;  %v9243_v25 = vand.u32 4294901760, %v4432_v51  ;;  %10138 = vst [vmem:[#allocation36_spill] sm:$0xff] %v9375_v27 }
 0x321   : > { %7243 = vmatprep.subr.mxu1 %v8581_v15  ;;  %7198 = vmatpush3.msra.mxu0 %v10083_v62 }
 0x322   : > { %7244 = vmatpush3.msra.mxu1 %v8581_v15  ;;  %7199 = vmatprep.subr.mxu0 %v10084_v11  ;;  %v4431_v15 = vld [vmem:[%s9796_s9 + $0x58] sm:$0xff]  ;;  %v9262_v20 = vsub.f32 %v4432_v51, %v9243_v25  ;;  %v9373_v51 = vand.u32 4294901760, %v4423_v50 }
 0x323   : > { %7245 = vmatprep.subr.mxu1 %v8600_v42  ;;  %7200 = vmatpush3.msra.mxu0 %v10084_v11  ;;  %v9306_v11 = vsub.f32 %v4427_v22, %v9288_v46  ;;  %v9392_v22 = vand.u32 4294901760, %v4420_v21 }
 0x324   : > { %7246 = vmatpush3.msra.mxu1 %v8600_v42  ;;  %7201 = vmatprep.subr.mxu0 %v10085_v33  ;;  %v4430_v42 = vld [vmem:[%s9796_s9 + $0x50] sm:$0xff]  ;;  %10117 = vst [vmem:[#allocation21_spill] sm:$0xff] %v9262_v20  ;;  %v9286_v52 = vand.u32 4294901760, %v9262_v20  ;;  %10137 = vst [vmem:[#allocation27_spill] sm:$0xff] %v9373_v51  ;;  %v9386_v5 = vsub.f32 %v4423_v50, %v9373_v51 }
 0x325   : > { %7247 = vmatprep.subr.mxu1 %v10065_v17  ;;  %7202 = vmatpush3.msra.mxu0 %v10085_v33  ;;  %v9273_v56 = vand.u32 4294901760, %v4430_v42  ;;  %10126 = vst [vmem:[#allocation43_spill] sm:$0xff] %v9306_v11  ;;  %10144 = vst [vmem:[#allocation12_spill] sm:$0xff] %v9392_v22 }
 0x326   : > { %7248 = vmatpush3.msra.mxu1 %v10065_v17  ;;  %7203 = vmatprep.subr.mxu0 %v10086_v35  ;;  %v9259_v17 = vand.u32 4294901760, %v9241_v18  ;;  %10120 = vst [vmem:[#allocation39_spill] sm:$0xff] %v9286_v52  ;;  %v4589_v62 = vsub.f32 %v9262_v20, %v9286_v52  ;;  %10142 = vst [vmem:[#allocation10_spill] sm:$0xff] %v9386_v5 }
 0x327   : > { %7249 = vmatprep.subr.mxu1 %v10067_v49  ;;  %7204 = vmatpush3.msra.mxu0 %v10086_v35  ;;  %v9294_v45 = vsub.f32 %v4430_v42, %v9273_v56 }
 0x328   : > { %7250 = vmatpush3.msra.mxu1 %v10067_v49  ;;  %7205 = vmatprep.subr.mxu0 %v10087_v4  ;;  %10116 = vst [vmem:[#allocation32_spill] sm:$0xff] %v9259_v17  ;;  %v4428_v49 = vld [vmem:[%s9796_s9 + $0x40] sm:$0xff]  ;;  %v4582_v40 = vsub.f32 %v9241_v18, %v9259_v17 }
 0x329   : > { %7251 = vmatprep.subr.mxu1 %v10069_v32  ;;  %7206 = vmatpush3.msra.mxu0 %v10087_v4  ;;  %v9277_v31 = vand.u32 4294901760, %v4428_v49  ;;  %10123 = vst [vmem:[#allocation34_spill] sm:$0xff] %v9294_v45  ;;  %v9314_v4 = vand.u32 4294901760, %v9294_v45 }
 0x32a   : > { %7252 = vmatpush3.msra.mxu1 %v10069_v32  ;;  %7207 = vmatprep.subr.mxu0 %v10088_v36  ;;  %v9271_v32 = vand.u32 4294901760, %v4431_v15  ;;  %v4583_v61 = vand.u32 4294901760, %v4582_v40 }
 0x32b   : > { %7253 = vmatprep.subr.mxu1 %v10071_v57  ;;  %7208 = vmatpush3.msra.mxu0 %v10088_v36  ;;  %10119 = vst [vmem:[#allocation25_spill] sm:$0xff] %v9277_v31  ;;  %v9300_v19 = vsub.f32 %v4428_v49, %v9277_v31  ;;  %10129 = vst [vmem:[#allocation7_spill] sm:$0xff] %v9314_v4  ;;  %v9390_v49 = vsub.f32 %v4422_v2, %v9375_v27 }
 0x32c   : > { %7254 = vmatpush3.msra.mxu1 %v10071_v57  ;;  %7209 = vmatprep.subr.mxu0 %v10089_v54  ;;  %v9275_v57 = vand.u32 4294901760, %v4429_v34  ;;  %v9291_v29 = vsub.f32 %v4431_v15, %v9271_v32  ;;  %v9377_v15 = vand.u32 4294901760, %v4421_v9 }
 0x32d   : > { %7255 = vmatprep.subr.mxu1 %v10073_v53  ;;  %7210 = vmatpush3.msra.mxu0 %v10089_v54  ;;  %10125 = vst [vmem:[#allocation42_spill] sm:$0xff] %v9300_v19  ;;  %v4590_v54 = vand.u32 4294901760, %v4589_v62  ;;  %v9321_v13 = vand.u32 4294901760, %v9300_v19  ;;  %10143 = vst [vmem:[#allocation46_spill] sm:$0xff] %v9390_v49  ;;  %v9405_v62 = vand.u32 4294901760, %v9386_v5 }
 0x32e   : > { %7256 = vmatpush3.msra.mxu1 %v10073_v53  ;;  %7211 = vmatprep.subr.mxu0 %v10090_v3  ;;  %10118 = vst [vmem:[#allocation35_spill] sm:$0xff] %v9275_v57  ;;  %v4426_v53 = vld [vmem:[%s9796_s9 + $0x30] sm:$0xff]  ;;  %10122 = vst [vmem:[#allocation40_spill] sm:$0xff] %v9291_v29  ;;  %v9297_v6 = vsub.f32 %v4429_v34, %v9275_v57  ;;  %v9311_v35 = vand.u32 4294901760, %v9291_v29  ;;  %v9380_v34 = vsub.f32 %v4425_v24, %v9364_v38 }
 0x32f   : > { %7258 = vmatmul.mubr.f32.vlgmr.msra.gmra.mxu1 %v9001_v26  ;;  %7212 = vmatpush3.msra.mxu0 %v10090_v3  ;;  %v9308_v33 = vand.u32 4294901760, %v4426_v53  ;;  %10131 = vst [vmem:[#allocation11_spill] sm:$0xff] %v9321_v13  ;;  %v9324_v3 = vand.u32 4294901760, %v9306_v11  ;;  %10139 = vst [vmem:[#allocation37_spill] sm:$0xff] %v9377_v15  ;;  %v9399_v40 = vsub.f32 %v4421_v9, %v9377_v15 }
 0x330   : > { %7260 = vmatprep.mubr.f32.mxu1 %v9009_v44  ;;  %7213 = vmatprep.subr.mxu0 %v10092_v1  ;;  %10124 = vst [vmem:[#allocation38_spill] sm:$0xff] %v9297_v6  ;;  %10128 = vst [vmem:[#allocation6_spill] sm:$0xff] %v9311_v35  ;;  %v9317_v36 = vand.u32 4294901760, %v9297_v6  ;;  %v4596_v59 = vsub.f32 %v9291_v29, %v9311_v35 }
 0x331   : > { %7214 = vmatpush3.msra.mxu0 %v10092_v1  ;;  %7301 = vmatprep.subr.mxu1 %v4569_v14  ;;  %10127 = vst [vmem:[#allocation5_spill] sm:$0xff] %v9308_v33  ;;  %10132 = vst [vmem:[#allocation13_spill] sm:$0xff] %v9324_v3  ;;  %v9328_v1 = vsub.f32 %v4426_v53, %v9308_v33  ;;  %v4624_v10 = vsub.f32 %v9306_v11, %v9324_v3 }
 0x332   : > { %7215 = vmatprep.subr.mxu0 %v10094_v28  ;;  %7302 = vmatpush3.msra.mxu1 %v4569_v14  ;;  %10130 = vst [vmem:[#allocation8_spill] sm:$0xff] %v9317_v36  ;;  %v4610_v37 = vsub.f32 %v9297_v6, %v9317_v36  ;;  %10140 = vst [vmem:[#allocation9_spill] sm:$0xff] %v9380_v34 }
 0x333   : > { %7261 = vmatmul.mubr.f32.gmra.mxu1 %v9020_v58  ;;  %7216 = vmatpush3.msra.mxu0 %v10094_v28  ;;  %10133 = vst [vmem:[#allocation15_spill] sm:$0xff] %v9328_v1  ;;  %v4603_v28 = vsub.f32 %v9294_v45, %v9314_v4  ;;  %v4625_v42 = vand.u32 4294901760, %v4624_v10  ;;  %10146 = vst [vmem:[#allocation14_spill] sm:$0xff] %v9399_v40 }
 0x334   : > { %7217 = vmatprep.subr.mxu0 %v10096_v55  ;;  %7303 = vmatprep.subr.mxu1 %v4576_v63  ;;  %v4611_v12 = vand.u32 4294901760, %v4610_v37  ;;  %10148 = vst [vmem:[#allocation19_spill] sm:$0xff] %v9405_v62 }
 0x335   : > { %7218 = vmatpush3.msra.mxu0 %v10096_v55  ;;  %7304 = vmatpush3.msra.mxu1 %v4576_v63  ;;  %v9337_v55 = vand.u32 4294901760, %v9328_v1  ;;  %v4604_v41 = vand.u32 4294901760, %v4603_v28  ;;  %v9395_v63 = vand.u32 4294901760, %v9380_v34 }
 0x336   : > { %7220 = vmatmul.mubr.f32.vlgmr.msra.gmra.mxu0 %v9001_v26  ;;  %7263 = vmatprep.subr.mxu0 %v9207_v16  ;;  %v4597_v26 = vand.u32 4294901760, %v4596_v59  ;;  %v9412_v59 = vsub.f32 %v4420_v21, %v9392_v22 }
 0x337   : > { %7222 = vmatprep.mubr.f32.mxu0 %v9009_v44  ;;  %7264 = vmatpush3.msra.mxu0 %v9207_v16  ;;  %10134 = vst [vmem:[#allocation18_spill] sm:$0xff] %v9337_v55  ;;  %v4617_v44 = vsub.f32 %v9300_v19, %v9321_v13  ;;  %v4631_v30 = vsub.f32 %v9328_v1, %v9337_v55  ;;  %10145 = vst [vmem:[#allocation47_spill] sm:$0xff] %v9395_v63 }
 0x338   : > { %7265 = vmatprep.subr.mxu0 %v9215_v48  ;;  %7305 = vmatprep.subr.mxu1 %v4583_v61  ;;  %10150 = vst [vmem:[#allocation26_spill] sm:$0xff] %v9412_v59  ;;  %v4638_v28 = vsub.f32 %v9380_v34, %v9395_v63  ;;  %v9429_v10 = vand.u32 4294901760, %v9412_v59 }
 0x339   : > { %7266 = vmatpush3.msra.mxu0 %v9215_v48  ;;  %7306 = vmatpush3.msra.mxu1 %v4583_v61  ;;  %v4618_v8 = vand.u32 4294901760, %v4617_v44  ;;  %v4632_v53 = vand.u32 4294901760, %v4631_v30  ;;  %v9422_v44 = vand.u32 4294901760, %v9399_v40 }
 0x33a   : > { %7223 = vmatmul.mubr.f32.gmra.mxu0 %v9020_v58  ;;  %7267 = vmatprep.subr.mxu0 %v9228_v23  ;;  %v4424_v58 = vld [vmem:[%s9796_s9 + $0x20] sm:$0xff]  ;;  %v4639_v24 = vand.u32 4294901760, %v4638_v28  ;;  %10152 = vst [vmem:[#allocation29_spill] sm:$0xff] %v9429_v10 }
 0x33b   : > { %7268 = vmatpush3.msra.mxu0 %v9228_v23  ;;  %7307 = vmatprep.subr.mxu1 %v4590_v54  ;;  %v9366_v7 = vand.u32 4294901760, %v4424_v58  ;;  %10151 = vst [vmem:[#allocation28_spill] sm:$0xff] %v9422_v44  ;;  %v4666_v2 = vsub.f32 %v9399_v40, %v9422_v44 }
 0x33c   : > { %7269 = vmatprep.subr.mxu0 %v9243_v25  ;;  %7308 = vmatpush3.msra.mxu1 %v4590_v54  ;;  %v9408_v54 = vand.u32 4294901760, %v9390_v49 }
 0x33d   : > { %7270 = vmatpush3.msra.mxu0 %v9243_v25  ;;  %7309 = vmatprep.subr.mxu1 %v4597_v26  ;;  %10136 = vst [vmem:[#allocation24_spill] sm:$0xff] %v9366_v7  ;;  %v9383_v14 = vsub.f32 %v4424_v58, %v9366_v7  ;;  %v4667_v30 = vand.u32 4294901760, %v4666_v2 }
 0x33e   : > { %7271 = vmatprep.subr.mxu0 %v9271_v32  ;;  %7310 = vmatpush3.msra.mxu1 %v4597_v26  ;;  %10149 = vst [vmem:[#allocation22_spill] sm:$0xff] %v9408_v54  ;;  %v4652_v26 = vsub.f32 %v9386_v5, %v9405_v62 }
 0x33f   : > { %7272 = vmatpush3.msra.mxu0 %v9271_v32  ;;  %7311 = vmatprep.subr.mxu1 %v4604_v41  ;;  %10141 = vst [vmem:[#allocation41_spill] sm:$0xff] %v9383_v14  ;;  %v9402_v61 = vand.u32 4294901760, %v9383_v14 }
 0x340   : > { %7273 = vmatprep.subr.mxu0 %v9273_v56  ;;  %7312 = vmatpush3.msra.mxu1 %v4604_v41  ;;  %v4659_v41 = vsub.f32 %v9390_v49, %v9408_v54  ;;  %v4653_v50 = vand.u32 4294901760, %v4652_v26 }
 0x341   : > { %7274 = vmatpush3.msra.mxu0 %v9273_v56  ;;  %7313 = vmatprep.subr.mxu1 %v4611_v12  ;;  %10147 = vst [vmem:[#allocation17_spill] sm:$0xff] %v9402_v61  ;;  %v4645_v37 = vsub.f32 %v9383_v14, %v9402_v61 }
 0x342   : > { %7275 = vmatprep.subr.mxu0 %v9275_v57  ;;  %7314 = vmatpush3.msra.mxu1 %v4611_v12  ;;  %v4660_v9 = vand.u32 4294901760, %v4659_v41  ;;  %v4673_v12 = vsub.f32 %v9412_v59, %v9429_v10 }
 0x343   : > { %7276 = vmatpush3.msra.mxu0 %v9275_v57  ;;  %7315 = vmatprep.subr.mxu1 %v4618_v8  ;;  %v4646_v58 = vand.u32 4294901760, %v4645_v37 }
 0x344   : > { %7277 = vmatprep.subr.mxu0 %v9277_v31  ;;  %7316 = vmatpush3.msra.mxu1 %v4618_v8  ;;  %v4674_v21 = vand.u32 4294901760, %v4673_v12  ;;  %v6879_v8 = vpop.f32.mrf.mxu1 }
 0x345   : > { %7278 = vmatpush3.msra.mxu0 %v9277_v31  ;;  %7317 = vmatprep.subr.mxu1 %v4625_v42 }
 0x346   : > { %7279 = vmatprep.subr.mxu0 %v9288_v46  ;;  %7318 = vmatpush3.msra.mxu1 %v4625_v42  ;;  %v3090_v42 = vpop.f32.mrf.mxu1 }
 0x347   : > { %7280 = vmatpush3.msra.mxu0 %v9288_v46  ;;  %7319 = vmatprep.subr.mxu1 %v4632_v53 }
 0x348   : > { %7281 = vmatprep.subr.mxu0 %v9308_v33  ;;  %7320 = vmatpush3.msra.mxu1 %v4632_v53  ;;  %v6841_v53 = vpop.f32.mrf.mxu0  ;;  %v6882_v28 = vpop.f32.mrf.mxu1 }
 0x349   : > { %7282 = vmatpush3.msra.mxu0 %v9308_v33  ;;  %7321 = vmatprep.subr.mxu1 %v4639_v24 }
 0x34a   : > { %7283 = vmatprep.subr.mxu0 %v9364_v38  ;;  %7322 = vmatpush3.msra.mxu1 %v4639_v24  ;;  %v2909_v37 = vpop.f32.mrf.mxu0  ;;  %v3102_v26 = vpop.f32.mrf.mxu1 }
 0x34b   : > { %7284 = vmatpush3.msra.mxu0 %v9364_v38  ;;  %7323 = vmatprep.subr.mxu1 %v4646_v58  ;;  %v3091_v14 = vadd.f32 %v3090_v42, %v2909_v37 }
 0x34c   : > { %7285 = vmatprep.subr.mxu0 %v9366_v7  ;;  %7324 = vmatpush3.msra.mxu1 %v4646_v58  ;;  %v6844_v24 = vpop.f32.mrf.mxu0 }
 0x34d   : > { %7286 = vmatpush3.msra.mxu0 %v9366_v7  ;;  %7325 = vmatprep.subr.mxu1 %v4653_v50  ;;  %v3109_v34 = vadd.f32 %v6882_v28, %v6844_v24 }
 0x34e   : > { %7287 = vmatprep.subr.mxu0 %v9373_v51  ;;  %7326 = vmatpush3.msra.mxu1 %v4653_v50  ;;  %v2929_v41 = vpop.f32.mrf.mxu0 }
 0x34f   : > { %7288 = vmatpush3.msra.mxu0 %v9373_v51  ;;  %7327 = vmatprep.subr.mxu1 %v4660_v9  ;;  %v3103_v11 = vadd.f32 %v3102_v26, %v2929_v41 }
 0x350   : > { %7289 = vmatprep.subr.mxu0 %v9375_v27  ;;  %7328 = vmatpush3.msra.mxu1 %v4660_v9 }
 0x351   : > { %7290 = vmatpush3.msra.mxu0 %v9375_v27  ;;  %7329 = vmatprep.subr.mxu1 %v4667_v30 }
 0x352   : > { %7291 = vmatprep.subr.mxu0 %v9377_v15  ;;  %7330 = vmatpush3.msra.mxu1 %v4667_v30 }
 0x353   : > { %7292 = vmatpush3.msra.mxu0 %v9377_v15  ;;  %7331 = vmatprep.subr.mxu1 %v4674_v21 }
 0x354   : > { %7293 = vmatprep.subr.mxu0 %v9392_v22  ;;  %7332 = vmatpush3.msra.mxu1 %v4674_v21 }
 0x355   : > { %7294 = vmatpush3.msra.mxu0 %v9392_v22  ;;  %7377 = vmatprep.subr.mxu1 %v9207_v16  ;;  %v3097_v22 = vadd.f32 %v6879_v8, %v6841_v53 }
 0x356   : > { %7339 = vmatprep.subr.mxu0 %v9213_v47 }
 0x35f   : > { %v6955_v58 = vpop.f32.mrf.mxu1 }
 0x361   : > { %v3322_v50 = vpop.f32.mrf.mxu1 }
 0x364   : > { %v6958_v9 = vpop.f32.mrf.mxu1 }
 0x366   : > { %v3338_v10 = vpop.f32.mrf.mxu1 }
 0x368   : > { %v6917_v2 = vpop.f32.mrf.mxu0 }
 0x369   : > { %v3220_v15 = vadd.f32 %v6917_v2, %v3097_v22 }
 0x36a   : > { %v3212_v12 = vpop.f32.mrf.mxu0 }
 0x36b   : > { %v3213_v27 = vadd.f32 %v3212_v12, %v3091_v14  ;;  %v3331_v19 = vadd.f32 %v6955_v58, %v3220_v15  ;;  %v10153_v12 = vld [vmem:[#allocation51_spill] sm:$0xff] }
 0x36d   : > { %v6920_v44 = vpop.f32.mrf.mxu0  ;;  %v3323_v33 = vadd.f32 %v3322_v50, %v3213_v27 }
 0x36e   : > { %v3234_v7 = vadd.f32 %v6920_v44, %v3109_v34 }
 0x36f   : > { %v3226_v54 = vpop.f32.mrf.mxu0 }
 0x370   : > { %v3227_v6 = vadd.f32 %v3226_v54, %v3103_v11  ;;  %v3347_v18 = vadd.f32 %v6958_v9, %v3234_v7  ;;  %v6031_v9 = vld [vmem:[%s9793_s6] ss:$0 sm:$0xff] }
 0x372   : > { %v3339_v14 = vadd.f32 %v3338_v10, %v3227_v6 }
 0x383   : > { %v7031_v30 = vpop.f32.mrf.mxu1 }
 0x385   : > { %v3570_v21 = vpop.f32.mrf.mxu1 }
 0x388   : > { %v7034_v61 = vpop.f32.mrf.mxu1 }
 0x38a   : > { %v3582_v55 = vpop.f32.mrf.mxu1 }
 0x38c   : > { %v6993_v62 = vpop.f32.mrf.mxu0 }
 0x38d   : > { %v3472_v29 = vadd.f32 %v6993_v62, %v3331_v19 }
 0x38e   : > { %v3465_v63 = vpop.f32.mrf.mxu0 }
 0x38f   : > { %v3466_v57 = vadd.f32 %v3465_v63, %v3323_v33  ;;  %v3577_v37 = vadd.f32 %v7031_v30, %v3472_v29 }
 0x391   : > { %v6996_v3 = vpop.f32.mrf.mxu0  ;;  %v4379_v50 = vsub.f32 %v8751_v0, %v3577_v37 }
 0x392   : > { %v3484_v53 = vadd.f32 %v6996_v3, %v3347_v18 }
 0x393   : > { %v3477_v36 = vpop.f32.mrf.mxu0 }
 0x394   : > { %v3478_v11 = vadd.f32 %v3477_v36, %v3339_v14 }
 0x3a7   : > { %v7107_v13 = vpop.f32.mrf.mxu1 }
 0x3a9   : > { %v3864_v4 = vpop.f32.mrf.mxu1 }
 0x3ac   : > { %v7110_v52 = vpop.f32.mrf.mxu1 }
 0x3ae   : > { %v3876_v39 = vpop.f32.mrf.mxu1 }
 0x3b0   : > { %v7069_v35 = vpop.f32.mrf.mxu0 }
 0x3b1   : > { %v3871_v38 = vadd.f32 %v7107_v13, %v7069_v35  ;;  %v3571_v35 = vadd.f32 %v3570_v21, %v3466_v57 }
 0x3b2   : > { %v3683_v17 = vpop.f32.mrf.mxu0 }
 0x3b3   : > { %v3865_v31 = vadd.f32 %v3864_v4, %v3683_v17  ;;  %v3589_v4 = vadd.f32 %v7034_v61, %v3484_v53  ;;  %v4366_v18 = vmul.f32 %v3571_v35, %v3571_v35  ;;  %v4378_v30 = vsub.f32 %v10153_v12, %v3571_v35  ;;  %v10168_v12 = vld [vmem:[#allocation43_spill] sm:$0xff] }
 0x3b5   : > { %v7072_v43 = vpop.f32.mrf.mxu0  ;;  %v4369_v36 = vmul.f32 %v3589_v4, %v3589_v4 }
 0x3b6   : > { %v3883_v42 = vadd.f32 %v7110_v52, %v7072_v43  ;;  %v3583_v52 = vadd.f32 %v3582_v55, %v3478_v11 }
 0x3b7   : > { %v3703_v40 = vpop.f32.mrf.mxu0 }
 0x3b8   : > { %v3877_v26 = vadd.f32 %v3876_v39, %v3703_v40  ;;  %v4368_v40 = vmul.f32 %v3583_v52, %v3583_v52 }
 0x3cb   : > { %v7183_v59 = vpop.f32.mrf.mxu1 }
 0x3cd   : > { %v4096_v49 = vpop.f32.mrf.mxu1 }
 0x3d0   : > { %v7186_v1 = vpop.f32.mrf.mxu1 }
 0x3d2   : > { %v4112_v45 = vpop.f32.mrf.mxu1 }
 0x3d4   : > { %v7145_v5 = vpop.f32.mrf.mxu0 }
 0x3d5   : > { %v3994_v20 = vadd.f32 %v7145_v5, %v3871_v38  ;;  %v4367_v38 = vmul.f32 %v3577_v37, %v3577_v37 }
 0x3d6   : > { %v3986_v51 = vpop.f32.mrf.mxu0 }
 0x3d7   : > { %v3987_v22 = vadd.f32 %v3986_v51, %v3865_v31  ;;  %v4105_v15 = vadd.f32 %v7183_v59, %v3994_v20 }
 0x3d9   : > { %v7148_v46 = vpop.f32.mrf.mxu0  ;;  %v4097_v17 = vadd.f32 %v4096_v49, %v3987_v22  ;;  %v10154_v22 = vld [vmem:[#allocation52_spill] sm:$0xff] }
 0x3da   : > { %v4008_v34 = vadd.f32 %v7148_v46, %v3883_v42  ;;  %v6032_v42 = vld [vmem:[%s9794_s7] ss:$0 sm:$0xff]  ;;  %v4381_v53 = vsub.f32 %v10154_v22, %v3589_v4 }
 0x3db   : > { %v4000_v28 = vpop.f32.mrf.mxu0  ;;  %v10173_v22 = vld [vmem:[#allocation37_spill] sm:$0xff] }
 0x3dc   : > { %v4001_v54 = vadd.f32 %v4000_v28, %v3877_v26  ;;  %v4121_v31 = vadd.f32 %v7186_v1, %v4008_v34  ;;  %v10155_v34 = vld [vmem:[#allocation53_spill] sm:$0xff] }
 0x3dd   : > { %v4380_v0 = vsub.f32 %v10155_v34, %v3583_v52  ;;  %v10178_v34 = vld [vmem:[#allocation14_spill] sm:$0xff] }
 0x3de   : > { %v4113_v57 = vadd.f32 %v4112_v45, %v4001_v54 }
 0x3ef   : > { %v7259_v8 = vpop.f32.mrf.mxu1 }
 0x3f1   : > { %v4344_v13 = vpop.f32.mrf.mxu1 }
 0x3f3   : > { %v7262_v6 = vpop.f32.mrf.mxu1 }
 0x3f5   : > { %v4356_v61 = vpop.f32.mrf.mxu1 }
 0x3f6   : > { %v7221_v27 = vpop.f32.mrf.mxu0 }
 0x3f7   : > { %v4246_v19 = vadd.f32 %v7221_v27, %v4105_v15 }
 0x3f8   : > { %v4239_v33 = vpop.f32.mrf.mxu0 }
 0x3f9   : > { %v4351_v7 = vadd.f32 %v7259_v8, %v4246_v19  ;;  %v4240_v43 = vadd.f32 %v4239_v33, %v4097_v17 }
 0x3fa   : > { %v7224_v29 = vpop.f32.mrf.mxu0 }
 0x3fb   : > { %v4371_v39 = vsub.f32 %v4351_v7, %v4367_v38  ;;  %v4345_v46 = vadd.f32 %v4344_v13, %v4240_v43  ;;  %v4258_v20 = vadd.f32 %v7224_v29, %v4121_v31 }
 0x3fc   : > { %v4251_v3 = vpop.f32.mrf.mxu0 }
 0x3fd   : > { %v4375_v51 = vmax.f32 %v4371_v39, 0.0  ;;  %v4370_v5 = vsub.f32 %v4345_v46, %v4366_v18  ;;  %v4363_v63 = vadd.f32 %v7262_v6, %v4258_v20  ;;  %v4252_v49 = vadd.f32 %v4251_v3, %v4113_v57 }
 0x3ff   : > { %v4383_v62 = vadd.f32 1e-05, %v4375_v51  ;;  %v4374_v59 = vmax.f32 %v4370_v5, 0.0  ;;  %v4373_v44 = vsub.f32 %v4363_v63, %v4369_v36  ;;  %v4357_v1 = vadd.f32 %v4356_v61, %v4252_v49 }
 0x401   : > { %7634 = vrsqrt.f32 %v4383_v62  ;;  %v4382_v55 = vadd.f32 1e-05, %v4374_v59  ;;  %v4377_v10 = vmax.f32 %v4373_v44, 0.0  ;;  %v4372_v24 = vsub.f32 %v4357_v1, %v4368_v40  ;;  %v10156_v1 = vld [vmem:[#allocation20_spill] sm:$0xff] }
 0x403   : > { %7636 = vrsqrt.f32 %v4382_v55  ;;  %v4385_v58 = vadd.f32 1e-05, %v4377_v10  ;;  %v4376_v41 = vmax.f32 %v4372_v24, 0.0  ;;  %v10157_v55 = vld [vmem:[#allocation35_spill] sm:$0xff]  ;;  %v10159_v10 = vld [vmem:[#allocation25_spill] sm:$0xff] }
 0x404   : > { %v10161_v24 = vld [vmem:[#allocation33_spill] sm:$0xff] }
 0x405   : > { %7638 = vrsqrt.f32 %v4385_v58  ;;  %v4384_v45 = vadd.f32 1e-05, %v4376_v41  ;;  %v10162_v58 = vld [vmem:[#allocation34_spill] sm:$0xff]  ;;  %v10163_v41 = vld [vmem:[#allocation5_spill] sm:$0xff] }
 0x407   : > { %7640 = vrsqrt.f32 %v4384_v45  ;;  %v10164_v45 = vld [vmem:[#allocation38_spill] sm:$0xff] }
 0x40e   : > { %v7635_v2 = vpop.eup %7634 }
 0x40f   : > { %v4391_v21 = vmul.f32 %v7635_v2, %v4379_v50  ;;  %v10165_v50 = vld [vmem:[#allocation23_spill] sm:$0xff]  ;;  %v10166_v2 = vld [vmem:[#allocation42_spill] sm:$0xff] }
 0x410   : > { %v7637_v8 = vpop.eup %7636 }
 0x411   : > { %v4390_v14 = vmul.f32 %v7637_v8, %v4378_v30  ;;  %v4402_v28 = vmul.f32 %v6031_v9, %v4391_v21  ;;  %v10169_v30 = vld [vmem:[#allocation27_spill] sm:$0xff]  ;;  %v10171_v8 = vld [vmem:[#allocation36_spill] sm:$0xff] }
 0x412   : > { %v7639_v26 = vpop.eup %7638  ;;  %v10170_v21 = vld [vmem:[#allocation15_spill] sm:$0xff] }
 0x413   : > { %v4401_v37 = vmul.f32 %v6031_v9, %v4390_v14  ;;  %v4413_v15 = vadd.f32 %v6032_v42, %v4402_v28  ;;  %v4393_v11 = vmul.f32 %v7639_v26, %v4381_v53  ;;  %v10174_v53 = vld [vmem:[#allocation41_spill] sm:$0xff]  ;;  %v10175_v14 = vld [vmem:[#allocation12_spill] sm:$0xff]  ;;  %v10176_v28 = vld [vmem:[#allocation10_spill] sm:$0xff] }
 0x414   : > { %v7641_v13 = vpop.eup %7640  ;;  %v10177_v26 = vld [vmem:[#allocation46_spill] sm:$0xff] }
 0x415   : > { %v4412_v27 = vadd.f32 %v6032_v42, %v4401_v37  ;;  %v4417_v54 = vmax.f32 %v4413_v15, 0.0  ;;  %v4392_v35 = vmul.f32 %v7641_v13, %v4380_v0  ;;  %v4404_v19 = vmul.f32 %v6031_v9, %v4393_v11  ;;  %v10185_v0 = vld [vmem:[#allocation7_spill] sm:$0xff]  ;;  %v10186_v37 = vld [vmem:[#allocation8_spill] sm:$0xff]  ;;  %v10188_v11 = vld [vmem:[#allocation13_spill] sm:$0xff] }
 0x416   : > { %v10187_v15 = vld [vmem:[#allocation11_spill] sm:$0xff]  ;;  %v10189_v13 = vld [vmem:[#allocation18_spill] sm:$0xff] }
 0x417   : > { %v4416_v17 = vmax.f32 %v4412_v27, 0.0  ;;  %v9456_v33 = vand.u32 4294901760, %v4417_v54  ;;  %v4403_v38 = vmul.f32 %v6031_v9, %v4392_v35  ;;  %v4415_v7 = vadd.f32 %v6032_v42, %v4404_v19  ;;  %v10167_v9 = vld [vmem:[#allocation24_spill] sm:$0xff]  ;;  %v10190_v27 = vld [vmem:[#allocation47_spill] sm:$0xff]  ;;  %v10193_v19 = vld [vmem:[#allocation22_spill] sm:$0xff] }
 0x418   : > { %v10192_v35 = vld [vmem:[#allocation19_spill] sm:$0xff] }
 0x419   : > { %v9458_v43 = vand.u32 4294901760, %v4416_v17  ;;  %v9461_v4 = vsub.f32 %v4417_v54, %v9456_v33  ;;  %v4414_v31 = vadd.f32 %v6032_v42, %v4403_v38  ;;  %v4419_v18 = vmax.f32 %v4415_v7, 0.0  ;;  %v10172_v42 = vld [vmem:[#allocation9_spill] sm:$0xff] }
 0x41a   : > { %v10191_v54 = vld [vmem:[#allocation17_spill] sm:$0xff] }
 0x41b   : > { %7333 = vmatprep.mubr.f32.mxu1 %v9458_v43  ;;  %v4418_v52 = vmax.f32 %v4414_v31, 0.0  ;;  %v9464_v6 = vand.u32 4294901760, %v4419_v18  ;;  %v4525_v29 = vsub.f32 %v4416_v17, %v9458_v43  ;;  %v4536_v39 = vand.u32 4294901760, %v9461_v4  ;;  %v10194_v17 = vld [vmem:[#allocation28_spill] sm:$0xff]  ;;  %v10195_v38 = vld [vmem:[#allocation29_spill] sm:$0xff] }
 0x41c   : > { %7334 = vmatmul.mubr.f32.vlgmr.msra.gmra.mxu1 %v9456_v33 }
 0x41d   : > { %7378 = vmatpush3.msra.mxu1 %v9207_v16  ;;  %v9470_v46 = vand.u32 4294901760, %v4418_v52  ;;  %v4526_v20 = vand.u32 4294901760, %v4525_v29  ;;  %v9473_v57 = vsub.f32 %v4419_v18, %v9464_v6  ;;  %v4537_v36 = vsub.f32 %v9461_v4, %v4536_v39 }
 0x41e   : > { %7379 = vmatprep.subr.mxu1 %v9215_v48 }
 0x41f   : > { %7380 = vmatpush3.msra.mxu1 %v9215_v48  ;;  %7336 = vmatprep.mubr.f32.mxu1 %v9470_v46  ;;  %v4527_v3 = vsub.f32 %v4525_v29, %v4526_v20  ;;  %v9482_v51 = vsub.f32 %v4418_v52, %v9470_v46  ;;  %v4556_v5 = vand.u32 4294901760, %v9473_v57  ;;  %v4538_v40 = vand.u32 4294901760, %v4537_v36 }
 0x420   : > { %7381 = vmatprep.subr.mxu1 %v9228_v23  ;;  %7337 = vmatmul.mubr.f32.gmra.mxu1 %v9464_v6 }
 0x421   : > { %7382 = vmatpush3.msra.mxu1 %v9228_v23  ;;  %7409 = vmatprep.mubr.f32.mxu1 %v4526_v20  ;;  %v4528_v63 = vand.u32 4294901760, %v4527_v3  ;;  %v4546_v49 = vand.u32 4294901760, %v9482_v51  ;;  %v4557_v62 = vsub.f32 %v9473_v57, %v4556_v5  ;;  %v6033_v3 = vld [vmem:[%s9797_s10] ss:$0 sm:$0xff] }
 0x422   : > { %7383 = vmatprep.subr.mxu1 %v9243_v25 }
 0x423   : > { %7384 = vmatpush3.msra.mxu1 %v9243_v25  ;;  %7295 = vmatprep.mubr.f32.mxu0 %v4528_v63  ;;  %v4547_v61 = vsub.f32 %v9482_v51, %v4546_v49  ;;  %v4558_v44 = vand.u32 4294901760, %v4557_v62 }
 0x424   : > { %7385 = vmatprep.subr.mxu1 %v9271_v32  ;;  %7296 = vmatmul.mubr.f32.vlgmr.msra.gmra.mxu0 %v4538_v40 }
 0x425   : > { %7340 = vmatpush3.msra.mxu0 %v9213_v47  ;;  %7386 = vmatpush3.msra.mxu1 %v9271_v32  ;;  %v4548_v59 = vand.u32 4294901760, %v4547_v61  ;;  %v10158_v47 = vld [vmem:[#allocation21_spill] sm:$0xff] }
 0x426   : > { %7341 = vmatprep.subr.mxu0 %v9226_v60  ;;  %7387 = vmatprep.subr.mxu1 %v9273_v56 }
 0x427   : > { %7342 = vmatpush3.msra.mxu0 %v9226_v60  ;;  %7388 = vmatpush3.msra.mxu1 %v9273_v56  ;;  %v10160_v60 = vld [vmem:[#allocation40_spill] sm:$0xff] }
 0x428   : > { %7298 = vmatprep.mubr.f32.mxu0 %v4548_v59  ;;  %7343 = vmatprep.subr.mxu0 %v10156_v1 }
 0x429   : > { %7389 = vmatprep.subr.mxu1 %v10157_v55  ;;  %7299 = vmatmul.mubr.f32.gmra.mxu0 %v4558_v44 }
 0x42a   : > { %7344 = vmatpush3.msra.mxu0 %v10156_v1  ;;  %7390 = vmatpush3.msra.mxu1 %v10157_v55 }
 0x42b   : > { %7345 = vmatprep.subr.mxu0 %v10158_v47  ;;  %7371 = vmatprep.mubr.f32.mxu0 %v4525_v29 }
 0x42c   : > { %7391 = vmatprep.subr.mxu1 %v10159_v10  ;;  %7346 = vmatpush3.msra.mxu0 %v10158_v47 }
 0x42d   : > { %7392 = vmatpush3.msra.mxu1 %v10159_v10  ;;  %7347 = vmatprep.subr.mxu0 %v10160_v60 }
 0x42e   : > { %7393 = vmatprep.subr.mxu1 %v10161_v24  ;;  %7348 = vmatpush3.msra.mxu0 %v10160_v60 }
 0x42f   : > { %7394 = vmatpush3.msra.mxu1 %v10161_v24  ;;  %7349 = vmatprep.subr.mxu0 %v10162_v58 }
 0x430   : > { %7395 = vmatprep.subr.mxu1 %v10163_v41  ;;  %7350 = vmatpush3.msra.mxu0 %v10162_v58 }
 0x431   : > { %7396 = vmatpush3.msra.mxu1 %v10163_v41  ;;  %7351 = vmatprep.subr.mxu0 %v10164_v45 }
 0x432   : > { %7397 = vmatprep.subr.mxu1 %v10165_v50  ;;  %7352 = vmatpush3.msra.mxu0 %v10164_v45 }
 0x433   : > { %7398 = vmatpush3.msra.mxu1 %v10165_v50  ;;  %7353 = vmatprep.subr.mxu0 %v10166_v2 }
 0x434   : > { %7399 = vmatprep.subr.mxu1 %v10167_v9  ;;  %7354 = vmatpush3.msra.mxu0 %v10166_v2 }
 0x435   : > { %7400 = vmatpush3.msra.mxu1 %v10167_v9  ;;  %7355 = vmatprep.subr.mxu0 %v10168_v12 }
 0x436   : > { %7401 = vmatprep.subr.mxu1 %v10169_v30  ;;  %7356 = vmatpush3.msra.mxu0 %v10168_v12 }
 0x437   : > { %7402 = vmatpush3.msra.mxu1 %v10169_v30  ;;  %7357 = vmatprep.subr.mxu0 %v10170_v21 }
 0x438   : > { %7403 = vmatprep.subr.mxu1 %v10171_v8  ;;  %7358 = vmatpush3.msra.mxu0 %v10170_v21 }
 0x439   : > { %7404 = vmatpush3.msra.mxu1 %v10171_v8  ;;  %7359 = vmatprep.subr.mxu0 %v10172_v42 }
 0x43a   : > { %7405 = vmatprep.subr.mxu1 %v10173_v22  ;;  %7360 = vmatpush3.msra.mxu0 %v10172_v42 }
 0x43b   : > { %7406 = vmatpush3.msra.mxu1 %v10173_v22  ;;  %7361 = vmatprep.subr.mxu0 %v10174_v53 }
 0x43c   : > { %7407 = vmatprep.subr.mxu1 %v10175_v14  ;;  %7362 = vmatpush3.msra.mxu0 %v10174_v53 }
 0x43d   : > { %7408 = vmatpush3.msra.mxu1 %v10175_v14  ;;  %7363 = vmatprep.subr.mxu0 %v10176_v28 }
 0x43e   : > { %7410 = vmatmul.mubr.f32.vlgmr.msra.gmra.mxu1 %v4536_v39  ;;  %7453 = vmatprep.subr.mxu1 %v9207_v16 }
 0x43f   : > { %7364 = vmatpush3.msra.mxu0 %v10176_v28  ;;  %7412 = vmatprep.mubr.f32.mxu1 %v4546_v49 }
 0x440   : > { %7454 = vmatpush3.msra.mxu1 %v9207_v16  ;;  %7365 = vmatprep.subr.mxu0 %v10177_v26  ;;  %v10179_v16 = vld [vmem:[#allocation26_spill] sm:$0xff] }
 0x441   : > { %7455 = vmatprep.subr.mxu1 %v9215_v48  ;;  %7366 = vmatpush3.msra.mxu0 %v10177_v26 }
 0x442   : > { %7456 = vmatpush3.msra.mxu1 %v9215_v48  ;;  %7367 = vmatprep.subr.mxu0 %v10178_v34  ;;  %v10180_v48 = vld [vmem:[#allocation16_spill] sm:$0xff] }
 0x443   : > { %7413 = vmatmul.mubr.f32.gmra.mxu1 %v4556_v5  ;;  %7457 = vmatprep.subr.mxu1 %v9228_v23 }
 0x444   : > { %7368 = vmatpush3.msra.mxu0 %v10178_v34  ;;  %7458 = vmatpush3.msra.mxu1 %v9228_v23  ;;  %v10181_v23 = vld [vmem:[#allocation31_spill] sm:$0xff] }
 0x445   : > { %7485 = vmatprep.mubr.f32.mxu1 %v9458_v43  ;;  %7369 = vmatprep.subr.mxu0 %v10179_v16 }
 0x446   : > { %7459 = vmatprep.subr.mxu1 %v9243_v25  ;;  %7370 = vmatpush3.msra.mxu0 %v10179_v16 }
 0x447   : > { %7460 = vmatpush3.msra.mxu1 %v9243_v25  ;;  %7372 = vmatmul.mubr.f32.vlgmr.msra.gmra.mxu0 %v9461_v4  ;;  %v10182_v25 = vld [vmem:[#allocation32_spill] sm:$0xff] }
 0x448   : > { %7415 = vmatprep.subr.mxu0 %v10180_v48  ;;  %7461 = vmatprep.subr.mxu1 %v9271_v32 }
 0x449   : > { %7374 = vmatprep.mubr.f32.mxu0 %v9482_v51  ;;  %7416 = vmatpush3.msra.mxu0 %v10180_v48 }
 0x44a   : > { %7462 = vmatpush3.msra.mxu1 %v9271_v32  ;;  %7417 = vmatprep.subr.mxu0 %v10181_v23  ;;  %v10183_v32 = vld [vmem:[#allocation39_spill] sm:$0xff] }
 0x44b   : > { %7463 = vmatprep.subr.mxu1 %v9273_v56  ;;  %7418 = vmatpush3.msra.mxu0 %v10181_v23 }
 0x44c   : > { %7464 = vmatpush3.msra.mxu1 %v9273_v56  ;;  %7375 = vmatmul.mubr.f32.gmra.mxu0 %v9473_v57  ;;  %v10184_v56 = vld [vmem:[#allocation6_spill] sm:$0xff] }
 0x44d   : > { %7419 = vmatprep.subr.mxu0 %v10182_v25  ;;  %7465 = vmatprep.subr.mxu1 %v10157_v55 }
 0x44e   : > { %7420 = vmatpush3.msra.mxu0 %v10182_v25  ;;  %7447 = vmatprep.mubr.f32.mxu0 %v9458_v43 }
 0x44f   : > { %7466 = vmatpush3.msra.mxu1 %v10157_v55  ;;  %7421 = vmatprep.subr.mxu0 %v10183_v32 }
 0x450   : > { %7467 = vmatprep.subr.mxu1 %v10159_v10  ;;  %7422 = vmatpush3.msra.mxu0 %v10183_v32 }
 0x451   : > { %7468 = vmatpush3.msra.mxu1 %v10159_v10  ;;  %7423 = vmatprep.subr.mxu0 %v10184_v56 }
 0x452   : > { %7469 = vmatprep.subr.mxu1 %v10161_v24  ;;  %7424 = vmatpush3.msra.mxu0 %v10184_v56 }
 0x453   : > { %7470 = vmatpush3.msra.mxu1 %v10161_v24  ;;  %7425 = vmatprep.subr.mxu0 %v10185_v0 }
 0x454   : > { %7471 = vmatprep.subr.mxu1 %v10163_v41  ;;  %7426 = vmatpush3.msra.mxu0 %v10185_v0 }
 0x455   : > { %7472 = vmatpush3.msra.mxu1 %v10163_v41  ;;  %7427 = vmatprep.subr.mxu0 %v10186_v37 }
 0x456   : > { %7473 = vmatprep.subr.mxu1 %v10165_v50  ;;  %7428 = vmatpush3.msra.mxu0 %v10186_v37 }
 0x457   : > { %7474 = vmatpush3.msra.mxu1 %v10165_v50  ;;  %7429 = vmatprep.subr.mxu0 %v10187_v15 }
 0x458   : > { %7475 = vmatprep.subr.mxu1 %v10167_v9  ;;  %7430 = vmatpush3.msra.mxu0 %v10187_v15 }
 0x459   : > { %7476 = vmatpush3.msra.mxu1 %v10167_v9  ;;  %7431 = vmatprep.subr.mxu0 %v10188_v11 }
 0x45a   : > { %7477 = vmatprep.subr.mxu1 %v10169_v30  ;;  %7432 = vmatpush3.msra.mxu0 %v10188_v11 }
 0x45b   : > { %7478 = vmatpush3.msra.mxu1 %v10169_v30  ;;  %7433 = vmatprep.subr.mxu0 %v10189_v13 }
 0x45c   : > { %7479 = vmatprep.subr.mxu1 %v10171_v8  ;;  %7434 = vmatpush3.msra.mxu0 %v10189_v13 }
 0x45d   : > { %7480 = vmatpush3.msra.mxu1 %v10171_v8  ;;  %7435 = vmatprep.subr.mxu0 %v10190_v27 }
 0x45e   : > { %7481 = vmatprep.subr.mxu1 %v10173_v22  ;;  %7436 = vmatpush3.msra.mxu0 %v10190_v27 }
 0x45f   : > { %7482 = vmatpush3.msra.mxu1 %v10173_v22  ;;  %7437 = vmatprep.subr.mxu0 %v10191_v54 }
 0x460   : > { %7483 = vmatprep.subr.mxu1 %v10175_v14  ;;  %7438 = vmatpush3.msra.mxu0 %v10191_v54 }
 0x461   : > { %7484 = vmatpush3.msra.mxu1 %v10175_v14  ;;  %7439 = vmatprep.subr.mxu0 %v10192_v35 }
 0x462   : > { %7486 = vmatmul.mubr.f32.vlgmr.msra.gmra.mxu1 %v9456_v33  ;;  %7440 = vmatpush3.msra.mxu0 %v10192_v35 }
 0x463   : > { %7488 = vmatprep.mubr.f32.mxu1 %v9470_v46  ;;  %7441 = vmatprep.subr.mxu0 %v10193_v19 }
 0x464   : > { %7442 = vmatpush3.msra.mxu0 %v10193_v19 }
 0x465   : > { %7443 = vmatprep.subr.mxu0 %v10194_v17 }
 0x466   : > { %7489 = vmatmul.mubr.f32.gmra.mxu1 %v9464_v6  ;;  %7444 = vmatpush3.msra.mxu0 %v10194_v17 }
 0x467   : > { %7445 = vmatprep.subr.mxu0 %v10195_v38 }
 0x468   : > { %7446 = vmatpush3.msra.mxu0 %v10195_v38 }
 0x469   : > { %7448 = vmatmul.mubr.f32.vlgmr.msra.gmra.mxu0 %v9456_v33 }
 0x46a   : > { %7450 = vmatprep.mubr.f32.mxu0 %v9470_v46 }
 0x46d   : > { %7451 = vmatmul.mubr.f32.gmra.mxu0 %v9464_v6 }
 0x4dc   : > { %v7335_v7 = vpop.f32.mrf.mxu1 }
 0x4de   : > { %v4711_v43 = vpop.f32.mrf.mxu1 }
 0x4e0   : > { %v7338_v31 = vpop.f32.mrf.mxu1 }
 0x4e2   : > { %v4723_v52 = vpop.f32.mrf.mxu1 }
 0x4e4   : > { %v7297_v4 = vpop.f32.mrf.mxu0 }
 0x4e5   : > { %v4541_v46 = vadd.f32 %v7297_v4, %v6033_v3 }
 0x4e6   : > { %v4530_v18 = vpop.f32.mrf.mxu0 }
 0x4e7   : > { %v4531_v5 = vadd.f32 %v6033_v3, %v4530_v18  ;;  %v4718_v61 = vadd.f32 %v7335_v7, %v4541_v46  ;;  %v5294_v46 = vld [vmem:[#allocation2 + $0x8] sm:$0xff] }
 0x4e9   : > { %v7300_v29 = vpop.f32.mrf.mxu0  ;;  %v4712_v62 = vadd.f32 %v4711_v43, %v4531_v5  ;;  %v9668_v5 = vand.u32 4294901760, %v5294_v46 }
 0x4ea   : > { %v4561_v49 = vadd.f32 %v7300_v29, %v6033_v3 }
 0x4eb   : > { %v4550_v20 = vpop.f32.mrf.mxu0 }
 0x4ec   : > { %v4551_v40 = vadd.f32 %v6033_v3, %v4550_v20  ;;  %v4730_v47 = vadd.f32 %v7338_v31, %v4561_v49  ;;  %v5295_v3 = vld [vmem:[#allocation2 + $0x10] sm:$0xff]  ;;  %v9679_v49 = vsub.f32 %v5294_v46, %v9668_v5 }
 0x4ee   : > { %v4724_v10 = vadd.f32 %v4723_v52, %v4551_v40  ;;  %v5293_v40 = vld [vmem:[#allocation2] sm:$0xff] }
 0x4fe   : > { %v7411_v39 = vpop.f32.mrf.mxu1 }
 0x500   : > { %v4943_v57 = vpop.f32.mrf.mxu1 }
 0x503   : > { %v7414_v33 = vpop.f32.mrf.mxu1 }
 0x505   : > { %v4959_v6 = vpop.f32.mrf.mxu1 }
 0x507   : > { %v7373_v36 = vpop.f32.mrf.mxu0 }
 0x508   : > { %v4841_v44 = vadd.f32 %v7373_v36, %v4718_v61 }
 0x509   : > { %v4833_v51 = vpop.f32.mrf.mxu0 }
 0x50a   : > { %v4834_v1 = vadd.f32 %v4833_v51, %v4712_v62  ;;  %v4952_v45 = vadd.f32 %v7411_v39, %v4841_v44  ;;  %v9665_v51 = vand.u32 4294901760, %v5295_v3  ;;  %v9691_v44 = vand.u32 4294901760, %v9679_v49 }
 0x50c   : > { %v7376_v63 = vpop.f32.mrf.mxu0  ;;  %v4944_v50 = vadd.f32 %v4943_v57, %v4834_v1  ;;  %v5296_v57 = vld [vmem:[#allocation2 + $0x18] sm:$0xff] }
 0x50d   : > { %v4855_v58 = vadd.f32 %v7376_v63, %v4730_v47  ;;  %v9660_v36 = vand.u32 4294901760, %v5296_v57  ;;  %v9675_v63 = vsub.f32 %v5295_v3, %v9665_v51 }
 0x50e   : > { %v4847_v55 = vpop.f32.mrf.mxu0 }
 0x50f   : > { %v4848_v41 = vadd.f32 %v4847_v55, %v4724_v10  ;;  %v4968_v8 = vadd.f32 %v7414_v33, %v4855_v58  ;;  %v9663_v33 = vsub.f32 %v5296_v57, %v9660_v36  ;;  %7491 = vmatprep.subr.mxu0 %v9660_v36  ;;  %v9685_v62 = vand.u32 4294901760, %v9675_v63 }
 0x510   : > { %7492 = vmatpush3.msra.mxu0 %v9660_v36  ;;  %v5467_v10 = vsub.f32 %v9679_v49, %v9691_v44 }
 0x511   : > { %v4960_v42 = vadd.f32 %v4959_v6, %v4848_v41  ;;  %v9672_v6 = vand.u32 4294901760, %v9663_v33  ;;  %7493 = vmatprep.subr.mxu0 %v9665_v51  ;;  %v5460_v55 = vsub.f32 %v9675_v63, %v9685_v62 }
 0x512   : > { %7494 = vmatpush3.msra.mxu0 %v9665_v51  ;;  %v5468_v58 = vand.u32 4294901760, %v5467_v10 }
 0x513   : > { %v5453_v61 = vsub.f32 %v9663_v33, %v9672_v6  ;;  %7495 = vmatprep.subr.mxu0 %v9668_v5 }
 0x514   : > { %7496 = vmatpush3.msra.mxu0 %v9668_v5 }
 0x515   : > { %v5454_v1 = vand.u32 4294901760, %v5453_v61 }
 0x517   : > { %7505 = vmatprep.subr.mxu1 %v5454_v1 }
 0x518   : > { %7506 = vmatpush3.msra.mxu1 %v5454_v1 }
 0x522   : > { %v7487_v59 = vpop.f32.mrf.mxu1 }
 0x524   : > { %v5191_v60 = vpop.f32.mrf.mxu1 }
 0x526   : > { %v7490_v30 = vpop.f32.mrf.mxu1 }
 0x528   : > { %v5203_v16 = vpop.f32.mrf.mxu1 }
 0x529   : > { %v7449_v24 = vpop.f32.mrf.mxu0 }
 0x52a   : > { %v5093_v9 = vadd.f32 %v7449_v24, %v4952_v45 }
 0x52b   : > { %v5086_v2 = vpop.f32.mrf.mxu0 }
 0x52c   : > { %v5087_v12 = vadd.f32 %v5086_v2, %v4944_v50  ;;  %v5198_v34 = vadd.f32 %v7487_v59, %v5093_v9  ;;  %v9687_v59 = vand.u32 4294901760, %v5293_v40 }
 0x52d   : > { %v7452_v21 = vpop.f32.mrf.mxu0 }
 0x52e   : > { %v5192_v22 = vadd.f32 %v5191_v60, %v5087_v12  ;;  %v5105_v14 = vadd.f32 %v7452_v21, %v4968_v8  ;;  %v5219_v23 = vsel %vm5215_vm3, %v5198_v34, 0.0  ;;  %v9697_v47 = vsub.f32 %v5293_v40, %v9687_v59  ;;  %7497 = vmatprep.subr.mxu0 %v9687_v59 }
 0x52f   : > { %v5098_v53 = vpop.f32.mrf.mxu0  ;;  %7498 = vmatpush3.msra.mxu0 %v9687_v59  ;;  %v5461_v60 = vand.u32 4294901760, %v5460_v55 }
 0x530   : > { %v5099_v28 = vadd.f32 %v5098_v53, %v4960_v42  ;;  %v5216_v26 = vsel %vm5215_vm3, %v5192_v22, 0.0  ;;  %v5210_v32 = vadd.f32 %v7490_v30, %v5105_v14  ;;  %v9704_v24 = vand.u32 4294901760, %v9697_v47  ;;  %7519 = vmatprep.subr.mxu0 %v9663_v33 }
 0x531   : > { %5217 = vadd.xlane.f32.xlu0 %v5216_v26  ;;  %7507 = vmatprep.subr.mxu1 %v5461_v60 }
 0x532   : > { %v5204_v48 = vadd.f32 %v5203_v16, %v5099_v28  ;;  %v5225_v56 = vsel %vm5215_vm3, %v5210_v32, 0.0  ;;  %v5474_v41 = vsub.f32 %v9697_v47, %v9704_v24  ;;  %7508 = vmatpush3.msra.mxu1 %v5461_v60 }
 0x533   : > { %7509 = vmatprep.subr.mxu1 %v5468_v58 }
 0x534   : > { %v5222_v25 = vsel %vm5215_vm3, %v5204_v48, 0.0  ;;  %v5475_v45 = vand.u32 4294901760, %v5474_v41  ;;  %7510 = vmatpush3.msra.mxu1 %v5468_v58 }
 0x535   : > { %5220 = vadd.xlane.f32.xlu0 %v5219_v23  ;;  %5223 = vadd.xlane.f32.xlu1 %v5222_v25 }
 0x536   : > { %7511 = vmatprep.subr.mxu1 %v5475_v45 }
 0x537   : > { %7512 = vmatpush3.msra.mxu1 %v5475_v45 }
 0x538   : > { %7533 = vmatprep.subr.mxu1 %v9660_v36 }
 0x539   : > { %5226 = vadd.xlane.f32.xlu1 %v5225_v56 }
 0x5ba   : > { %v5218_v0 = vpop.xlane.xlu0 %5217 }
 0x5bb   : > { %v5229_v37 = vmul.f32 0.03125, %v5218_v0 }
 0x5bd   : > { %v9640_v15 = vsub.f32 %v5192_v22, %v5229_v37 }
 0x5be   : > { %v5221_v11 = vpop.xlane.xlu0 %5220  ;;  %v5224_v13 = vpop.xlane.xlu1 %5223 }
 0x5bf   : > { %v5230_v27 = vmul.f32 0.03125, %v5221_v11  ;;  %v5231_v54 = vmul.f32 0.03125, %v5224_v13  ;;  %v5237_v35 = vmul.f32 %v9640_v15, %v9640_v15 }
 0x5c1   : > { %v9644_v19 = vsub.f32 %v5198_v34, %v5230_v27  ;;  %v9646_v17 = vsub.f32 %v5204_v48, %v5231_v54  ;;  %v5241_v38 = vsel %vm5215_vm3, %v5237_v35, 0.0  ;;  %v6034_v34 = vld [vmem:[%s9798_s11] ss:$0 sm:$0xff] }
 0x5c2   : > { %5242 = vadd.xlane.f32.xlu0 %v5241_v38  ;;  %v5227_v7 = vpop.xlane.xlu1 %5226  ;;  %v6035_v48 = vld [vmem:[%s9799_s12] ss:$0 sm:$0xff] }
 0x5c3   : > { %v5232_v43 = vmul.f32 0.03125, %v5227_v7  ;;  %v5238_v4 = vmul.f32 %v9644_v19, %v9644_v19  ;;  %v5239_v31 = vmul.f32 %v9646_v17, %v9646_v17 }
 0x5c5   : > { %v9653_v18 = vsub.f32 %v5210_v32, %v5232_v43  ;;  %v5244_v52 = vsel %vm5215_vm3, %v5238_v4, 0.0  ;;  %v5247_v29 = vsel %vm5215_vm3, %v5239_v31, 0.0 }
 0x5c6   : > { %5245 = vadd.xlane.f32.xlu1 %v5244_v52  ;;  %5248 = vadd.xlane.f32.xlu0 %v5247_v29 }
 0x5c7   : > { %v5240_v39 = vmul.f32 %v9653_v18, %v9653_v18 }
 0x5c9   : > { %v5250_v20 = vsel %vm5215_vm3, %v5240_v39, 0.0 }
 0x5ca   : > { %5251 = vadd.xlane.f32.xlu1 %v5250_v20 }
 0x64b   : > { %v5243_v50 = vpop.xlane.xlu0 %5242 }
 0x64c   : > { %v5253_v2 = vmul.f32 0.03125, %v5243_v50 }
 0x64e   : > { %v5257_v9 = vadd.f32 1e-05, %v5253_v2 }
 0x64f   : > { %v5249_v12 = vpop.xlane.xlu0 %5248  ;;  %v5246_v30 = vpop.xlane.xlu1 %5245 }
 0x650   : > { %7642 = vrsqrt.f32 %v5257_v9  ;;  %v5255_v21 = vmul.f32 0.03125, %v5249_v12  ;;  %v5254_v8 = vmul.f32 0.03125, %v5246_v30 }
 0x652   : > { %v5259_v42 = vadd.f32 1e-05, %v5255_v21  ;;  %v5258_v22 = vadd.f32 1e-05, %v5254_v8 }
 0x653   : > { %v5252_v53 = vpop.xlane.xlu1 %5251 }
 0x654   : > { %7644 = vrsqrt.f32 %v5259_v42  ;;  %v5256_v14 = vmul.f32 0.03125, %v5252_v53 }
 0x655   : > { %7646 = vrsqrt.f32 %v5258_v22 }
 0x656   : > { %v5260_v28 = vadd.f32 1e-05, %v5256_v14 }
 0x658   : > { %7648 = vrsqrt.f32 %v5260_v28 }
 0x65d   : > { %v7643_v26 = vpop.eup %7642 }
 0x65e   : > { %v5265_v16 = vmul.f32 %v7643_v26, %v9640_v15 }
 0x660   : > { %v5275_v23 = vmul.f32 %v6034_v34, %v5265_v16 }
 0x661   : > { %v7645_v25 = vpop.eup %7644 }
 0x662   : > { %v7647_v32 = vpop.eup %7646  ;;  %v5267_v56 = vmul.f32 %v7645_v25, %v9646_v17  ;;  %v5285_v0 = vadd.f32 %v6035_v48, %v5275_v23 }
 0x663   : > { %v5266_v37 = vmul.f32 %v7647_v32, %v9644_v19 }
 0x664   : > { %v5289_v11 = vmax.f32 %v5285_v0, 0.0  ;;  %v5277_v13 = vmul.f32 %v6034_v34, %v5267_v56 }
 0x665   : > { %v7649_v27 = vpop.eup %7648  ;;  %v5276_v54 = vmul.f32 %v6034_v34, %v5266_v37 }
 0x666   : > { %v5268_v35 = vmul.f32 %v7649_v27, %v9653_v18  ;;  %v5305_v15 = vsel %vm5215_vm3, %v5289_v11, 0  ;;  %v5287_v38 = vadd.f32 %v6035_v48, %v5277_v13 }
 0x667   : > { %v9721_v7 = vand.u32 4294901760, %v5305_v15  ;;  %v5286_v43 = vadd.f32 %v6035_v48, %v5276_v54 }
 0x668   : > { %v5291_v4 = vmax.f32 %v5287_v38, 0.0  ;;  %v5278_v31 = vmul.f32 %v6034_v34, %v5268_v35 }
 0x669   : > { %7513 = vmatprep.mubr.f32.mxu1 %v9721_v7  ;;  %v5290_v17 = vmax.f32 %v5286_v43, 0.0  ;;  %v5386_v52 = vsub.f32 %v5305_v15, %v9721_v7 }
 0x66a   : > { %v5311_v19 = vsel %vm5215_vm3, %v5291_v4, 0  ;;  %v5288_v29 = vadd.f32 %v6035_v48, %v5278_v31 }
 0x66b   : > { %v5308_v39 = vsel %vm5215_vm3, %v5290_v17, 0  ;;  %v9727_v20 = vand.u32 4294901760, %v5311_v19  ;;  %v5387_v18 = vand.u32 4294901760, %v5386_v52 }
 0x66c   : > { %v9729_v57 = vand.u32 4294901760, %v5308_v39  ;;  %v5292_v3 = vmax.f32 %v5288_v29, 0.0 }
 0x66d   : > { %v5388_v46 = vsub.f32 %v5386_v52, %v5387_v18  ;;  %v5406_v40 = vsub.f32 %v5311_v19, %v9727_v20 }
 0x66e   : > { %v5396_v61 = vsub.f32 %v5308_v39, %v9729_v57  ;;  %7514 = vmatmul.mubr.f32.vlgmr.msra.gmra.mxu1 %v9729_v57  ;;  %v5314_v1 = vsel %vm5215_vm3, %v5292_v3, 0 }
 0x66f   : > { %7516 = vmatprep.mubr.f32.mxu1 %v9727_v20  ;;  %7534 = vmatpush3.msra.mxu1 %v9660_v36  ;;  %v5389_v55 = vand.u32 4294901760, %v5388_v46  ;;  %v5415_v10 = vand.u32 4294901760, %v5314_v1  ;;  %v5407_v60 = vand.u32 4294901760, %v5406_v40 }
 0x670   : > { %7535 = vmatprep.subr.mxu1 %v9665_v51  ;;  %v5397_v58 = vand.u32 4294901760, %v5396_v61 }
 0x671   : > { %7536 = vmatpush3.msra.mxu1 %v9665_v51  ;;  %7499 = vmatprep.mubr.f32.mxu0 %v5389_v55  ;;  %v5408_v41 = vsub.f32 %v5406_v40, %v5407_v60  ;;  %v5416_v45 = vsub.f32 %v5314_v1, %v5415_v10 }
 0x672   : > { %7517 = vmatmul.mubr.f32.gmra.mxu1 %v5415_v10  ;;  %7537 = vmatprep.subr.mxu1 %v9668_v5  ;;  %v5398_v50 = vsub.f32 %v5396_v61, %v5397_v58 }
 0x673   : > { %7538 = vmatpush3.msra.mxu1 %v9668_v5  ;;  %7541 = vmatprep.mubr.f32.mxu1 %v5387_v18  ;;  %v5417_v2 = vand.u32 4294901760, %v5416_v45  ;;  %v5409_v12 = vand.u32 4294901760, %v5408_v41 }
 0x674   : > { %7539 = vmatprep.subr.mxu1 %v9687_v59  ;;  %v5399_v9 = vand.u32 4294901760, %v5398_v50 }
 0x675   : > { %7540 = vmatpush3.msra.mxu1 %v9687_v59  ;;  %v5418_v30 = vsub.f32 %v5416_v45, %v5417_v2 }
 0x676   : > { %7500 = vmatmul.mubr.f32.vlgmr.msra.gmra.mxu0 %v5399_v9  ;;  %7542 = vmatmul.mubr.f32.vlgmr.msra.gmra.mxu1 %v5397_v58 }
 0x677   : > { %7520 = vmatpush3.msra.mxu0 %v9663_v33  ;;  %7561 = vmatprep.subr.mxu1 %v9660_v36  ;;  %v5419_v21 = vand.u32 4294901760, %v5418_v30 }
 0x678   : > { %7502 = vmatprep.mubr.f32.mxu0 %v5409_v12  ;;  %7521 = vmatprep.subr.mxu0 %v9675_v63 }
 0x679   : > { %7544 = vmatprep.mubr.f32.mxu1 %v5407_v60  ;;  %7562 = vmatpush3.msra.mxu1 %v9660_v36 }
 0x67a   : > { %7522 = vmatpush3.msra.mxu0 %v9675_v63  ;;  %7563 = vmatprep.subr.mxu1 %v9665_v51 }
 0x67b   : > { %7523 = vmatprep.subr.mxu0 %v9679_v49  ;;  %7564 = vmatpush3.msra.mxu1 %v9665_v51 }
 0x67c   : > { %7503 = vmatmul.mubr.f32.gmra.mxu0 %v5419_v21  ;;  %7545 = vmatmul.mubr.f32.gmra.mxu1 %v5417_v2 }
 0x67d   : > { %7524 = vmatpush3.msra.mxu0 %v9679_v49  ;;  %7565 = vmatprep.subr.mxu1 %v9668_v5 }
 0x67e   : > { %7525 = vmatprep.subr.mxu0 %v9697_v47  ;;  %7527 = vmatprep.mubr.f32.mxu0 %v5386_v52 }
 0x67f   : > { %7566 = vmatpush3.msra.mxu1 %v9668_v5  ;;  %7569 = vmatprep.mubr.f32.mxu1 %v9721_v7 }
 0x680   : > { %7526 = vmatpush3.msra.mxu0 %v9697_v47  ;;  %7567 = vmatprep.subr.mxu1 %v9687_v59 }
 0x681   : > { %7547 = vmatprep.subr.mxu0 %v9672_v6  ;;  %7568 = vmatpush3.msra.mxu1 %v9687_v59 }
 0x682   : > { %7528 = vmatmul.mubr.f32.vlgmr.msra.gmra.mxu0 %v5396_v61  ;;  %7570 = vmatmul.mubr.f32.vlgmr.msra.gmra.mxu1 %v9729_v57 }
 0x683   : > { %7548 = vmatpush3.msra.mxu0 %v9672_v6  ;;  %7530 = vmatprep.mubr.f32.mxu0 %v5406_v40 }
 0x684   : > { %7549 = vmatprep.subr.mxu0 %v9685_v62  ;;  %7572 = vmatprep.mubr.f32.mxu1 %v9727_v20 }
 0x685   : > { %7550 = vmatpush3.msra.mxu0 %v9685_v62 }
 0x686   : > { %7551 = vmatprep.subr.mxu0 %v9691_v44  ;;  %7531 = vmatmul.mubr.f32.gmra.mxu0 %v5416_v45 }
 0x687   : > { %7552 = vmatpush3.msra.mxu0 %v9691_v44  ;;  %7573 = vmatmul.mubr.f32.gmra.mxu1 %v5415_v10  ;;  %v6036_v44 = vld [vmem:[%s9801_s14] ss:$0 sm:$0xff] }
 0x688   : > { %7553 = vmatprep.subr.mxu0 %v9704_v24  ;;  %7555 = vmatprep.mubr.f32.mxu0 %v9721_v7 }
 0x689   : > { %7554 = vmatpush3.msra.mxu0 %v9704_v24 }
 0x68a   : > { %7556 = vmatmul.mubr.f32.vlgmr.msra.gmra.mxu0 %v9729_v57 }
 0x68b   : > { %7558 = vmatprep.mubr.f32.mxu0 %v9727_v20 }
 0x68e   : > { %7559 = vmatmul.mubr.f32.gmra.mxu0 %v5415_v10 }
 0x72e   : > { %v7515_v36 = vpop.f32.mrf.mxu1 }
 0x730   : > { %v5512_v33 = vpop.f32.mrf.mxu1 }
 0x732   : > { %v7518_v51 = vpop.f32.mrf.mxu1 }
 0x734   : > { %v5524_v5 = vpop.f32.mrf.mxu1 }
 0x736   : > { %v7501_v6 = vpop.f32.mrf.mxu0  ;;  %v7543_v63 = vpop.f32.mrf.mxu1 }
 0x737   : > { %v5402_v8 = vadd.f32 %v7501_v6, %v6036_v44 }
 0x738   : > { %v5391_v49 = vpop.f32.mrf.mxu0  ;;  %v5708_v62 = vpop.f32.mrf.mxu1 }
 0x739   : > { %v5392_v42 = vadd.f32 %v6036_v44, %v5391_v49  ;;  %v5519_v28 = vadd.f32 %v7515_v36, %v5402_v8 }
 0x73b   : > { %v5513_v16 = vadd.f32 %v5512_v33, %v5392_v42 }
 0x73c   : > { %v7504_v59 = vpop.f32.mrf.mxu0  ;;  %v7546_v47 = vpop.f32.mrf.mxu1 }
 0x73d   : > { %v5422_v14 = vadd.f32 %v7504_v59, %v6036_v44 }
 0x73e   : > { %v5411_v24 = vpop.f32.mrf.mxu0  ;;  %v5724_v22 = vpop.f32.mrf.mxu1 }
 0x73f   : > { %v5412_v34 = vadd.f32 %v6036_v44, %v5411_v24  ;;  %v5531_v56 = vadd.f32 %v7518_v51, %v5422_v14 }
 0x741   : > { %v5525_v37 = vadd.f32 %v5524_v5, %v5412_v34 }
 0x742   : > { %v7529_v53 = vpop.f32.mrf.mxu0  ;;  %v7571_v23 = vpop.f32.mrf.mxu1 }
 0x743   : > { %v5618_v48 = vadd.f32 %v7529_v53, %v5519_v28 }
 0x744   : > { %v5610_v26 = vpop.f32.mrf.mxu0  ;;  %v5908_v11 = vpop.f32.mrf.mxu1 }
 0x745   : > { %v5611_v32 = vadd.f32 %v5610_v26, %v5513_v16  ;;  %v5717_v27 = vadd.f32 %v7543_v63, %v5618_v48 }
 0x746   : > { %v7532_v25 = vpop.f32.mrf.mxu0 }
 0x747   : > { %v5632_v13 = vadd.f32 %v7532_v25, %v5531_v56  ;;  %v5709_v15 = vadd.f32 %v5708_v62, %v5611_v32  ;;  %v7574_v4 = vpop.f32.mrf.mxu1 }
 0x748   : > { %v5624_v0 = vpop.f32.mrf.mxu0 }
 0x749   : > { %v5625_v35 = vadd.f32 %v5624_v0, %v5525_v37  ;;  %v5733_v31 = vadd.f32 %v7546_v47, %v5632_v13  ;;  %v5920_v57 = vpop.f32.mrf.mxu1 }
 0x74a   : > { %v7557_v54 = vpop.f32.mrf.mxu0 }
 0x74b   : > { %v5822_v38 = vadd.f32 %v7557_v54, %v5717_v27  ;;  %v5725_v19 = vadd.f32 %v5724_v22, %v5625_v35 }
 0x74c   : > { %v5815_v7 = vpop.f32.mrf.mxu0 }
 0x74d   : > { %v5816_v43 = vadd.f32 %v5815_v7, %v5709_v15  ;;  %v5915_v29 = vadd.f32 %v7571_v23, %v5822_v38 }
 0x74e   : > { %v7560_v17 = vpop.f32.mrf.mxu0 }
 0x74f   : > { %v5909_v52 = vadd.f32 %v5908_v11, %v5816_v43  ;;  %v5834_v39 = vadd.f32 %v7560_v17, %v5733_v31  ;;  %5931 = vst.msk [vmem:[%s511_s26 + $0x8] sm:$0xff] %vm5215_vm3, %v5915_v29 }
 0x750   : > { %v5827_v20 = vpop.f32.mrf.mxu0 }
 0x751   : > { %5930 = vst.msk [vmem:[%s511_s26] sm:$0xff] %vm5215_vm3, %v5909_v52  ;;  %v5828_v18 = vadd.f32 %v5827_v20, %v5725_v19  ;;  %v5927_v46 = vadd.f32 %v7574_v4, %v5834_v39 }
 0x753   : > { %v5921_v3 = vadd.f32 %v5920_v57, %v5828_v18  ;;  %5933 = vst.msk [vmem:[%s511_s26 + $0x18] sm:$0xff] %vm5215_vm3, %v5927_v46 }
 0x755   : > { %5932 = vst.msk [vmem:[%s511_s26 + $0x10] sm:$0xff] %vm5215_vm3, %v5921_v3 }
 0x756 PF: > { %s26_s18 = sadd.s32 1, %s7686_s18  }
 0x757   : > { %p23_p1 = scmp.ge.s32.totalorder %s26_s18, 4  }
 0x759   :  { %25 = sbr.rel (!%p23_p1) target bundleno = 1 (0x1), region = 115 }
 0x75e   :  { %5956 = vsyncpa [#allocation3], 1 }
 0x75f   :  { %5958 = vsyncpa [#allocation3 + $0x1], 1 }

</bundles_post_ra>
